<compile_context>
chip_gen: v5e
topology: v5e:2x2
jax: 0.10.0
libtpu: 0.0.40
codegen_flags: <defaults>
</compile_context>

<pallas_src>
import functools

import jax
import jax.numpy as jnp
import numpy as np
from jax.experimental import pallas as pl
from jax.experimental.pallas import tpu as pltpu


def _conv3d_kernel(x_ref, w_ref, o_ref, *, Hp, Wp, P, Cin_p, base):
    """One batch element.

    x_ref : (Cin_p, Xext)         flattened, halo-extended zero-padded input
    w_ref : (Cout_p, 27*Cin_p)    tap-major weight matrix (kd,kh,kw outer)
    o_ref : (Cout_p, P)           f32 conv result over the padded grid
                                  (borders cropped in the wrapper)
    """
    # f32 output tile doubles as the accumulator (P3 pattern, single grid step).
    o_ref[...] = jnp.zeros_like(o_ref)

    # 27 accumulated tap matmuls; every window is a contiguous static slice of
    # the halo-extended lane axis (no im2col stack, no per-tap relayouts).
    t = 0
    for kd in range(3):
        for kh in range(3):
            for kw in range(3):
                delta = (kd - 1) * Hp * Wp + (kh - 1) * Wp + (kw - 1)
                start = base + delta                     # static, >= 0
                w_tap = w_ref[:, pl.ds(t * Cin_p, Cin_p)]
                o_ref[...] += jnp.dot(
                    w_tap, x_ref[:, pl.ds(start, P)],
                    preferred_element_type=jnp.float32)
                t += 1


def final_layer_forward(x_ncdhw, weight_oidhw, *, use_bf16_mxu=True):
    """FinalLayer.forward: Conv3d(k=3, pad=1, stride=1, bias=False).

    x_ncdhw     : (N, Cin, D, H, W)     PyTorch NCDHW convention
    weight_oidhw: (Cout, Cin, 3, 3, 3)
    returns     : (N, Cout, D, H, W)
    """
    N, Cin, D, H, W = x_ncdhw.shape
    Cout = weight_oidhw.shape[0]
    assert weight_oidhw.shape == (Cout, Cin, 3, 3, 3)

    Dp, Hp, Wp = D + 2, H + 2, W + 2
    P = Dp * Hp * Wp
    Cin_p = -(-Cin // 8) * 8            # sublane-align the reduction rows
    Cout_p = -(-Cout // 8) * 8          # full sublane group -> unmasked stores
    base = 2 * Hp * Wp                  # flat offset of the padded grid
    Xext = (D + 6) * Hp * Wp            # halo-extended flat lane extent
    # halo = Hp*Wp + Wp + 1 <= 2*Hp*Wp, so 2 extra D planes per side cover it.

    # ---- wrapper glue: ONE zero-pad + free reshapes only (no transposes of x)
    xp = jnp.pad(x_ncdhw, ((0, 0), (0, Cin_p - Cin), (3, 3), (1, 1), (1, 1)))
    x_ext = xp.reshape(N, Cin_p, Xext)

    # (Cout, Cin, 3,3,3) -> (Cout_p, 27*Cin_p); columns tap-major ((kd,kh,kw)
    # outer, channel inner) to match the kernel's tap loop order.
    w_p = jnp.pad(weight_oidhw,
                  ((0, Cout_p - Cout), (0, Cin_p - Cin), (0, 0), (0, 0), (0, 0)))
    w2d = jnp.transpose(w_p, (0, 2, 3, 4, 1)).reshape(Cout_p, 27 * Cin_p)

    if use_bf16_mxu:   # halve DMA + VMEM; accumulation stays f32 on the MXU
        x_ext = x_ext.astype(jnp.bfloat16)
        w2d = w2d.astype(jnp.bfloat16)

    # VMEM budget: double-buffered input/weight/output blocks + headroom,
    # capped well below v7x's 64 MiB physical VMEM.
    itemsize = jnp.dtype(x_ext.dtype).itemsize
    x_blk = Cin_p * Xext * itemsize
    w_blk = Cout_p * 27 * Cin_p * itemsize
    o_blk = Cout_p * P * 4
    needed = 2 * (x_blk + w_blk + o_blk) + (4 << 20)
    vmem_limit = int(min(48 << 20, max(32 << 20, needed)))

    kernel = functools.partial(_conv3d_kernel, Hp=Hp, Wp=Wp, P=P,
                               Cin_p=Cin_p, base=base)

    out_pad = pl.pallas_call(
        kernel,
        out_shape=jax.ShapeDtypeStruct((N, Cout_p, P), jnp.float32),
        grid_spec=pltpu.PrefetchScalarGridSpec(
            num_scalar_prefetch=0,
            grid=(N,),
            in_specs=[
                pl.BlockSpec((None, Cin_p, Xext), lambda n: (n, 0, 0)),
                pl.BlockSpec((Cout_p, 27 * Cin_p), lambda n: (0, 0)),
            ],
            out_specs=pl.BlockSpec((None, Cout_p, P), lambda n: (n, 0, 0)),
        ),
        compiler_params=pltpu.CompilerParams(
            dimension_semantics=("parallel",),
            vmem_limit_bytes=vmem_limit,
        ),
    )(x_ext, w2d)

    # Crop padded channels and the 1-voxel spatial border (cheap XLA copy),
    # keeping NCDHW layout throughout.
    out = out_pad.reshape(N, Cout_p, Dp, Hp, Wp)[:, :Cout, 1:-1, 1:-1, 1:-1]
    return out.astype(x_ncdhw.dtype)


if __name__ == "__main__":
    key = jax.random.PRNGKey(0)
    kx, kw = jax.random.split(key)

    # Small shapes consistent with the module: batch=2, in_channels=4,
    # n_classes=3, spatial D=H=W=8.
    N, Cin, Cout, D, H, W = 2, 4, 3, 8, 8, 8
    x = jax.random.normal(kx, (N, Cin, D, H, W), dtype=jnp.float32)
    weight = 0.1 * jax.random.normal(kw, (Cout, Cin, 3, 3, 3),
                                     dtype=jnp.float32)

    out = final_layer_forward(x, weight)
    out = jax.block_until_ready(out)

    # Reference check against XLA's conv (same semantics as nn.Conv3d).
    # Tolerance loosened because MXU operands are bf16 (f32 accumulation).
    ref = jax.lax.conv_general_dilated(
        x, weight,
        window_strides=(1, 1, 1),
        padding=((1, 1), (1, 1), (1, 1)),
        dimension_numbers=("NCDHW", "OIDHW", "NCDHW"),
    )
    ref = jax.block_until_ready(ref)

    assert out.shape == (N, Cout, D, H, W)
    np.testing.assert_allclose(np.asarray(out), np.asarray(ref),
                               atol=3e-2, rtol=3e-2)
    print("KERNEL_OK")
</pallas_src>

<mosaic_0001>
module attributes {stable_mosaic.version = 11 : i64} {
  func.func @_conv3d_kernel(%arg0: i32, %arg1: memref<1x8x1400xbf16, #tpu.memory_space<vmem>>, %arg2: memref<8x216xbf16, #tpu.memory_space<vmem>>, %arg3: memref<1x8x1000xf32, #tpu.memory_space<vmem>>) attributes {dimension_semantics = [#tpu.dimension_semantics<parallel>], iteration_bounds = array<i64: 2>, scalar_prefetch = 0 : i64, scratch_operands = 0 : i64, tpu.core_type = #tpu.core_type<tc>, window_params = [{transform_indices = @transform_0, window_bounds = array<i64: 1, 8, 1400>}, {pipeline_mode = #tpu.pipeline_mode<synchronous>, transform_indices = @transform_1, window_bounds = array<i64: 8, 216>}, {transform_indices = @transform_2, window_bounds = array<i64: 1, 8, 1000>}]} {
    %cst = arith.constant 0.000000e+00 : f32
    %0 = vector.broadcast %cst : f32 to vector<8x1000xf32>
    %c0 = arith.constant 0 : index
    %c0_0 = arith.constant 0 : index
    %c0_1 = arith.constant 0 : index
    %1 = vector.load %arg3[%c0, %c0_0, %c0_1] : memref<1x8x1000xf32, #tpu.memory_space<vmem>>, vector<1x8x1000xf32>
    %2 = vector.shape_cast %1 : vector<1x8x1000xf32> to vector<8x1000xf32>
    %3 = vector.shape_cast %0 : vector<8x1000xf32> to vector<1x8x1000xf32>
    tpu.vector_store %arg3[%c0, %c0_0, %c0_1], %3 {strides = array<i32>} : memref<1x8x1000xf32, #tpu.memory_space<vmem>>, vector<1x8x1000xf32>,
    %c0_2 = arith.constant 0 : index
    %c0_3 = arith.constant 0 : index
    %4 = vector.load %arg2[%c0_2, %c0_3] : memref<8x216xbf16, #tpu.memory_space<vmem>>, vector<8x8xbf16>
    %c0_4 = arith.constant 0 : index
    %c0_5 = arith.constant 0 : index
    %c0_6 = arith.constant 0 : index
    %5 = vector.load %arg3[%c0_4, %c0_5, %c0_6] : memref<1x8x1000xf32, #tpu.memory_space<vmem>>, vector<1x8x1000xf32>
    %6 = vector.shape_cast %5 : vector<1x8x1000xf32> to vector<8x1000xf32>
    %c0_7 = arith.constant 0 : index
    %c0_8 = arith.constant 0 : index
    %c89 = arith.constant 89 : index
    %7 = vector.load %arg1[%c0_7, %c0_8, %c89] : memref<1x8x1400xbf16, #tpu.memory_space<vmem>>, vector<1x8x1000xbf16>
    %8 = vector.shape_cast %7 : vector<1x8x1000xbf16> to vector<8x1000xbf16>
    %cst_9 = arith.constant dense<0.000000e+00> : vector<8x1000xf32>
    %9 = tpu.matmul %4, %8, %cst_9 {dimension_numbers = #tpu.dot_dimension_numbers<[1], [0], [0], [1], [0, 0, 1, 1], [], []>} : vector<8x8xbf16>, vector<8x1000xbf16>, vector<8x1000xf32> -> vector<8x1000xf32>
    %10 = arith.addf %6, %9 : vector<8x1000xf32>
    %c0_10 = arith.constant 0 : index
    %c0_11 = arith.constant 0 : index
    %c0_12 = arith.constant 0 : index
    %11 = vector.load %arg3[%c0_10, %c0_11, %c0_12] : memref<1x8x1000xf32, #tpu.memory_space<vmem>>, vector<1x8x1000xf32>
    %12 = vector.shape_cast %11 : vector<1x8x1000xf32> to vector<8x1000xf32>
    %13 = vector.shape_cast %10 : vector<8x1000xf32> to vector<1x8x1000xf32>
    tpu.vector_store %arg3[%c0_10, %c0_11, %c0_12], %13 {strides = array<i32>} : memref<1x8x1000xf32, #tpu.memory_space<vmem>>, vector<1x8x1000xf32>,
    %c0_13 = arith.constant 0 : index
    %c8 = arith.constant 8 : index
    %14 = vector.load %arg2[%c0_13, %c8] : memref<8x216xbf16, #tpu.memory_space<vmem>>, vector<8x8xbf16>
    %c0_14 = arith.constant 0 : index
    %c0_15 = arith.constant 0 : index
    %c0_16 = arith.constant 0 : index
    %15 = vector.load %arg3[%c0_14, %c0_15, %c0_16] : memref<1x8x1000xf32, #tpu.memory_space<vmem>>, vector<1x8x1000xf32>
    %16 = vector.shape_cast %15 : vector<1x8x1000xf32> to vector<8x1000xf32>
    %c0_17 = arith.constant 0 : index
    %c0_18 = arith.constant 0 : index
    %c90 = arith.constant 90 : index
    %17 = vector.load %arg1[%c0_17, %c0_18, %c90] : memref<1x8x1400xbf16, #tpu.memory_space<vmem>>, vector<1x8x1000xbf16>
    %18 = vector.shape_cast %17 : vector<1x8x1000xbf16> to vector<8x1000xbf16>
    %cst_19 = arith.constant dense<0.000000e+00> : vector<8x1000xf32>
    %19 = tpu.matmul %14, %18, %cst_19 {dimension_numbers = #tpu.dot_dimension_numbers<[1], [0], [0], [1], [0, 0, 1, 1], [], []>} : vector<8x8xbf16>, vector<8x1000xbf16>, vector<8x1000xf32> -> vector<8x1000xf32>
    %20 = arith.addf %16, %19 : vector<8x1000xf32>
    %c0_20 = arith.constant 0 : index
    %c0_21 = arith.constant 0 : index
    %c0_22 = arith.constant 0 : index
    %21 = vector.load %arg3[%c0_20, %c0_21, %c0_22] : memref<1x8x1000xf32, #tpu.memory_space<vmem>>, vector<1x8x1000xf32>
    %22 = vector.shape_cast %21 : vector<1x8x1000xf32> to vector<8x1000xf32>
    %23 = vector.shape_cast %20 : vector<8x1000xf32> to vector<1x8x1000xf32>
    tpu.vector_store %arg3[%c0_20, %c0_21, %c0_22], %23 {strides = array<i32>} : memref<1x8x1000xf32, #tpu.memory_space<vmem>>, vector<1x8x1000xf32>,
    %c0_23 = arith.constant 0 : index
    %c16 = arith.constant 16 : index
    %24 = vector.load %arg2[%c0_23, %c16] : memref<8x216xbf16, #tpu.memory_space<vmem>>, vector<8x8xbf16>
    %c0_24 = arith.constant 0 : index
    %c0_25 = arith.constant 0 : index
    %c0_26 = arith.constant 0 : index
    %25 = vector.load %arg3[%c0_24, %c0_25, %c0_26] : memref<1x8x1000xf32, #tpu.memory_space<vmem>>, vector<1x8x1000xf32>
    %26 = vector.shape_cast %25 : vector<1x8x1000xf32> to vector<8x1000xf32>
    %c0_27 = arith.constant 0 : index
    %c0_28 = arith.constant 0 : index
    %c91 = arith.constant 91 : index
    %27 = vector.load %arg1[%c0_27, %c0_28, %c91] : memref<1x8x1400xbf16, #tpu.memory_space<vmem>>, vector<1x8x1000xbf16>
    %28 = vector.shape_cast %27 : vector<1x8x1000xbf16> to vector<8x1000xbf16>
    %cst_29 = arith.constant dense<0.000000e+00> : vector<8x1000xf32>
    %29 = tpu.matmul %24, %28, %cst_29 {dimension_numbers = #tpu.dot_dimension_numbers<[1], [0], [0], [1], [0, 0, 1, 1], [], []>} : vector<8x8xbf16>, vector<8x1000xbf16>, vector<8x1000xf32> -> vector<8x1000xf32>
    %30 = arith.addf %26, %29 : vector<8x1000xf32>
    %c0_30 = arith.constant 0 : index
    %c0_31 = arith.constant 0 : index
    %c0_32 = arith.constant 0 : index
    %31 = vector.load %arg3[%c0_30, %c0_31, %c0_32] : memref<1x8x1000xf32, #tpu.memory_space<vmem>>, vector<1x8x1000xf32>
    %32 = vector.shape_cast %31 : vector<1x8x1000xf32> to vector<8x1000xf32>
    %33 = vector.shape_cast %30 : vector<8x1000xf32> to vector<1x8x1000xf32>
    tpu.vector_store %arg3[%c0_30, %c0_31, %c0_32], %33 {strides = array<i32>} : memref<1x8x1000xf32, #tpu.memory_space<vmem>>, vector<1x8x1000xf32>,
    %c0_33 = arith.constant 0 : index
    %c24 = arith.constant 24 : index
    %34 = vector.load %arg2[%c0_33, %c24] : memref<8x216xbf16, #tpu.memory_space<vmem>>, vector<8x8xbf16>
    %c0_34 = arith.constant 0 : index
    %c0_35 = arith.constant 0 : index
    %c0_36 = arith.constant 0 : index
    %35 = vector.load %arg3[%c0_34, %c0_35, %c0_36] : memref<1x8x1000xf32, #tpu.memory_space<vmem>>, vector<1x8x1000xf32>
    %36 = vector.shape_cast %35 : vector<1x8x1000xf32> to vector<8x1000xf32>
    %c0_37 = arith.constant 0 : index
    %c0_38 = arith.constant 0 : index
    %c99 = arith.constant 99 : index
    %37 = vector.load %arg1[%c0_37, %c0_38, %c99] : memref<1x8x1400xbf16, #tpu.memory_space<vmem>>, vector<1x8x1000xbf16>
    %38 = vector.shape_cast %37 : vector<1x8x1000xbf16> to vector<8x1000xbf16>
    %cst_39 = arith.constant dense<0.000000e+00> : vector<8x1000xf32>
    %39 = tpu.matmul %34, %38, %cst_39 {dimension_numbers = #tpu.dot_dimension_numbers<[1], [0], [0], [1], [0, 0, 1, 1], [], []>} : vector<8x8xbf16>, vector<8x1000xbf16>, vector<8x1000xf32> -> vector<8x1000xf32>
    %40 = arith.addf %36, %39 : vector<8x1000xf32>
    %c0_40 = arith.constant 0 : index
    %c0_41 = arith.constant 0 : index
    %c0_42 = arith.constant 0 : index
    %41 = vector.load %arg3[%c0_40, %c0_41, %c0_42] : memref<1x8x1000xf32, #tpu.memory_space<vmem>>, vector<1x8x1000xf32>
    %42 = vector.shape_cast %41 : vector<1x8x1000xf32> to vector<8x1000xf32>
    %43 = vector.shape_cast %40 : vector<8x1000xf32> to vector<1x8x1000xf32>
    tpu.vector_store %arg3[%c0_40, %c0_41, %c0_42], %43 {strides = array<i32>} : memref<1x8x1000xf32, #tpu.memory_space<vmem>>, vector<1x8x1000xf32>,
    %c0_43 = arith.constant 0 : index
    %c32 = arith.constant 32 : index
    %44 = vector.load %arg2[%c0_43, %c32] : memref<8x216xbf16, #tpu.memory_space<vmem>>, vector<8x8xbf16>
    %c0_44 = arith.constant 0 : index
    %c0_45 = arith.constant 0 : index
    %c0_46 = arith.constant 0 : index
    %45 = vector.load %arg3[%c0_44, %c0_45, %c0_46] : memref<1x8x1000xf32, #tpu.memory_space<vmem>>, vector<1x8x1000xf32>
    %46 = vector.shape_cast %45 : vector<1x8x1000xf32> to vector<8x1000xf32>
    %c0_47 = arith.constant 0 : index
    %c0_48 = arith.constant 0 : index
    %c100 = arith.constant 100 : index
    %47 = vector.load %arg1[%c0_47, %c0_48, %c100] : memref<1x8x1400xbf16, #tpu.memory_space<vmem>>, vector<1x8x1000xbf16>
    %48 = vector.shape_cast %47 : vector<1x8x1000xbf16> to vector<8x1000xbf16>
    %cst_49 = arith.constant dense<0.000000e+00> : vector<8x1000xf32>
    %49 = tpu.matmul %44, %48, %cst_49 {dimension_numbers = #tpu.dot_dimension_numbers<[1], [0], [0], [1], [0, 0, 1, 1], [], []>} : vector<8x8xbf16>, vector<8x1000xbf16>, vector<8x1000xf32> -> vector<8x1000xf32>
    %50 = arith.addf %46, %49 : vector<8x1000xf32>
    %c0_50 = arith.constant 0 : index
    %c0_51 = arith.constant 0 : index
    %c0_52 = arith.constant 0 : index
    %51 = vector.load %arg3[%c0_50, %c0_51, %c0_52] : memref<1x8x1000xf32, #tpu.memory_space<vmem>>, vector<1x8x1000xf32>
    %52 = vector.shape_cast %51 : vector<1x8x1000xf32> to vector<8x1000xf32>
    %53 = vector.shape_cast %50 : vector<8x1000xf32> to vector<1x8x1000xf32>
    tpu.vector_store %arg3[%c0_50, %c0_51, %c0_52], %53 {strides = array<i32>} : memref<1x8x1000xf32, #tpu.memory_space<vmem>>, vector<1x8x1000xf32>,
    %c0_53 = arith.constant 0 : index
    %c40 = arith.constant 40 : index
    %54 = vector.load %arg2[%c0_53, %c40] : memref<8x216xbf16, #tpu.memory_space<vmem>>, vector<8x8xbf16>
    %c0_54 = arith.constant 0 : index
    %c0_55 = arith.constant 0 : index
    %c0_56 = arith.constant 0 : index
    %55 = vector.load %arg3[%c0_54, %c0_55, %c0_56] : memref<1x8x1000xf32, #tpu.memory_space<vmem>>, vector<1x8x1000xf32>
    %56 = vector.shape_cast %55 : vector<1x8x1000xf32> to vector<8x1000xf32>
    %c0_57 = arith.constant 0 : index
    %c0_58 = arith.constant 0 : index
    %c101 = arith.constant 101 : index
    %57 = vector.load %arg1[%c0_57, %c0_58, %c101] : memref<1x8x1400xbf16, #tpu.memory_space<vmem>>, vector<1x8x1000xbf16>
    %58 = vector.shape_cast %57 : vector<1x8x1000xbf16> to vector<8x1000xbf16>
    %cst_59 = arith.constant dense<0.000000e+00> : vector<8x1000xf32>
    %59 = tpu.matmul %54, %58, %cst_59 {dimension_numbers = #tpu.dot_dimension_numbers<[1], [0], [0], [1], [0, 0, 1, 1], [], []>} : vector<8x8xbf16>, vector<8x1000xbf16>, vector<8x1000xf32> -> vector<8x1000xf32>
    %60 = arith.addf %56, %59 : vector<8x1000xf32>
    %c0_60 = arith.constant 0 : index
    %c0_61 = arith.constant 0 : index
    %c0_62 = arith.constant 0 : index
    %61 = vector.load %arg3[%c0_60, %c0_61, %c0_62] : memref<1x8x1000xf32, #tpu.memory_space<vmem>>, vector<1x8x1000xf32>
    %62 = vector.shape_cast %61 : vector<1x8x1000xf32> to vector<8x1000xf32>
    %63 = vector.shape_cast %60 : vector<8x1000xf32> to vector<1x8x1000xf32>
    tpu.vector_store %arg3[%c0_60, %c0_61, %c0_62], %63 {strides = array<i32>} : memref<1x8x1000xf32, #tpu.memory_space<vmem>>, vector<1x8x1000xf32>,
    %c0_63 = arith.constant 0 : index
    %c48 = arith.constant 48 : index
    %64 = vector.load %arg2[%c0_63, %c48] : memref<8x216xbf16, #tpu.memory_space<vmem>>, vector<8x8xbf16>
    %c0_64 = arith.constant 0 : index
    %c0_65 = arith.constant 0 : index
    %c0_66 = arith.constant 0 : index
    %65 = vector.load %arg3[%c0_64, %c0_65, %c0_66] : memref<1x8x1000xf32, #tpu.memory_space<vmem>>, vector<1x8x1000xf32>
    %66 = vector.shape_cast %65 : vector<1x8x1000xf32> to vector<8x1000xf32>
    %c0_67 = arith.constant 0 : index
    %c0_68 = arith.constant 0 : index
    %c109 = arith.constant 109 : index
    %67 = vector.load %arg1[%c0_67, %c0_68, %c109] : memref<1x8x1400xbf16, #tpu.memory_space<vmem>>, vector<1x8x1000xbf16>
    %68 = vector.shape_cast %67 : vector<1x8x1000xbf16> to vector<8x1000xbf16>
    %cst_69 = arith.constant dense<0.000000e+00> : vector<8x1000xf32>
    %69 = tpu.matmul %64, %68, %cst_69 {dimension_numbers = #tpu.dot_dimension_numbers<[1], [0], [0], [1], [0, 0, 1, 1], [], []>} : vector<8x8xbf16>, vector<8x1000xbf16>, vector<8x1000xf32> -> vector<8x1000xf32>
    %70 = arith.addf %66, %69 : vector<8x1000xf32>
    %c0_70 = arith.constant 0 : index
    %c0_71 = arith.constant 0 : index
    %c0_72 = arith.constant 0 : index
    %71 = vector.load %arg3[%c0_70, %c0_71, %c0_72] : memref<1x8x1000xf32, #tpu.memory_space<vmem>>, vector<1x8x1000xf32>
    %72 = vector.shape_cast %71 : vector<1x8x1000xf32> to vector<8x1000xf32>
    %73 = vector.shape_cast %70 : vector<8x1000xf32> to vector<1x8x1000xf32>
    tpu.vector_store %arg3[%c0_70, %c0_71, %c0_72], %73 {strides = array<i32>} : memref<1x8x1000xf32, #tpu.memory_space<vmem>>, vector<1x8x1000xf32>,
    %c0_73 = arith.constant 0 : index
    %c56 = arith.constant 56 : index
    %74 = vector.load %arg2[%c0_73, %c56] : memref<8x216xbf16, #tpu.memory_space<vmem>>, vector<8x8xbf16>
    %c0_74 = arith.constant 0 : index
    %c0_75 = arith.constant 0 : index
    %c0_76 = arith.constant 0 : index
    %75 = vector.load %arg3[%c0_74, %c0_75, %c0_76] : memref<1x8x1000xf32, #tpu.memory_space<vmem>>, vector<1x8x1000xf32>
    %76 = vector.shape_cast %75 : vector<1x8x1000xf32> to vector<8x1000xf32>
    %c0_77 = arith.constant 0 : index
    %c0_78 = arith.constant 0 : index
    %c110 = arith.constant 110 : index
    %77 = vector.load %arg1[%c0_77, %c0_78, %c110] : memref<1x8x1400xbf16, #tpu.memory_space<vmem>>, vector<1x8x1000xbf16>
    %78 = vector.shape_cast %77 : vector<1x8x1000xbf16> to vector<8x1000xbf16>
    %cst_79 = arith.constant dense<0.000000e+00> : vector<8x1000xf32>
    %79 = tpu.matmul %74, %78, %cst_79 {dimension_numbers = #tpu.dot_dimension_numbers<[1], [0], [0], [1], [0, 0, 1, 1], [], []>} : vector<8x8xbf16>, vector<8x1000xbf16>, vector<8x1000xf32> -> vector<8x1000xf32>
    %80 = arith.addf %76, %79 : vector<8x1000xf32>
    %c0_80 = arith.constant 0 : index
    %c0_81 = arith.constant 0 : index
    %c0_82 = arith.constant 0 : index
    %81 = vector.load %arg3[%c0_80, %c0_81, %c0_82] : memref<1x8x1000xf32, #tpu.memory_space<vmem>>, vector<1x8x1000xf32>
    %82 = vector.shape_cast %81 : vector<1x8x1000xf32> to vector<8x1000xf32>
    %83 = vector.shape_cast %80 : vector<8x1000xf32> to vector<1x8x1000xf32>
    tpu.vector_store %arg3[%c0_80, %c0_81, %c0_82], %83 {strides = array<i32>} : memref<1x8x1000xf32, #tpu.memory_space<vmem>>, vector<1x8x1000xf32>,
    %c0_83 = arith.constant 0 : index
    %c64 = arith.constant 64 : index
    %84 = vector.load %arg2[%c0_83, %c64] : memref<8x216xbf16, #tpu.memory_space<vmem>>, vector<8x8xbf16>
    %c0_84 = arith.constant 0 : index
    %c0_85 = arith.constant 0 : index
    %c0_86 = arith.constant 0 : index
    %85 = vector.load %arg3[%c0_84, %c0_85, %c0_86] : memref<1x8x1000xf32, #tpu.memory_space<vmem>>, vector<1x8x1000xf32>
    %86 = vector.shape_cast %85 : vector<1x8x1000xf32> to vector<8x1000xf32>
    %c0_87 = arith.constant 0 : index
    %c0_88 = arith.constant 0 : index
    %c111 = arith.constant 111 : index
    %87 = vector.load %arg1[%c0_87, %c0_88, %c111] : memref<1x8x1400xbf16, #tpu.memory_space<vmem>>, vector<1x8x1000xbf16>
    %88 = vector.shape_cast %87 : vector<1x8x1000xbf16> to vector<8x1000xbf16>
    %cst_89 = arith.constant dense<0.000000e+00> : vector<8x1000xf32>
    %89 = tpu.matmul %84, %88, %cst_89 {dimension_numbers = #tpu.dot_dimension_numbers<[1], [0], [0], [1], [0, 0, 1, 1], [], []>} : vector<8x8xbf16>, vector<8x1000xbf16>, vector<8x1000xf32> -> vector<8x1000xf32>
    %90 = arith.addf %86, %89 : vector<8x1000xf32>
    %c0_90 = arith.constant 0 : index
    %c0_91 = arith.constant 0 : index
    %c0_92 = arith.constant 0 : index
    %91 = vector.load %arg3[%c0_90, %c0_91, %c0_92] : memref<1x8x1000xf32, #tpu.memory_space<vmem>>, vector<1x8x1000xf32>
    %92 = vector.shape_cast %91 : vector<1x8x1000xf32> to vector<8x1000xf32>
    %93 = vector.shape_cast %90 : vector<8x1000xf32> to vector<1x8x1000xf32>
    tpu.vector_store %arg3[%c0_90, %c0_91, %c0_92], %93 {strides = array<i32>} : memref<1x8x1000xf32, #tpu.memory_space<vmem>>, vector<1x8x1000xf32>,
    %c0_93 = arith.constant 0 : index
    %c72 = arith.constant 72 : index
    %94 = vector.load %arg2[%c0_93, %c72] : memref<8x216xbf16, #tpu.memory_space<vmem>>, vector<8x8xbf16>
    %c0_94 = arith.constant 0 : index
    %c0_95 = arith.constant 0 : index
    %c0_96 = arith.constant 0 : index
    %95 = vector.load %arg3[%c0_94, %c0_95, %c0_96] : memref<1x8x1000xf32, #tpu.memory_space<vmem>>, vector<1x8x1000xf32>
    %96 = vector.shape_cast %95 : vector<1x8x1000xf32> to vector<8x1000xf32>
    %c0_97 = arith.constant 0 : index
    %c0_98 = arith.constant 0 : index
    %c189 = arith.constant 189 : index
    %97 = vector.load %arg1[%c0_97, %c0_98, %c189] : memref<1x8x1400xbf16, #tpu.memory_space<vmem>>, vector<1x8x1000xbf16>
    %98 = vector.shape_cast %97 : vector<1x8x1000xbf16> to vector<8x1000xbf16>
    %cst_99 = arith.constant dense<0.000000e+00> : vector<8x1000xf32>
    %99 = tpu.matmul %94, %98, %cst_99 {dimension_numbers = #tpu.dot_dimension_numbers<[1], [0], [0], [1], [0, 0, 1, 1], [], []>} : vector<8x8xbf16>, vector<8x1000xbf16>, vector<8x1000xf32> -> vector<8x1000xf32>
    %100 = arith.addf %96, %99 : vector<8x1000xf32>
    %c0_100 = arith.constant 0 : index
    %c0_101 = arith.constant 0 : index
    %c0_102 = arith.constant 0 : index
    %101 = vector.load %arg3[%c0_100, %c0_101, %c0_102] : memref<1x8x1000xf32, #tpu.memory_space<vmem>>, vector<1x8x1000xf32>
    %102 = vector.shape_cast %101 : vector<1x8x1000xf32> to vector<8x1000xf32>
    %103 = vector.shape_cast %100 : vector<8x1000xf32> to vector<1x8x1000xf32>
    tpu.vector_store %arg3[%c0_100, %c0_101, %c0_102], %103 {strides = array<i32>} : memref<1x8x1000xf32, #tpu.memory_space<vmem>>, vector<1x8x1000xf32>,
    %c0_103 = arith.constant 0 : index
    %c80 = arith.constant 80 : index
    %104 = vector.load %arg2[%c0_103, %c80] : memref<8x216xbf16, #tpu.memory_space<vmem>>, vector<8x8xbf16>
    %c0_104 = arith.constant 0 : index
    %c0_105 = arith.constant 0 : index
    %c0_106 = arith.constant 0 : index
    %105 = vector.load %arg3[%c0_104, %c0_105, %c0_106] : memref<1x8x1000xf32, #tpu.memory_space<vmem>>, vector<1x8x1000xf32>
    %106 = vector.shape_cast %105 : vector<1x8x1000xf32> to vector<8x1000xf32>
    %c0_107 = arith.constant 0 : index
    %c0_108 = arith.constant 0 : index
    %c190 = arith.constant 190 : index
    %107 = vector.load %arg1[%c0_107, %c0_108, %c190] : memref<1x8x1400xbf16, #tpu.memory_space<vmem>>, vector<1x8x1000xbf16>
    %108 = vector.shape_cast %107 : vector<1x8x1000xbf16> to vector<8x1000xbf16>
    %cst_109 = arith.constant dense<0.000000e+00> : vector<8x1000xf32>
    %109 = tpu.matmul %104, %108, %cst_109 {dimension_numbers = #tpu.dot_dimension_numbers<[1], [0], [0], [1], [0, 0, 1, 1], [], []>} : vector<8x8xbf16>, vector<8x1000xbf16>, vector<8x1000xf32> -> vector<8x1000xf32>
    %110 = arith.addf %106, %109 : vector<8x1000xf32>
    %c0_110 = arith.constant 0 : index
    %c0_111 = arith.constant 0 : index
    %c0_112 = arith.constant 0 : index
    %111 = vector.load %arg3[%c0_110, %c0_111, %c0_112] : memref<1x8x1000xf32, #tpu.memory_space<vmem>>, vector<1x8x1000xf32>
    %112 = vector.shape_cast %111 : vector<1x8x1000xf32> to vector<8x1000xf32>
    %113 = vector.shape_cast %110 : vector<8x1000xf32> to vector<1x8x1000xf32>
    tpu.vector_store %arg3[%c0_110, %c0_111, %c0_112], %113 {strides = array<i32>} : memref<1x8x1000xf32, #tpu.memory_space<vmem>>, vector<1x8x1000xf32>,
    %c0_113 = arith.constant 0 : index
    %c88 = arith.constant 88 : index
    %114 = vector.load %arg2[%c0_113, %c88] : memref<8x216xbf16, #tpu.memory_space<vmem>>, vector<8x8xbf16>
    %c0_114 = arith.constant 0 : index
    %c0_115 = arith.constant 0 : index
    %c0_116 = arith.constant 0 : index
    %115 = vector.load %arg3[%c0_114, %c0_115, %c0_116] : memref<1x8x1000xf32, #tpu.memory_space<vmem>>, vector<1x8x1000xf32>
    %116 = vector.shape_cast %115 : vector<1x8x1000xf32> to vector<8x1000xf32>
    %c0_117 = arith.constant 0 : index
    %c0_118 = arith.constant 0 : index
    %c191 = arith.constant 191 : index
    %117 = vector.load %arg1[%c0_117, %c0_118, %c191] : memref<1x8x1400xbf16, #tpu.memory_space<vmem>>, vector<1x8x1000xbf16>
    %118 = vector.shape_cast %117 : vector<1x8x1000xbf16> to vector<8x1000xbf16>
    %cst_119 = arith.constant dense<0.000000e+00> : vector<8x1000xf32>
    %119 = tpu.matmul %114, %118, %cst_119 {dimension_numbers = #tpu.dot_dimension_numbers<[1], [0], [0], [1], [0, 0, 1, 1], [], []>} : vector<8x8xbf16>, vector<8x1000xbf16>, vector<8x1000xf32> -> vector<8x1000xf32>
    %120 = arith.addf %116, %119 : vector<8x1000xf32>
    %c0_120 = arith.constant 0 : index
    %c0_121 = arith.constant 0 : index
    %c0_122 = arith.constant 0 : index
    %121 = vector.load %arg3[%c0_120, %c0_121, %c0_122] : memref<1x8x1000xf32, #tpu.memory_space<vmem>>, vector<1x8x1000xf32>
    %122 = vector.shape_cast %121 : vector<1x8x1000xf32> to vector<8x1000xf32>
    %123 = vector.shape_cast %120 : vector<8x1000xf32> to vector<1x8x1000xf32>
    tpu.vector_store %arg3[%c0_120, %c0_121, %c0_122], %123 {strides = array<i32>} : memref<1x8x1000xf32, #tpu.memory_space<vmem>>, vector<1x8x1000xf32>,
    %c0_123 = arith.constant 0 : index
    %c96 = arith.constant 96 : index
    %124 = vector.load %arg2[%c0_123, %c96] : memref<8x216xbf16, #tpu.memory_space<vmem>>, vector<8x8xbf16>
    %c0_124 = arith.constant 0 : index
    %c0_125 = arith.constant 0 : index
    %c0_126 = arith.constant 0 : index
    %125 = vector.load %arg3[%c0_124, %c0_125, %c0_126] : memref<1x8x1000xf32, #tpu.memory_space<vmem>>, vector<1x8x1000xf32>
    %126 = vector.shape_cast %125 : vector<1x8x1000xf32> to vector<8x1000xf32>
    %c0_127 = arith.constant 0 : index
    %c0_128 = arith.constant 0 : index
    %c199 = arith.constant 199 : index
    %127 = vector.load %arg1[%c0_127, %c0_128, %c199] : memref<1x8x1400xbf16, #tpu.memory_space<vmem>>, vector<1x8x1000xbf16>
    %128 = vector.shape_cast %127 : vector<1x8x1000xbf16> to vector<8x1000xbf16>
    %cst_129 = arith.constant dense<0.000000e+00> : vector<8x1000xf32>
    %129 = tpu.matmul %124, %128, %cst_129 {dimension_numbers = #tpu.dot_dimension_numbers<[1], [0], [0], [1], [0, 0, 1, 1], [], []>} : vector<8x8xbf16>, vector<8x1000xbf16>, vector<8x1000xf32> -> vector<8x1000xf32>
    %130 = arith.addf %126, %129 : vector<8x1000xf32>
    %c0_130 = arith.constant 0 : index
    %c0_131 = arith.constant 0 : index
    %c0_132 = arith.constant 0 : index
    %131 = vector.load %arg3[%c0_130, %c0_131, %c0_132] : memref<1x8x1000xf32, #tpu.memory_space<vmem>>, vector<1x8x1000xf32>
    %132 = vector.shape_cast %131 : vector<1x8x1000xf32> to vector<8x1000xf32>
    %133 = vector.shape_cast %130 : vector<8x1000xf32> to vector<1x8x1000xf32>
    tpu.vector_store %arg3[%c0_130, %c0_131, %c0_132], %133 {strides = array<i32>} : memref<1x8x1000xf32, #tpu.memory_space<vmem>>, vector<1x8x1000xf32>,
    %c0_133 = arith.constant 0 : index
    %c104 = arith.constant 104 : index
    %134 = vector.load %arg2[%c0_133, %c104] : memref<8x216xbf16, #tpu.memory_space<vmem>>, vector<8x8xbf16>
    %c0_134 = arith.constant 0 : index
    %c0_135 = arith.constant 0 : index
    %c0_136 = arith.constant 0 : index
    %135 = vector.load %arg3[%c0_134, %c0_135, %c0_136] : memref<1x8x1000xf32, #tpu.memory_space<vmem>>, vector<1x8x1000xf32>
    %136 = vector.shape_cast %135 : vector<1x8x1000xf32> to vector<8x1000xf32>
    %c0_137 = arith.constant 0 : index
    %c0_138 = arith.constant 0 : index
    %c200 = arith.constant 200 : index
    %137 = vector.load %arg1[%c0_137, %c0_138, %c200] : memref<1x8x1400xbf16, #tpu.memory_space<vmem>>, vector<1x8x1000xbf16>
    %138 = vector.shape_cast %137 : vector<1x8x1000xbf16> to vector<8x1000xbf16>
    %cst_139 = arith.constant dense<0.000000e+00> : vector<8x1000xf32>
    %139 = tpu.matmul %134, %138, %cst_139 {dimension_numbers = #tpu.dot_dimension_numbers<[1], [0], [0], [1], [0, 0, 1, 1], [], []>} : vector<8x8xbf16>, vector<8x1000xbf16>, vector<8x1000xf32> -> vector<8x1000xf32>
    %140 = arith.addf %136, %139 : vector<8x1000xf32>
    %c0_140 = arith.constant 0 : index
    %c0_141 = arith.constant 0 : index
    %c0_142 = arith.constant 0 : index
    %141 = vector.load %arg3[%c0_140, %c0_141, %c0_142] : memref<1x8x1000xf32, #tpu.memory_space<vmem>>, vector<1x8x1000xf32>
    %142 = vector.shape_cast %141 : vector<1x8x1000xf32> to vector<8x1000xf32>
    %143 = vector.shape_cast %140 : vector<8x1000xf32> to vector<1x8x1000xf32>
    tpu.vector_store %arg3[%c0_140, %c0_141, %c0_142], %143 {strides = array<i32>} : memref<1x8x1000xf32, #tpu.memory_space<vmem>>, vector<1x8x1000xf32>,
    %c0_143 = arith.constant 0 : index
    %c112 = arith.constant 112 : index
    %144 = vector.load %arg2[%c0_143, %c112] : memref<8x216xbf16, #tpu.memory_space<vmem>>, vector<8x8xbf16>
    %c0_144 = arith.constant 0 : index
    %c0_145 = arith.constant 0 : index
    %c0_146 = arith.constant 0 : index
    %145 = vector.load %arg3[%c0_144, %c0_145, %c0_146] : memref<1x8x1000xf32, #tpu.memory_space<vmem>>, vector<1x8x1000xf32>
    %146 = vector.shape_cast %145 : vector<1x8x1000xf32> to vector<8x1000xf32>
    %c0_147 = arith.constant 0 : index
    %c0_148 = arith.constant 0 : index
    %c201 = arith.constant 201 : index
    %147 = vector.load %arg1[%c0_147, %c0_148, %c201] : memref<1x8x1400xbf16, #tpu.memory_space<vmem>>, vector<1x8x1000xbf16>
    %148 = vector.shape_cast %147 : vector<1x8x1000xbf16> to vector<8x1000xbf16>
    %cst_149 = arith.constant dense<0.000000e+00> : vector<8x1000xf32>
    %149 = tpu.matmul %144, %148, %cst_149 {dimension_numbers = #tpu.dot_dimension_numbers<[1], [0], [0], [1], [0, 0, 1, 1], [], []>} : vector<8x8xbf16>, vector<8x1000xbf16>, vector<8x1000xf32> -> vector<8x1000xf32>
    %150 = arith.addf %146, %149 : vector<8x1000xf32>
    %c0_150 = arith.constant 0 : index
    %c0_151 = arith.constant 0 : index
    %c0_152 = arith.constant 0 : index
    %151 = vector.load %arg3[%c0_150, %c0_151, %c0_152] : memref<1x8x1000xf32, #tpu.memory_space<vmem>>, vector<1x8x1000xf32>
    %152 = vector.shape_cast %151 : vector<1x8x1000xf32> to vector<8x1000xf32>
    %153 = vector.shape_cast %150 : vector<8x1000xf32> to vector<1x8x1000xf32>
    tpu.vector_store %arg3[%c0_150, %c0_151, %c0_152], %153 {strides = array<i32>} : memref<1x8x1000xf32, #tpu.memory_space<vmem>>, vector<1x8x1000xf32>,
    %c0_153 = arith.constant 0 : index
    %c120 = arith.constant 120 : index
    %154 = vector.load %arg2[%c0_153, %c120] : memref<8x216xbf16, #tpu.memory_space<vmem>>, vector<8x8xbf16>
    %c0_154 = arith.constant 0 : index
    %c0_155 = arith.constant 0 : index
    %c0_156 = arith.constant 0 : index
    %155 = vector.load %arg3[%c0_154, %c0_155, %c0_156] : memref<1x8x1000xf32, #tpu.memory_space<vmem>>, vector<1x8x1000xf32>
    %156 = vector.shape_cast %155 : vector<1x8x1000xf32> to vector<8x1000xf32>
    %c0_157 = arith.constant 0 : index
    %c0_158 = arith.constant 0 : index
    %c209 = arith.constant 209 : index
    %157 = vector.load %arg1[%c0_157, %c0_158, %c209] : memref<1x8x1400xbf16, #tpu.memory_space<vmem>>, vector<1x8x1000xbf16>
    %158 = vector.shape_cast %157 : vector<1x8x1000xbf16> to vector<8x1000xbf16>
    %cst_159 = arith.constant dense<0.000000e+00> : vector<8x1000xf32>
    %159 = tpu.matmul %154, %158, %cst_159 {dimension_numbers = #tpu.dot_dimension_numbers<[1], [0], [0], [1], [0, 0, 1, 1], [], []>} : vector<8x8xbf16>, vector<8x1000xbf16>, vector<8x1000xf32> -> vector<8x1000xf32>
    %160 = arith.addf %156, %159 : vector<8x1000xf32>
    %c0_160 = arith.constant 0 : index
    %c0_161 = arith.constant 0 : index
    %c0_162 = arith.constant 0 : index
    %161 = vector.load %arg3[%c0_160, %c0_161, %c0_162] : memref<1x8x1000xf32, #tpu.memory_space<vmem>>, vector<1x8x1000xf32>
    %162 = vector.shape_cast %161 : vector<1x8x1000xf32> to vector<8x1000xf32>
    %163 = vector.shape_cast %160 : vector<8x1000xf32> to vector<1x8x1000xf32>
    tpu.vector_store %arg3[%c0_160, %c0_161, %c0_162], %163 {strides = array<i32>} : memref<1x8x1000xf32, #tpu.memory_space<vmem>>, vector<1x8x1000xf32>,
    %c0_163 = arith.constant 0 : index
    %c128 = arith.constant 128 : index
    %164 = vector.load %arg2[%c0_163, %c128] : memref<8x216xbf16, #tpu.memory_space<vmem>>, vector<8x8xbf16>
    %c0_164 = arith.constant 0 : index
    %c0_165 = arith.constant 0 : index
    %c0_166 = arith.constant 0 : index
    %165 = vector.load %arg3[%c0_164, %c0_165, %c0_166] : memref<1x8x1000xf32, #tpu.memory_space<vmem>>, vector<1x8x1000xf32>
    %166 = vector.shape_cast %165 : vector<1x8x1000xf32> to vector<8x1000xf32>
    %c0_167 = arith.constant 0 : index
    %c0_168 = arith.constant 0 : index
    %c210 = arith.constant 210 : index
    %167 = vector.load %arg1[%c0_167, %c0_168, %c210] : memref<1x8x1400xbf16, #tpu.memory_space<vmem>>, vector<1x8x1000xbf16>
    %168 = vector.shape_cast %167 : vector<1x8x1000xbf16> to vector<8x1000xbf16>
    %cst_169 = arith.constant dense<0.000000e+00> : vector<8x1000xf32>
    %169 = tpu.matmul %164, %168, %cst_169 {dimension_numbers = #tpu.dot_dimension_numbers<[1], [0], [0], [1], [0, 0, 1, 1], [], []>} : vector<8x8xbf16>, vector<8x1000xbf16>, vector<8x1000xf32> -> vector<8x1000xf32>
    %170 = arith.addf %166, %169 : vector<8x1000xf32>
    %c0_170 = arith.constant 0 : index
    %c0_171 = arith.constant 0 : index
    %c0_172 = arith.constant 0 : index
    %171 = vector.load %arg3[%c0_170, %c0_171, %c0_172] : memref<1x8x1000xf32, #tpu.memory_space<vmem>>, vector<1x8x1000xf32>
    %172 = vector.shape_cast %171 : vector<1x8x1000xf32> to vector<8x1000xf32>
    %173 = vector.shape_cast %170 : vector<8x1000xf32> to vector<1x8x1000xf32>
    tpu.vector_store %arg3[%c0_170, %c0_171, %c0_172], %173 {strides = array<i32>} : memref<1x8x1000xf32, #tpu.memory_space<vmem>>, vector<1x8x1000xf32>,
    %c0_173 = arith.constant 0 : index
    %c136 = arith.constant 136 : index
    %174 = vector.load %arg2[%c0_173, %c136] : memref<8x216xbf16, #tpu.memory_space<vmem>>, vector<8x8xbf16>
    %c0_174 = arith.constant 0 : index
    %c0_175 = arith.constant 0 : index
    %c0_176 = arith.constant 0 : index
    %175 = vector.load %arg3[%c0_174, %c0_175, %c0_176] : memref<1x8x1000xf32, #tpu.memory_space<vmem>>, vector<1x8x1000xf32>
    %176 = vector.shape_cast %175 : vector<1x8x1000xf32> to vector<8x1000xf32>
    %c0_177 = arith.constant 0 : index
    %c0_178 = arith.constant 0 : index
    %c211 = arith.constant 211 : index
    %177 = vector.load %arg1[%c0_177, %c0_178, %c211] : memref<1x8x1400xbf16, #tpu.memory_space<vmem>>, vector<1x8x1000xbf16>
    %178 = vector.shape_cast %177 : vector<1x8x1000xbf16> to vector<8x1000xbf16>
    %cst_179 = arith.constant dense<0.000000e+00> : vector<8x1000xf32>
    %179 = tpu.matmul %174, %178, %cst_179 {dimension_numbers = #tpu.dot_dimension_numbers<[1], [0], [0], [1], [0, 0, 1, 1], [], []>} : vector<8x8xbf16>, vector<8x1000xbf16>, vector<8x1000xf32> -> vector<8x1000xf32>
    %180 = arith.addf %176, %179 : vector<8x1000xf32>
    %c0_180 = arith.constant 0 : index
    %c0_181 = arith.constant 0 : index
    %c0_182 = arith.constant 0 : index
    %181 = vector.load %arg3[%c0_180, %c0_181, %c0_182] : memref<1x8x1000xf32, #tpu.memory_space<vmem>>, vector<1x8x1000xf32>
    %182 = vector.shape_cast %181 : vector<1x8x1000xf32> to vector<8x1000xf32>
    %183 = vector.shape_cast %180 : vector<8x1000xf32> to vector<1x8x1000xf32>
    tpu.vector_store %arg3[%c0_180, %c0_181, %c0_182], %183 {strides = array<i32>} : memref<1x8x1000xf32, #tpu.memory_space<vmem>>, vector<1x8x1000xf32>,
    %c0_183 = arith.constant 0 : index
    %c144 = arith.constant 144 : index
    %184 = vector.load %arg2[%c0_183, %c144] : memref<8x216xbf16, #tpu.memory_space<vmem>>, vector<8x8xbf16>
    %c0_184 = arith.constant 0 : index
    %c0_185 = arith.constant 0 : index
    %c0_186 = arith.constant 0 : index
    %185 = vector.load %arg3[%c0_184, %c0_185, %c0_186] : memref<1x8x1000xf32, #tpu.memory_space<vmem>>, vector<1x8x1000xf32>
    %186 = vector.shape_cast %185 : vector<1x8x1000xf32> to vector<8x1000xf32>
    %c0_187 = arith.constant 0 : index
    %c0_188 = arith.constant 0 : index
    %c289 = arith.constant 289 : index
    %187 = vector.load %arg1[%c0_187, %c0_188, %c289] : memref<1x8x1400xbf16, #tpu.memory_space<vmem>>, vector<1x8x1000xbf16>
    %188 = vector.shape_cast %187 : vector<1x8x1000xbf16> to vector<8x1000xbf16>
    %cst_189 = arith.constant dense<0.000000e+00> : vector<8x1000xf32>
    %189 = tpu.matmul %184, %188, %cst_189 {dimension_numbers = #tpu.dot_dimension_numbers<[1], [0], [0], [1], [0, 0, 1, 1], [], []>} : vector<8x8xbf16>, vector<8x1000xbf16>, vector<8x1000xf32> -> vector<8x1000xf32>
    %190 = arith.addf %186, %189 : vector<8x1000xf32>
    %c0_190 = arith.constant 0 : index
    %c0_191 = arith.constant 0 : index
    %c0_192 = arith.constant 0 : index
    %191 = vector.load %arg3[%c0_190, %c0_191, %c0_192] : memref<1x8x1000xf32, #tpu.memory_space<vmem>>, vector<1x8x1000xf32>
    %192 = vector.shape_cast %191 : vector<1x8x1000xf32> to vector<8x1000xf32>
    %193 = vector.shape_cast %190 : vector<8x1000xf32> to vector<1x8x1000xf32>
    tpu.vector_store %arg3[%c0_190, %c0_191, %c0_192], %193 {strides = array<i32>} : memref<1x8x1000xf32, #tpu.memory_space<vmem>>, vector<1x8x1000xf32>,
    %c0_193 = arith.constant 0 : index
    %c152 = arith.constant 152 : index
    %194 = vector.load %arg2[%c0_193, %c152] : memref<8x216xbf16, #tpu.memory_space<vmem>>, vector<8x8xbf16>
    %c0_194 = arith.constant 0 : index
    %c0_195 = arith.constant 0 : index
    %c0_196 = arith.constant 0 : index
    %195 = vector.load %arg3[%c0_194, %c0_195, %c0_196] : memref<1x8x1000xf32, #tpu.memory_space<vmem>>, vector<1x8x1000xf32>
    %196 = vector.shape_cast %195 : vector<1x8x1000xf32> to vector<8x1000xf32>
    %c0_197 = arith.constant 0 : index
    %c0_198 = arith.constant 0 : index
    %c290 = arith.constant 290 : index
    %197 = vector.load %arg1[%c0_197, %c0_198, %c290] : memref<1x8x1400xbf16, #tpu.memory_space<vmem>>, vector<1x8x1000xbf16>
    %198 = vector.shape_cast %197 : vector<1x8x1000xbf16> to vector<8x1000xbf16>
    %cst_199 = arith.constant dense<0.000000e+00> : vector<8x1000xf32>
    %199 = tpu.matmul %194, %198, %cst_199 {dimension_numbers = #tpu.dot_dimension_numbers<[1], [0], [0], [1], [0, 0, 1, 1], [], []>} : vector<8x8xbf16>, vector<8x1000xbf16>, vector<8x1000xf32> -> vector<8x1000xf32>
    %200 = arith.addf %196, %199 : vector<8x1000xf32>
    %c0_200 = arith.constant 0 : index
    %c0_201 = arith.constant 0 : index
    %c0_202 = arith.constant 0 : index
    %201 = vector.load %arg3[%c0_200, %c0_201, %c0_202] : memref<1x8x1000xf32, #tpu.memory_space<vmem>>, vector<1x8x1000xf32>
    %202 = vector.shape_cast %201 : vector<1x8x1000xf32> to vector<8x1000xf32>
    %203 = vector.shape_cast %200 : vector<8x1000xf32> to vector<1x8x1000xf32>
    tpu.vector_store %arg3[%c0_200, %c0_201, %c0_202], %203 {strides = array<i32>} : memref<1x8x1000xf32, #tpu.memory_space<vmem>>, vector<1x8x1000xf32>,
    %c0_203 = arith.constant 0 : index
    %c160 = arith.constant 160 : index
    %204 = vector.load %arg2[%c0_203, %c160] : memref<8x216xbf16, #tpu.memory_space<vmem>>, vector<8x8xbf16>
    %c0_204 = arith.constant 0 : index
    %c0_205 = arith.constant 0 : index
    %c0_206 = arith.constant 0 : index
    %205 = vector.load %arg3[%c0_204, %c0_205, %c0_206] : memref<1x8x1000xf32, #tpu.memory_space<vmem>>, vector<1x8x1000xf32>
    %206 = vector.shape_cast %205 : vector<1x8x1000xf32> to vector<8x1000xf32>
    %c0_207 = arith.constant 0 : index
    %c0_208 = arith.constant 0 : index
    %c291 = arith.constant 291 : index
    %207 = vector.load %arg1[%c0_207, %c0_208, %c291] : memref<1x8x1400xbf16, #tpu.memory_space<vmem>>, vector<1x8x1000xbf16>
    %208 = vector.shape_cast %207 : vector<1x8x1000xbf16> to vector<8x1000xbf16>
    %cst_209 = arith.constant dense<0.000000e+00> : vector<8x1000xf32>
    %209 = tpu.matmul %204, %208, %cst_209 {dimension_numbers = #tpu.dot_dimension_numbers<[1], [0], [0], [1], [0, 0, 1, 1], [], []>} : vector<8x8xbf16>, vector<8x1000xbf16>, vector<8x1000xf32> -> vector<8x1000xf32>
    %210 = arith.addf %206, %209 : vector<8x1000xf32>
    %c0_210 = arith.constant 0 : index
    %c0_211 = arith.constant 0 : index
    %c0_212 = arith.constant 0 : index
    %211 = vector.load %arg3[%c0_210, %c0_211, %c0_212] : memref<1x8x1000xf32, #tpu.memory_space<vmem>>, vector<1x8x1000xf32>
    %212 = vector.shape_cast %211 : vector<1x8x1000xf32> to vector<8x1000xf32>
    %213 = vector.shape_cast %210 : vector<8x1000xf32> to vector<1x8x1000xf32>
    tpu.vector_store %arg3[%c0_210, %c0_211, %c0_212], %213 {strides = array<i32>} : memref<1x8x1000xf32, #tpu.memory_space<vmem>>, vector<1x8x1000xf32>,
    %c0_213 = arith.constant 0 : index
    %c168 = arith.constant 168 : index
    %214 = vector.load %arg2[%c0_213, %c168] : memref<8x216xbf16, #tpu.memory_space<vmem>>, vector<8x8xbf16>
    %c0_214 = arith.constant 0 : index
    %c0_215 = arith.constant 0 : index
    %c0_216 = arith.constant 0 : index
    %215 = vector.load %arg3[%c0_214, %c0_215, %c0_216] : memref<1x8x1000xf32, #tpu.memory_space<vmem>>, vector<1x8x1000xf32>
    %216 = vector.shape_cast %215 : vector<1x8x1000xf32> to vector<8x1000xf32>
    %c0_217 = arith.constant 0 : index
    %c0_218 = arith.constant 0 : index
    %c299 = arith.constant 299 : index
    %217 = vector.load %arg1[%c0_217, %c0_218, %c299] : memref<1x8x1400xbf16, #tpu.memory_space<vmem>>, vector<1x8x1000xbf16>
    %218 = vector.shape_cast %217 : vector<1x8x1000xbf16> to vector<8x1000xbf16>
    %cst_219 = arith.constant dense<0.000000e+00> : vector<8x1000xf32>
    %219 = tpu.matmul %214, %218, %cst_219 {dimension_numbers = #tpu.dot_dimension_numbers<[1], [0], [0], [1], [0, 0, 1, 1], [], []>} : vector<8x8xbf16>, vector<8x1000xbf16>, vector<8x1000xf32> -> vector<8x1000xf32>
    %220 = arith.addf %216, %219 : vector<8x1000xf32>
    %c0_220 = arith.constant 0 : index
    %c0_221 = arith.constant 0 : index
    %c0_222 = arith.constant 0 : index
    %221 = vector.load %arg3[%c0_220, %c0_221, %c0_222] : memref<1x8x1000xf32, #tpu.memory_space<vmem>>, vector<1x8x1000xf32>
    %222 = vector.shape_cast %221 : vector<1x8x1000xf32> to vector<8x1000xf32>
    %223 = vector.shape_cast %220 : vector<8x1000xf32> to vector<1x8x1000xf32>
    tpu.vector_store %arg3[%c0_220, %c0_221, %c0_222], %223 {strides = array<i32>} : memref<1x8x1000xf32, #tpu.memory_space<vmem>>, vector<1x8x1000xf32>,
    %c0_223 = arith.constant 0 : index
    %c176 = arith.constant 176 : index
    %224 = vector.load %arg2[%c0_223, %c176] : memref<8x216xbf16, #tpu.memory_space<vmem>>, vector<8x8xbf16>
    %c0_224 = arith.constant 0 : index
    %c0_225 = arith.constant 0 : index
    %c0_226 = arith.constant 0 : index
    %225 = vector.load %arg3[%c0_224, %c0_225, %c0_226] : memref<1x8x1000xf32, #tpu.memory_space<vmem>>, vector<1x8x1000xf32>
    %226 = vector.shape_cast %225 : vector<1x8x1000xf32> to vector<8x1000xf32>
    %c0_227 = arith.constant 0 : index
    %c0_228 = arith.constant 0 : index
    %c300 = arith.constant 300 : index
    %227 = vector.load %arg1[%c0_227, %c0_228, %c300] : memref<1x8x1400xbf16, #tpu.memory_space<vmem>>, vector<1x8x1000xbf16>
    %228 = vector.shape_cast %227 : vector<1x8x1000xbf16> to vector<8x1000xbf16>
    %cst_229 = arith.constant dense<0.000000e+00> : vector<8x1000xf32>
    %229 = tpu.matmul %224, %228, %cst_229 {dimension_numbers = #tpu.dot_dimension_numbers<[1], [0], [0], [1], [0, 0, 1, 1], [], []>} : vector<8x8xbf16>, vector<8x1000xbf16>, vector<8x1000xf32> -> vector<8x1000xf32>
    %230 = arith.addf %226, %229 : vector<8x1000xf32>
    %c0_230 = arith.constant 0 : index
    %c0_231 = arith.constant 0 : index
    %c0_232 = arith.constant 0 : index
    %231 = vector.load %arg3[%c0_230, %c0_231, %c0_232] : memref<1x8x1000xf32, #tpu.memory_space<vmem>>, vector<1x8x1000xf32>
    %232 = vector.shape_cast %231 : vector<1x8x1000xf32> to vector<8x1000xf32>
    %233 = vector.shape_cast %230 : vector<8x1000xf32> to vector<1x8x1000xf32>
    tpu.vector_store %arg3[%c0_230, %c0_231, %c0_232], %233 {strides = array<i32>} : memref<1x8x1000xf32, #tpu.memory_space<vmem>>, vector<1x8x1000xf32>,
    %c0_233 = arith.constant 0 : index
    %c184 = arith.constant 184 : index
    %234 = vector.load %arg2[%c0_233, %c184] : memref<8x216xbf16, #tpu.memory_space<vmem>>, vector<8x8xbf16>
    %c0_234 = arith.constant 0 : index
    %c0_235 = arith.constant 0 : index
    %c0_236 = arith.constant 0 : index
    %235 = vector.load %arg3[%c0_234, %c0_235, %c0_236] : memref<1x8x1000xf32, #tpu.memory_space<vmem>>, vector<1x8x1000xf32>
    %236 = vector.shape_cast %235 : vector<1x8x1000xf32> to vector<8x1000xf32>
    %c0_237 = arith.constant 0 : index
    %c0_238 = arith.constant 0 : index
    %c301 = arith.constant 301 : index
    %237 = vector.load %arg1[%c0_237, %c0_238, %c301] : memref<1x8x1400xbf16, #tpu.memory_space<vmem>>, vector<1x8x1000xbf16>
    %238 = vector.shape_cast %237 : vector<1x8x1000xbf16> to vector<8x1000xbf16>
    %cst_239 = arith.constant dense<0.000000e+00> : vector<8x1000xf32>
    %239 = tpu.matmul %234, %238, %cst_239 {dimension_numbers = #tpu.dot_dimension_numbers<[1], [0], [0], [1], [0, 0, 1, 1], [], []>} : vector<8x8xbf16>, vector<8x1000xbf16>, vector<8x1000xf32> -> vector<8x1000xf32>
    %240 = arith.addf %236, %239 : vector<8x1000xf32>
    %c0_240 = arith.constant 0 : index
    %c0_241 = arith.constant 0 : index
    %c0_242 = arith.constant 0 : index
    %241 = vector.load %arg3[%c0_240, %c0_241, %c0_242] : memref<1x8x1000xf32, #tpu.memory_space<vmem>>, vector<1x8x1000xf32>
    %242 = vector.shape_cast %241 : vector<1x8x1000xf32> to vector<8x1000xf32>
    %243 = vector.shape_cast %240 : vector<8x1000xf32> to vector<1x8x1000xf32>
    tpu.vector_store %arg3[%c0_240, %c0_241, %c0_242], %243 {strides = array<i32>} : memref<1x8x1000xf32, #tpu.memory_space<vmem>>, vector<1x8x1000xf32>,
    %c0_243 = arith.constant 0 : index
    %c192 = arith.constant 192 : index
    %244 = vector.load %arg2[%c0_243, %c192] : memref<8x216xbf16, #tpu.memory_space<vmem>>, vector<8x8xbf16>
    %c0_244 = arith.constant 0 : index
    %c0_245 = arith.constant 0 : index
    %c0_246 = arith.constant 0 : index
    %245 = vector.load %arg3[%c0_244, %c0_245, %c0_246] : memref<1x8x1000xf32, #tpu.memory_space<vmem>>, vector<1x8x1000xf32>
    %246 = vector.shape_cast %245 : vector<1x8x1000xf32> to vector<8x1000xf32>
    %c0_247 = arith.constant 0 : index
    %c0_248 = arith.constant 0 : index
    %c309 = arith.constant 309 : index
    %247 = vector.load %arg1[%c0_247, %c0_248, %c309] : memref<1x8x1400xbf16, #tpu.memory_space<vmem>>, vector<1x8x1000xbf16>
    %248 = vector.shape_cast %247 : vector<1x8x1000xbf16> to vector<8x1000xbf16>
    %cst_249 = arith.constant dense<0.000000e+00> : vector<8x1000xf32>
    %249 = tpu.matmul %244, %248, %cst_249 {dimension_numbers = #tpu.dot_dimension_numbers<[1], [0], [0], [1], [0, 0, 1, 1], [], []>} : vector<8x8xbf16>, vector<8x1000xbf16>, vector<8x1000xf32> -> vector<8x1000xf32>
    %250 = arith.addf %246, %249 : vector<8x1000xf32>
    %c0_250 = arith.constant 0 : index
    %c0_251 = arith.constant 0 : index
    %c0_252 = arith.constant 0 : index
    %251 = vector.load %arg3[%c0_250, %c0_251, %c0_252] : memref<1x8x1000xf32, #tpu.memory_space<vmem>>, vector<1x8x1000xf32>
    %252 = vector.shape_cast %251 : vector<1x8x1000xf32> to vector<8x1000xf32>
    %253 = vector.shape_cast %250 : vector<8x1000xf32> to vector<1x8x1000xf32>
    tpu.vector_store %arg3[%c0_250, %c0_251, %c0_252], %253 {strides = array<i32>} : memref<1x8x1000xf32, #tpu.memory_space<vmem>>, vector<1x8x1000xf32>,
    %c0_253 = arith.constant 0 : index
    %c200_254 = arith.constant 200 : index
    %254 = vector.load %arg2[%c0_253, %c200_254] : memref<8x216xbf16, #tpu.memory_space<vmem>>, vector<8x8xbf16>
    %c0_255 = arith.constant 0 : index
    %c0_256 = arith.constant 0 : index
    %c0_257 = arith.constant 0 : index
    %255 = vector.load %arg3[%c0_255, %c0_256, %c0_257] : memref<1x8x1000xf32, #tpu.memory_space<vmem>>, vector<1x8x1000xf32>
    %256 = vector.shape_cast %255 : vector<1x8x1000xf32> to vector<8x1000xf32>
    %c0_258 = arith.constant 0 : index
    %c0_259 = arith.constant 0 : index
    %c310 = arith.constant 310 : index
    %257 = vector.load %arg1[%c0_258, %c0_259, %c310] : memref<1x8x1400xbf16, #tpu.memory_space<vmem>>, vector<1x8x1000xbf16>
    %258 = vector.shape_cast %257 : vector<1x8x1000xbf16> to vector<8x1000xbf16>
    %cst_260 = arith.constant dense<0.000000e+00> : vector<8x1000xf32>
    %259 = tpu.matmul %254, %258, %cst_260 {dimension_numbers = #tpu.dot_dimension_numbers<[1], [0], [0], [1], [0, 0, 1, 1], [], []>} : vector<8x8xbf16>, vector<8x1000xbf16>, vector<8x1000xf32> -> vector<8x1000xf32>
    %260 = arith.addf %256, %259 : vector<8x1000xf32>
    %c0_261 = arith.constant 0 : index
    %c0_262 = arith.constant 0 : index
    %c0_263 = arith.constant 0 : index
    %261 = vector.load %arg3[%c0_261, %c0_262, %c0_263] : memref<1x8x1000xf32, #tpu.memory_space<vmem>>, vector<1x8x1000xf32>
    %262 = vector.shape_cast %261 : vector<1x8x1000xf32> to vector<8x1000xf32>
    %263 = vector.shape_cast %260 : vector<8x1000xf32> to vector<1x8x1000xf32>
    tpu.vector_store %arg3[%c0_261, %c0_262, %c0_263], %263 {strides = array<i32>} : memref<1x8x1000xf32, #tpu.memory_space<vmem>>, vector<1x8x1000xf32>,
    %c0_264 = arith.constant 0 : index
    %c208 = arith.constant 208 : index
    %264 = vector.load %arg2[%c0_264, %c208] : memref<8x216xbf16, #tpu.memory_space<vmem>>, vector<8x8xbf16>
    %c0_265 = arith.constant 0 : index
    %c0_266 = arith.constant 0 : index
    %c0_267 = arith.constant 0 : index
    %265 = vector.load %arg3[%c0_265, %c0_266, %c0_267] : memref<1x8x1000xf32, #tpu.memory_space<vmem>>, vector<1x8x1000xf32>
    %266 = vector.shape_cast %265 : vector<1x8x1000xf32> to vector<8x1000xf32>
    %c0_268 = arith.constant 0 : index
    %c0_269 = arith.constant 0 : index
    %c311 = arith.constant 311 : index
    %267 = vector.load %arg1[%c0_268, %c0_269, %c311] : memref<1x8x1400xbf16, #tpu.memory_space<vmem>>, vector<1x8x1000xbf16>
    %268 = vector.shape_cast %267 : vector<1x8x1000xbf16> to vector<8x1000xbf16>
    %cst_270 = arith.constant dense<0.000000e+00> : vector<8x1000xf32>
    %269 = tpu.matmul %264, %268, %cst_270 {dimension_numbers = #tpu.dot_dimension_numbers<[1], [0], [0], [1], [0, 0, 1, 1], [], []>} : vector<8x8xbf16>, vector<8x1000xbf16>, vector<8x1000xf32> -> vector<8x1000xf32>
    %270 = arith.addf %266, %269 : vector<8x1000xf32>
    %c0_271 = arith.constant 0 : index
    %c0_272 = arith.constant 0 : index
    %c0_273 = arith.constant 0 : index
    %271 = vector.load %arg3[%c0_271, %c0_272, %c0_273] : memref<1x8x1000xf32, #tpu.memory_space<vmem>>, vector<1x8x1000xf32>
    %272 = vector.shape_cast %271 : vector<1x8x1000xf32> to vector<8x1000xf32>
    %273 = vector.shape_cast %270 : vector<8x1000xf32> to vector<1x8x1000xf32>
    tpu.vector_store %arg3[%c0_271, %c0_272, %c0_273], %273 {strides = array<i32>} : memref<1x8x1000xf32, #tpu.memory_space<vmem>>, vector<1x8x1000xf32>,
    return
  }
  func.func @transform_0(%arg0: i32) -> (i32, i32, i32) {
    %c0_i32 = arith.constant 0 : i32
    %c0_i32_0 = arith.constant 0 : i32
    %c0_i32_1 = arith.constant 0 : i32
    return %arg0, %c0_i32, %c0_i32_0 : i32, i32, i32
  }
  func.func @transform_1(%arg0: i32) -> (i32, i32) {
    %c0_i32 = arith.constant 0 : i32
    %c0_i32_0 = arith.constant 0 : i32
    %c0_i32_1 = arith.constant 0 : i32
    return %c0_i32, %c0_i32_0 : i32, i32
  }
  func.func @transform_2(%arg0: i32) -> (i32, i32, i32) {
    %c0_i32 = arith.constant 0 : i32
    %c0_i32_0 = arith.constant 0 : i32
    %c0_i32_1 = arith.constant 0 : i32
    return %arg0, %c0_i32, %c0_i32_0 : i32, i32, i32
  }
}

</mosaic_0001>

<bundles_post_ra>
// kernel: tpu_custom_call.1
= control target key start
LH: loop header
LB: loop body
LE: loop exit
PB: predicated region body
PF: predicated region fallthrough
CT: control target
= control target key end

     0   :  { %7 = vsyncpa [#allocation3], 0  ;;  %s9107_s0 = inlined_call_operand.hbm [shape: bf16[2,8,1400], index: 0, kind: input, shape index: {}]   ;;  %s9108_s1 = inlined_call_operand.hbm [shape: bf16[8,216], index: 1, kind: input, shape index: {}]   ;;  %s9109_s2 = inlined_call_operand.hbm [shape: f32[2,8,1000], index: 2, kind: output, shape index: {}]  }
   0x1   :  { %9 = vsyncpa [#allocation3 + $0x1], 0 }
   0x2   :  { %10 = vsyncpa [#allocation6], 0 }
   0x3   :  { %11 = vsyncpa [#allocation4], 0 }
   0x4   :  { %13 = vsyncpa [#allocation4 + $0x1], 0  ;;  %s6630_s9 = smov 0   ;;  %s6632_s10 = smov 0  }
   0x5   :  { %s6634_s11 = smov 0   ;;  %s6636_s12 = smov 0  }
   0x6 LB: > { %s6651_s13 = sadd.s32 4294967295, %s6570_s12   ;;  %s6108_s14 = sadd.s32 4294967294, %s6570_s12   ;;  %s6570_s12 = sphi %s6636_s12, %s9119_s12   ;;  %s6566_s11 = sphi %s6634_s11, %s9118_s11   ;;  %s6562_s10 = sphi %s6632_s10, %s9117_s10   ;;  %s6558_s9 = sphi %s6630_s9, %s9116_s9  }
   0x7   : > { %p39_p0 = scmp.ne.s32.totalorder %s6562_s10, %s6558_s9  ;;  %p40_p1 = scmp.eq.s32.totalorder %s6651_s13, 0 }
   0x8   : > { %p84_p2 = scmp.eq.s32.totalorder %s6651_s13, 1  ;;  %p90_p3 = scmp.eq.s32.totalorder %s6108_s14, 1 }
   0x9   : > { %p6660_p4 = por %p40_p1, %p39_p0  ;;  %p6109_p5 = scmp.ge.s32.totalorder %s6570_s12, 1 }
   0xa   : > { %p6665_p6 = por %p90_p3, %p39_p0  ;;  %p97_p7 = scmp.lt.s32.totalorder %s6570_s12, 3 }
   0xb   : > { %s109_s19 = sshll.u32 %s9108_s1, 4  ;;  %s6572_s21 = smov [#allocation5]   ;;  %s110_s19 = int_to_ptr.hbm [resolvable:$true] %s109_s19 }
   0xc   : > { %p6673_p8 = pnand %p6109_p5, %p97_p7  ;;  %s111_s22 = sshll.u32 %s6572_s21, 4  ;;  %s112_s22 = int_to_ptr.vmem [resolvable:$true] %s111_s22 }
   0xd   : > { %s6683_s23 = sadd.s32 1, %s6570_s12   ;;  %s26_s24 = sadd.s32 1, %s6566_s11 }
   0xe   : > { %p6349_p10 = pneg %p6673_p8  ;;  %s23_s25 = ssub.s32 %s6570_s12, %s6683_s23 }
   0xf   : > { %p24_p12 = scmp.eq.s32.totalorder %s23_s25, 0  ;;  %p33_p13 = scmp.ne.s32.totalorder %s6566_s11, %s6562_s10 }
  0x10   : > { %p6350_p11 = pnand %p6349_p10, %p40_p1  ;;  %p34_p0 = scmp.eq.s32.totalorder %s6570_s12, 0 }
  0x11   : > { %p6362_p3 = scmp.lt.s32.totalorder %s6570_s12, 2  ;;  %p6697_p7 = por %p84_p2, %p33_p13 }
  0x12   : > { %6352 = dma.hbm_to_vmem [thread:$0]  (!%p6350_p11), %s110_s19, 128, %s112_s22, [#allocation6]  }
  0x13   : > { %s6693_s26 = scalar_select %p24_p12, %s6566_s11, %s26_s24  }
  0x14   : > { %p35_p5 = por %p34_p0, %p33_p13  ;;  %s122_s28 = sand.u32 1, %s6566_s11  }
  0x15   : > { %s6339_s29 = smul.u32 44, %s6570_s12  ;;  %s123_s17 = scalar_lea.sflag [#allocation3], %s122_s28 }
  0x16   : > { %s6338_s30 = smul.u32 44, %s122_s28  ;;  %p6706_p10 = pnand %p6362_p3, %p35_p5 }
  0x17   : > { %s131_s5 = scalar_lea.hbm %s9107_s0, %s6339_s29  ;;  %s6477_s24 = scalar_lea.hbm %s9107_s0, 88 }
  0x18   : > { %s133_s7 = sshll.u32 %s131_s5, 4  ;;  %s126_s8 = scalar_lea.vmem [#allocation2], %s6338_s30  ;;  %s134_s7 = int_to_ptr.hbm [resolvable:$true] %s133_s7 }
  0x19   : > { %s135_s14 = sshll.u32 %s126_s8, 4  ;;  %s6470_s18 = sshra.s32 %s134_s7, 4  ;;  %s136_s14 = int_to_ptr.vmem [resolvable:$true] %s135_s14  ;;  %s6471_s18 = int_to_ptr.hbm [resolvable:$true] %s6470_s18 }
  0x1a   : > { %s6472_s19 = scalar_lea.hbm %s6471_s18, 44  ;;  %p6474_p11 = pneg %p6706_p10 }
  0x1b   : > { %p6473_p2 = scmp.ne.s32.totalorder %s6471_s18, %s6472_s19  ;;  %p6478_p0 = scmp.lt.s32.totalorder %s6471_s18, %s9107_s0 }
  0x1c   : > { %p6479_p3 = scmp.lt.s32.totalorder %s6477_s24, %s6472_s19 }
  0x1d   : > { %p6475_p12 = pnand %p6474_p11, %p6473_p2 }
  0x1e   : > { %p6480_p5 = por %p6479_p3, %p6478_p0 }
  0x1f   : > { %p6476_p13 = pneg %p6475_p12 }
  0x21   : > { %p6481_p9 = pnand %p6480_p5, %p6476_p13 }
  0x23   : > { %6484 = shalt.err (!%p6481_p9)
}
  0x24   : > { %6356 = dma.hbm_to_vmem [thread:$0]  (!%p6706_p10), %s134_s7, 704, %s136_s14, %s123_s17  }
  0x25   : > { %144 = sbr.rel (%p6673_p8) target bundleno = 1168 (0x490), region = 28  ;;  %s6723_s28 = sand.u32 (!%p6673_p8), 1, %s6562_s10  }
  0x26   : > { %s6340_s30 = smul.u32 (!%p6673_p8), 44, %s6723_s28  ;;  %s147_s3 = scalar_lea.sflag (!%p6673_p8), [#allocation3], %s6723_s28 }
  0x28   : > { %s6727_s4 = scalar_lea.vmem (!%p6673_p8), [#allocation2], %s6340_s30 }
  0x2a   : > { %6545 = dma.done.wait (%p6660_p4), %s147_s3, 704  }
  0x2b   : > { %6547 = vsyncadd (%p6660_p4), %s147_s3, 4294966592 }
  0x2c   : > { %6549 = dma.done.wait (%p40_p1), [#allocation6], 128  }
  0x2d   : > { %6551 = vsyncadd (%p40_p1), [#allocation6], 4294967168  ;;  %v198_v0 = vld [vmem:[%s6727_s4 + $0x10] sm:$0xff]  ;;  %v197_v1 = vld [vmem:[%s6727_s4 + $0x8] sm:$0xff]  ;;  %s6573_s15 = smov 39   ;;  %s6574_s20 = smov 38  }
  0x2e   : > { %v210_v2 = vunpack.c.l.b16 %v198_v0  ;;  %v208_v3 = vunpack.c.l.b16 %v197_v1  ;;  %v196_v4 = vld [vmem:[%s6727_s4] sm:$0xff]  ;;  %v209_v9 = vunpack.c.h.b16 %v197_v1  ;;  %v199_v11 = vld [vmem:[%s6727_s4 + $0x18] sm:$0xff]  ;;  %v211_v19 = vunpack.c.h.b16 %v198_v0  ;;  %s6575_s5 = smov 120   ;;  %s6576_s6 = smov 37  }
  0x2f   : > { %v207_v5 = vunpack.c.h.b16 %v196_v4  ;;  %v206_v10 = vunpack.c.l.b16 %v196_v4  ;;  %v212_v12 = vunpack.c.l.b16 %v199_v11  ;;  %v200_v16 = vld [vmem:[%s6727_s4 + $0x20] sm:$0xf]  ;;  %v213_v17 = vunpack.c.h.b16 %v199_v11  ;;  %v400_v23 = vld [vmem:[#allocation5] sm:$0xf]  ;;  %s6577_s7 = smov 112   ;;  %s6578_s8 = smov 29  }
  0x30   : > { %v6740_v6 = vpack.c.b16 %v210_v2, %v210_v2  ;;  %v6742_v7 = vpack.c.b16 %v208_v3, %v208_v3  ;;  %v6750_v13 = vpack.c.b16 %v209_v9, %v209_v9  ;;  %v214_v18 = vunpack.c.l.b16 %v200_v16  ;;  %v413_v26 = vld [vmem:[%s6727_s4 + $0x20] sm:$0xf]  ;;  %v616_v29 = vld [vmem:[#allocation5] sm:$0xf]  ;;  %s6579_s14 = smov 104   ;;  %s6580_s17 = smov 28  }
  0x31   : > { %v6744_v8 = vpack.c.b16 %v207_v5, %v207_v5  ;;  %v6752_v14 = vpack.c.b16 %v206_v10, %v206_v10  ;;  %v6754_v15 = vpack.c.b16 %v212_v12, %v212_v12  ;;  %v6760_v20 = vpack.c.b16 %v213_v17, %v213_v17  ;;  %v629_v32 = vld [vmem:[%s6727_s4 + $0x20] sm:$0xf]  ;;  %v832_v35 = vld [vmem:[#allocation5] sm:$0xf]  ;;  %s6581_s18 = smov 96   ;;  %s6582_s19 = smov 27  }
  0x32   : > { %232 = vrot.lane.b32.xlu1 %v6740_v6, %s6573_s15  ;;  %228 = vrot.lane.b32.xlu0 %v6742_v7, %s6573_s15  ;;  %v223_v21 = vpack.c.b16 %v214_v18, %v214_v18  ;;  %v6762_v22 = vpack.c.b16 %v211_v19, %v211_v19  ;;  %v415_v24 = vunpack.c.l.b16 %v400_v23  ;;  %v432_v27 = vunpack.c.l.b16 %v413_v26  ;;  %v845_v38 = vld [vmem:[%s6727_s4 + $0x20] sm:$0xf]  ;;  %v1048_v43 = vld [vmem:[#allocation5] sm:$0xf]  ;;  %s6583_s21 = smov 88   ;;  %s6584_s22 = smov 19  }
  0x33   : > { %226 = vrot.lane.b32.xlu2 %v6744_v8, %s6573_s15  ;;  %v631_v30 = vunpack.c.l.b16 %v616_v29  ;;  %v648_v33 = vunpack.c.l.b16 %v629_v32  ;;  %v847_v36 = vunpack.c.l.b16 %v832_v35  ;;  %v864_v39 = vunpack.c.l.b16 %v845_v38  ;;  %v6813_v54 = vld [vmem:[#allocation5] sm:$0xf]  ;;  %v1061_v62 = vld [vmem:[%s6727_s4 + $0x20] sm:$0xf]  ;;  %s6585_s24 = smov 80   ;;  %s6586_s25 = smov 18  }
  0x34   : > { %v416_v25 = vpack.c.b16 %v415_v24, %v415_v24  ;;  %v441_v28 = vpack.c.b16 %v432_v27, %v432_v27  ;;  %v1063_v44 = vunpack.c.l.b16 %v1048_v43  ;;  %vm242_vm0 = vcmask 318464   ;;  %v1264_v5 = vld [vmem:[#allocation5] sm:$0xf]  ;;  %v1277_v32 = vld [vmem:[%s6727_s4 + $0x20] sm:$0xf]  ;;  %s6587_s29 = smov 72  }
  0x35   : > { %v632_v31 = vpack.c.b16 %v631_v30, %v631_v30  ;;  %v657_v34 = vpack.c.b16 %v648_v33, %v648_v33  ;;  %v848_v37 = vpack.c.b16 %v847_v36, %v847_v36  ;;  %v873_v41 = vpack.c.b16 %v864_v39, %v864_v39  ;;  %s6588_s30 = smov 17   ;;  %s6589_s3 = smov 64  }
  0x36   : > { %v1064_v46 = vpack.c.b16 %v1063_v44, %v1063_v44  ;;  %vm255_vm1 = vcmask 1043456   ;;  %vm251_vm2 = vcmask 64512   ;;  %v1080_v2 = vunpack.c.l.b16 %v1061_v62 }
  0x37   : > { %v1279_v11 = vunpack.c.l.b16 %v1264_v5  ;;  %vm460_vm3 = vcmask 310272   ;;  %v1296_v33 = vunpack.c.l.b16 %v1277_v32  ;;  %vm676_vm4 = vcmask 302080  }
  0x38   : > { %v1089_v4 = vpack.c.b16 %v1080_v2, %v1080_v2  ;;  %vm892_vm5 = vcmask 236544   ;;  %vm1108_vm6 = vcmask 228352   ;;  %vm185_vm7 = vcmask 850944  }
  0x39   : > { %v1305_v39 = vpack.c.b16 %v1296_v33, %v1296_v33  ;;  %vm1324_vm8 = vcmask 220160   ;;  %vm1540_vm9 = vcmask 154624   ;;  %vm1756_vm10 = vcmask 146432  }
  0x3a   : > { %230 = vrot.lane.b32.xlu0 %v6750_v13, %s6573_s15  ;;  %224 = vrot.lane.b32.xlu1 %v6752_v14, %s6573_s15  ;;  %vm1972_vm11 = vcmask 138240   ;;  %vm2188_vm12 = vcmask 547840   ;;  %vm2404_vm13 = vcmask 539648   ;;  %vm2620_vm14 = vcmask 531456  }
  0x3b   : > { %236 = vrot.lane.b32.xlu2 %v6754_v15, %s6573_s15  ;;  %vm2836_vm15 = vcmask 465920  }
  0x42   : > { %238 = vrot.lane.b32.xlu0 %v6760_v20, %s6573_s15  ;;  %240 = vrot.lane.b32.xlu1 %v223_v21, %s6573_s15  ;;  %v1280_v21 = vpack.c.b16 %v1279_v11, %v1279_v11 }
  0x43   : > { %234 = vrot.lane.b32.xlu2 %v6762_v22, %s6573_s15  ;;  %s6115_s15 = sshll.u32 %s6723_s28, 6 }
  0x4a   : > { %446 = vrot.lane.b32.xlu0 %v6742_v7, %s6574_s20  ;;  %448 = vrot.lane.b32.xlu1 %v6750_v13, %s6574_s20 }
  0x4b   : > { %450 = vrot.lane.b32.xlu2 %v6740_v6, %s6574_s20 }
  0x52   : > { %417 = vrot.lane.b32.xlu0 %v416_v25, %s6575_s5  ;;  %442 = vrot.lane.b32.xlu1 %v6752_v14, %s6574_s20 }
  0x53   : > { %444 = vrot.lane.b32.xlu2 %v6744_v8, %s6574_s20 }
  0x5a   : > { %454 = vrot.lane.b32.xlu0 %v6754_v15, %s6574_s20  ;;  %456 = vrot.lane.b32.xlu1 %v6760_v20, %s6574_s20 }
  0x5b   : > { %458 = vrot.lane.b32.xlu2 %v441_v28, %s6574_s20 }
  0x62   : > { %452 = vrot.lane.b32.xlu0 %v6762_v22, %s6574_s20  ;;  %662 = vrot.lane.b32.xlu1 %v6742_v7, %s6576_s6  ;;  %s7051_s20 = scalar_lea.vmem [#allocation7], %s6115_s15  ;;  %s6598_s15 = smov 32  }
  0x63   : > { %664 = vrot.lane.b32.xlu2 %v6750_v13, %s6576_s6 }
  0x6a   : > { %666 = vrot.lane.b32.xlu0 %v6740_v6, %s6576_s6  ;;  %633 = vrot.lane.b32.xlu1 %v632_v31, %s6577_s7 }
  0x6b   : > { %658 = vrot.lane.b32.xlu2 %v6752_v14, %s6576_s6 }
  0x72   : > { %660 = vrot.lane.b32.xlu0 %v6744_v8, %s6576_s6  ;;  %670 = vrot.lane.b32.xlu1 %v6754_v15, %s6576_s6 }
  0x73   : > { %672 = vrot.lane.b32.xlu2 %v6760_v20, %s6576_s6 }
  0x7a   : > { %674 = vrot.lane.b32.xlu0 %v657_v34, %s6576_s6  ;;  %668 = vrot.lane.b32.xlu1 %v6762_v22, %s6576_s6  ;;  %s6591_s6 = smov 67  }
  0x7b   : > { %878 = vrot.lane.b32.xlu2 %v6742_v7, %s6578_s8 }
  0x82   : > { %880 = vrot.lane.b32.xlu0 %v6750_v13, %s6578_s8  ;;  %882 = vrot.lane.b32.xlu1 %v6740_v6, %s6578_s8 }
  0x83   : > { %849 = vrot.lane.b32.xlu2 %v848_v37, %s6579_s14 }
  0x8a   : > { %874 = vrot.lane.b32.xlu0 %v6752_v14, %s6578_s8  ;;  %876 = vrot.lane.b32.xlu1 %v6744_v8, %s6578_s8 }
  0x8b   : > { %886 = vrot.lane.b32.xlu2 %v6754_v15, %s6578_s8 }
  0x8d   : > { %v227_v40 = vpop.permute.xlu2 %226 }
  0x92   : > { %888 = vrot.lane.b32.xlu0 %v6760_v20, %s6578_s8  ;;  %890 = vrot.lane.b32.xlu1 %v873_v41, %s6578_s8 }
  0x93   : > { %884 = vrot.lane.b32.xlu2 %v6762_v22, %s6578_s8  ;;  %s6592_s8 = smov 66  }
  0x95   : > { %v237_v42 = vpop.permute.xlu2 %236 }
  0x9a   : > { %1094 = vrot.lane.b32.xlu0 %v6742_v7, %s6580_s17  ;;  %1096 = vrot.lane.b32.xlu1 %v6750_v13, %s6580_s17 }
  0x9b   : > { %1098 = vrot.lane.b32.xlu2 %v6740_v6, %s6580_s17 }
  0x9d   : > { %v235_v45 = vpop.permute.xlu2 %234 }
  0x9e   : > { %v248_v47 = vsel %vm242_vm0, %v235_v45, %v237_v42 }
  0x9f   : > { %v272_v51 = vsel %vm255_vm1, %v248_v47, 0 }
  0xa2   : > { %1065 = vrot.lane.b32.xlu0 %v1064_v46, %s6581_s18  ;;  %1090 = vrot.lane.b32.xlu1 %v6752_v14, %s6580_s17 }
  0xa3   : > { %1092 = vrot.lane.b32.xlu2 %v6744_v8, %s6580_s17 }
  0xa4   : > { %v233_v48 = vpop.permute.xlu1 %232  ;;  %v229_v49 = vpop.permute.xlu0 %228 }
  0xa5   : > { %v244_v50 = vsel %vm242_vm0, %v227_v40, %v229_v49  ;;  %v6810_v52 = vpop.permute.xlu2 %450  ;;  %v247_v57 = vsel %vm242_vm0, %v233_v48, %v235_v45 }
  0xa6   : > { %v260_v53 = vsel %vm255_vm1, %v244_v50, 0  ;;  %v269_v3 = vsel %vm255_vm1, %v247_v57, 0 }
  0xa7   : > { %300 = vmatpush.bf16.msra.mxu1 %v260_v53 }
  0xaa   : > { %1102 = vrot.lane.b32.xlu0 %v6754_v15, %s6580_s17  ;;  %6117 = vmatmul.msk.bf16.vlgmr.msra.gmra.mxu1 %vm251_vm2, %v6813_v54 }
  0xab   : > { %352 = vmatpush.bf16.msrb.mxu1 %v272_v51  ;;  %1104 = vrot.lane.b32.xlu1 %v6760_v20, %s6580_s17 }
  0xac   : > { %v231_v55 = vpop.permute.xlu0 %230  ;;  %v225_v56 = vpop.permute.xlu1 %224  ;;  %1106 = vrot.lane.b32.xlu2 %v1089_v4, %s6580_s17 }
  0xad   : > { %v243_v58 = vsel %vm242_vm0, %v225_v56, %v227_v40  ;;  %v245_v59 = vsel %vm242_vm0, %v229_v49, %v231_v55  ;;  %v246_v60 = vsel %vm242_vm0, %v231_v55, %v233_v48  ;;  %v445_v61 = vpop.permute.xlu2 %444 }
  0xae   : > { %v257_v63 = vsel %vm255_vm1, %v243_v58, 0  ;;  %v263_v0 = vsel %vm255_vm1, %v245_v59, 0  ;;  %v266_v1 = vsel %vm255_vm1, %v246_v60, 0 }
  0xaf   : > { %287 = vmatpush.bf16.msra.mxu0 %v257_v63  ;;  %313 = vmatpush.bf16.msra.mxu2 %v263_v0 }
  0xb0   : > { %326 = vmatpush.bf16.msra.mxu3 %v266_v1 }
  0xb2   : > { %1100 = vrot.lane.b32.xlu0 %v6762_v22, %s6580_s17  ;;  %6116 = vmatmul.msk.bf16.vlgmr.msra.gmra.mxu0 %vm251_vm2, %v6813_v54  ;;  %s6593_s17 = smov 56  }
  0xb3   : > { %339 = vmatpush.bf16.msrb.mxu0 %v269_v3  ;;  %6118 = vmatmul.msk.bf16.vlgmr.msra.gmra.mxu2 %vm251_vm2, %v6813_v54 }
  0xb4   : > { %6119 = vmatmul.msk.bf16.vlgmr.msra.gmra.mxu3 %vm251_vm2, %v6813_v54  ;;  %v239_v9 = vpop.permute.xlu0 %238  ;;  %v241_v10 = vpop.permute.xlu1 %240  ;;  %1310 = vrot.lane.b32.xlu1 %v6742_v7, %s6582_s19 }
  0xb5   : > { %v249_v12 = vsel %vm242_vm0, %v237_v42, %v239_v9  ;;  %v250_v16 = vsel %vm242_vm0, %v239_v9, %v241_v10  ;;  %v459_v17 = vpop.permute.xlu2 %458  ;;  %1312 = vrot.lane.b32.xlu2 %v6750_v13, %s6582_s19  ;;  %vm3052_vm0 = vcmask 457728  }
  0xb6   : > { %v275_v18 = vsel %vm255_vm1, %v249_v12, 0  ;;  %v278_v19 = vsel %vm255_vm1, %v250_v16, 0 }
  0xb7   : > { %365 = vmatpush.bf16.msrb.mxu2 %v275_v18  ;;  %378 = vmatpush.bf16.msrb.mxu3 %v278_v19 }
  0xba   : > { %6121 = vmatmul.msk.bf16.vlgmr.msrb.gmra.mxu1 %vm251_vm2, %v6813_v54  ;;  %1314 = vrot.lane.b32.xlu0 %v6740_v6, %s6582_s19 }
  0xbc   : > { %v447_v23 = vpop.permute.xlu0 %446  ;;  %v449_v24 = vpop.permute.xlu1 %448  ;;  %1281 = vrot.lane.b32.xlu1 %v1280_v21, %s6583_s21 }
  0xbd   : > { %v463_v25 = vsel %vm460_vm3, %v447_v23, %v449_v24  ;;  %v464_v26 = vsel %vm460_vm3, %v449_v24, %v6810_v52  ;;  %v462_v27 = vsel %vm460_vm3, %v445_v61, %v447_v23  ;;  %v6856_v28 = vpop.permute.xlu2 %664  ;;  %1306 = vrot.lane.b32.xlu2 %v6752_v14, %s6582_s19 }
  0xbe   : > { %v476_v29 = vsel %vm255_vm1, %v462_v27, 0  ;;  %v479_v30 = vsel %vm255_vm1, %v463_v25, 0  ;;  %v482_v31 = vsel %vm255_vm1, %v464_v26, 0 }
  0xbf   : > { %516 = vmatpush.bf16.msra.mxu1 %v476_v29  ;;  %529 = vmatpush.bf16.msra.mxu2 %v479_v30 }
  0xc0   : > { %542 = vmatpush.bf16.msra.mxu3 %v482_v31 }
  0xc2   : > { %6120 = vmatmul.msk.bf16.vlgmr.msrb.gmra.mxu0 %vm251_vm2, %v6813_v54  ;;  %1308 = vrot.lane.b32.xlu0 %v6744_v8, %s6582_s19 }
  0xc3   : > { %6122 = vmatmul.msk.bf16.vlgmr.msrb.gmra.mxu2 %vm251_vm2, %v6813_v54 }
  0xc4   : > { %6123 = vmatmul.msk.bf16.vlgmr.msrb.gmra.mxu3 %vm251_vm2, %v6813_v54  ;;  %v418_v34 = vpop.permute.xlu0 %417  ;;  %v443_v35 = vpop.permute.xlu1 %442  ;;  %1318 = vrot.lane.b32.xlu1 %v6754_v15, %s6582_s19  ;;  %v1480_v54 = vld [vmem:[#allocation5] sm:$0xf] }
  0xc5   : > { %v461_v36 = vsel %vm460_vm3, %v443_v35, %v445_v61  ;;  %v6875_v37 = vpop.permute.xlu2 %658  ;;  %1320 = vrot.lane.b32.xlu2 %v6760_v20, %s6582_s19  ;;  %v1495_v58 = vunpack.c.l.b16 %v1480_v54 }
  0xc6   : > { %v473_v38 = vsel %vm255_vm1, %v461_v36, 0 }
  0xc7   : > { %503 = vmatpush.bf16.msra.mxu0 %v473_v38  ;;  %v1496_v59 = vpack.c.b16 %v1495_v58, %v1495_v58 }
  0xca   : > { %6125 = vmatmul.msk.bf16.vlgmr.msra.gmra.mxu1 %vm251_vm2, %v418_v34  ;;  %1322 = vrot.lane.b32.xlu0 %v1305_v39, %s6582_s19 }
  0xcc   : > { %v455_v40 = vpop.permute.xlu0 %454  ;;  %v457_v41 = vpop.permute.xlu1 %456  ;;  %1316 = vrot.lane.b32.xlu1 %v6762_v22, %s6582_s19  ;;  %s6594_s19 = smov 48  }
  0xcd   : > { %v467_v42 = vsel %vm460_vm3, %v455_v40, %v457_v41  ;;  %v468_v43 = vsel %vm460_vm3, %v457_v41, %v459_v17  ;;  %v6886_v44 = vpop.permute.xlu2 %672  ;;  %1526 = vrot.lane.b32.xlu2 %v6742_v7, %s6584_s22  ;;  %v1696_v17 = vld [vmem:[#allocation5] sm:$0xf] }
  0xce   : > { %v491_v45 = vsel %vm255_vm1, %v467_v42, 0  ;;  %v494_v46 = vsel %vm255_vm1, %v468_v43, 0  ;;  %v1711_v19 = vunpack.c.l.b16 %v1696_v17 }
  0xcf   : > { %581 = vmatpush.bf16.msrb.mxu2 %v491_v45  ;;  %594 = vmatpush.bf16.msrb.mxu3 %v494_v46 }
  0xd0   : > { %v1712_v30 = vpack.c.b16 %v1711_v19, %v1711_v19  ;;  %v1925_v19 = vld [vmem:[%s6727_s4 + $0x20] sm:$0xf] }
  0xd2   : > { %6124 = vmatmul.msk.bf16.vlgmr.msra.gmra.mxu0 %vm251_vm2, %v418_v34  ;;  %1528 = vrot.lane.b32.xlu0 %v6750_v13, %s6584_s22 }
  0xd3   : > { %6126 = vmatmul.msk.bf16.vlgmr.msra.gmra.mxu2 %vm251_vm2, %v418_v34 }
  0xd4   : > { %6127 = vmatmul.msk.bf16.vlgmr.msra.gmra.mxu3 %vm251_vm2, %v418_v34  ;;  %v453_v47 = vpop.permute.xlu0 %452  ;;  %v663_v48 = vpop.permute.xlu1 %662  ;;  %1530 = vrot.lane.b32.xlu1 %v6740_v6, %s6584_s22 }
  0xd5   : > { %v465_v49 = vsel %vm460_vm3, %v6810_v52, %v453_v47  ;;  %v466_v50 = vsel %vm460_vm3, %v453_v47, %v455_v40  ;;  %v679_v51 = vsel %vm676_vm4, %v663_v48, %v6856_v28  ;;  %v6904_v53 = vpop.permute.xlu2 %878  ;;  %v6910_v52 = vld [vmem:[%s6727_s4 + $0x20] sm:$0xff]   ;;  %1497 = vrot.lane.b32.xlu2 %v1496_v59, %s6585_s24  ;;  %vm3268_vm3 = vcmask 449536  }
  0xd6   : > { %v485_v55 = vsel %vm255_vm1, %v465_v49, 0  ;;  %v488_v56 = vsel %vm255_vm1, %v466_v50, 0  ;;  %v695_v57 = vsel %vm255_vm1, %v679_v51, 0  ;;  %v1512_v62 = vunpack.c.l.b16 %v6910_v52 }
  0xd7   : > { %555 = vmatpush.bf16.msrb.mxu0 %v485_v55  ;;  %568 = vmatpush.bf16.msrb.mxu1 %v488_v56 }
  0xd8   : > { %745 = vmatpush.bf16.msra.mxu2 %v695_v57  ;;  %v1521_v2 = vpack.c.b16 %v1512_v62, %v1512_v62 }
  0xda   : > { %6129 = vmatmul.msk.bf16.vlgmr.msrb.gmra.mxu1 %vm251_vm2, %v418_v34  ;;  %1522 = vrot.lane.b32.xlu0 %v6752_v14, %s6584_s22 }
  0xdc   : > { %v667_v60 = vpop.permute.xlu0 %666  ;;  %v6915_v61 = vpop.permute.xlu1 %633  ;;  %1524 = vrot.lane.b32.xlu1 %v6744_v8, %s6584_s22 }
  0xdd   : > { %v680_v63 = vsel %vm676_vm4, %v6856_v28, %v667_v60  ;;  %v6924_v1 = vpop.permute.xlu2 %849  ;;  %1534 = vrot.lane.b32.xlu2 %v6754_v15, %s6584_s22 }
  0xde   : > { %v698_v0 = vsel %vm255_vm1, %v680_v63, 0 }
  0xdf   : > { %758 = vmatpush.bf16.msra.mxu3 %v698_v0 }
  0xe2   : > { %6128 = vmatmul.msk.bf16.vlgmr.msrb.gmra.mxu0 %vm251_vm2, %v418_v34  ;;  %1536 = vrot.lane.b32.xlu0 %v6760_v20, %s6584_s22 }
  0xe3   : > { %6130 = vmatmul.msk.bf16.vlgmr.msrb.gmra.mxu2 %vm251_vm2, %v418_v34 }
  0xe4   : > { %6131 = vmatmul.msk.bf16.vlgmr.msrb.gmra.mxu3 %vm251_vm2, %v418_v34  ;;  %v661_v3 = vpop.permute.xlu0 %660  ;;  %v671_v4 = vpop.permute.xlu1 %670  ;;  %1538 = vrot.lane.b32.xlu1 %v1521_v2, %s6584_s22 }
  0xe5   : > { %v677_v5 = vsel %vm676_vm4, %v6875_v37, %v661_v3  ;;  %v678_v9 = vsel %vm676_vm4, %v661_v3, %v663_v48  ;;  %v683_v10 = vsel %vm676_vm4, %v671_v4, %v6886_v44  ;;  %v6942_v18 = vpop.permute.xlu2 %886  ;;  %1532 = vrot.lane.b32.xlu2 %v6762_v22, %s6584_s22  ;;  %v1912_v48 = vld [vmem:[#allocation5] sm:$0xf]  ;;  %s6595_s22 = smov 65  }
  0xe6   : > { %v692_v11 = vsel %vm255_vm1, %v678_v9, 0  ;;  %v689_v12 = vsel %vm255_vm1, %v677_v5, 0  ;;  %v707_v16 = vsel %vm255_vm1, %v683_v10, 0  ;;  %v1927_v50 = vunpack.c.l.b16 %v1912_v48 }
  0xe7   : > { %732 = vmatpush.bf16.msra.mxu1 %v692_v11  ;;  %719 = vmatpush.bf16.msra.mxu0 %v689_v12 }
  0xe8   : > { %797 = vmatpush.bf16.msrb.mxu2 %v707_v16  ;;  %v1928_v57 = vpack.c.b16 %v1927_v50, %v1927_v50 }
  0xea   : > { %6133 = vmatmul.msk.bf16.vlgmr.msra.gmra.mxu1 %vm251_vm2, %v6915_v61  ;;  %1742 = vrot.lane.b32.xlu0 %v6742_v7, %s6586_s25 }
  0xec   : > { %v675_v21 = vpop.permute.xlu0 %674  ;;  %v669_v23 = vpop.permute.xlu1 %668  ;;  %1744 = vrot.lane.b32.xlu1 %v6750_v13, %s6586_s25 }
  0xed   : > { %v684_v24 = vsel %vm676_vm4, %v6886_v44, %v675_v21  ;;  %v681_v25 = vsel %vm676_vm4, %v667_v60, %v669_v23  ;;  %v682_v26 = vsel %vm676_vm4, %v669_v23, %v671_v4  ;;  %v885_v31 = vpop.permute.xlu2 %884  ;;  %1746 = vrot.lane.b32.xlu2 %v6740_v6, %s6586_s25  ;;  %v1944_v21 = vunpack.c.l.b16 %v1925_v19 }
  0xee   : > { %v710_v27 = vsel %vm255_vm1, %v684_v24, 0  ;;  %v701_v28 = vsel %vm255_vm1, %v681_v25, 0  ;;  %v704_v29 = vsel %vm255_vm1, %v682_v26, 0  ;;  %vm3484_vm4 = vcmask 384000  }
  0xef   : > { %771 = vmatpush.bf16.msrb.mxu0 %v701_v28  ;;  %784 = vmatpush.bf16.msrb.mxu1 %v704_v29  ;;  %v1953_v23 = vpack.c.b16 %v1944_v21, %v1944_v21  ;;  %v6590_v28 = vmov 0.0   ;;  %v2138_v29 = vld [vmem:[%s6727_s4 + $0xc] sm:$0xff] }
  0xf0   : > { %810 = vmatpush.bf16.msrb.mxu3 %v710_v27  ;;  %186 = vst.msk [vmem:[%s7051_s20 + $0x38] sm:$0xff] %vm185_vm7, %v6590_v28 }
  0xf2   : > { %6132 = vmatmul.msk.bf16.vlgmr.msra.gmra.mxu0 %vm251_vm2, %v6915_v61  ;;  %1713 = vrot.lane.b32.xlu0 %v1712_v30, %s6587_s29 }
  0xf3   : > { %6134 = vmatmul.msk.bf16.vlgmr.msra.gmra.mxu2 %vm251_vm2, %v6915_v61 }
  0xf4   : > { %6135 = vmatmul.msk.bf16.vlgmr.msra.gmra.mxu3 %vm251_vm2, %v6915_v61  ;;  %v881_v32 = vpop.permute.xlu0 %880  ;;  %v883_v33 = vpop.permute.xlu1 %882  ;;  %1738 = vrot.lane.b32.xlu1 %v6752_v14, %s6586_s25  ;;  %v898_v14 = vsel %vm892_vm5, %v885_v31, %v6942_v18 }
  0xf5   : > { %v895_v34 = vsel %vm892_vm5, %v6904_v53, %v881_v32  ;;  %v896_v35 = vsel %vm892_vm5, %v881_v32, %v883_v33  ;;  %v6981_v38 = vpop.permute.xlu2 %1098  ;;  %1740 = vrot.lane.b32.xlu2 %v6744_v8, %s6586_s25  ;;  %v920_v43 = vsel %vm255_vm1, %v898_v14, 0  ;;  %v897_v44 = vsel %vm892_vm5, %v883_v33, %v885_v31 }
  0xf6   : > { %v911_v36 = vsel %vm255_vm1, %v895_v34, 0  ;;  %v914_v37 = vsel %vm255_vm1, %v896_v35, 0  ;;  %v917_v47 = vsel %vm255_vm1, %v897_v44, 0  ;;  %v2155_v32 = vunpack.c.h.b16 %v2138_v29 }
  0xf7   : > { %961 = vmatpush.bf16.msra.mxu2 %v911_v36  ;;  %974 = vmatpush.bf16.msra.mxu3 %v914_v37 }
  0xf8   : > { %v7064_v33 = vpack.c.b16 %v2155_v32, %v2155_v32 }
  0xfa   : > { %6137 = vmatmul.msk.bf16.vlgmr.msrb.gmra.mxu1 %vm251_vm2, %v6915_v61  ;;  %1750 = vrot.lane.b32.xlu0 %v6754_v15, %s6586_s25 }
  0xfc   : > { %v875_v39 = vpop.permute.xlu0 %874  ;;  %v877_v40 = vpop.permute.xlu1 %876  ;;  %1752 = vrot.lane.b32.xlu1 %v6760_v20, %s6586_s25 }
  0xfd   : > { %v893_v41 = vsel %vm892_vm5, %v875_v39, %v877_v40  ;;  %v894_v42 = vsel %vm892_vm5, %v877_v40, %v6904_v53  ;;  %v1093_v56 = vpop.permute.xlu2 %1092  ;;  %v7075_v39 = vld [vmem:[%s6727_s4 + $0x14] sm:$0xff] }
  0xfe   : > { %v905_v45 = vsel %vm255_vm1, %v893_v41, 0  ;;  %v908_v46 = vsel %vm255_vm1, %v894_v42, 0  ;;  %v2156_v41 = vunpack.c.l.b16 %v7075_v39 }
  0xff   : > { %935 = vmatpush.bf16.msra.mxu0 %v905_v45  ;;  %948 = vmatpush.bf16.msra.mxu1 %v908_v46 }
 0x100   : > { %v7082_v42 = vpack.c.b16 %v2156_v41, %v2156_v41 }
 0x102   : > { %6136 = vmatmul.msk.bf16.vlgmr.msrb.gmra.mxu0 %vm251_vm2, %v6915_v61  ;;  %1748 = vrot.lane.b32.xlu0 %v6762_v22, %s6586_s25 }
 0x103   : > { %1000 = vmatpush.bf16.msrb.mxu1 %v920_v43  ;;  %6138 = vmatmul.msk.bf16.vlgmr.msrb.gmra.mxu2 %vm251_vm2, %v6915_v61  ;;  %v2137_v43 = vld [vmem:[%s6727_s4 + $0x4] sm:$0xff] }
 0x104   : > { %6139 = vmatmul.msk.bf16.vlgmr.msrb.gmra.mxu3 %vm251_vm2, %v6915_v61  ;;  %v889_v8 = vpop.permute.xlu0 %888  ;;  %987 = vmatpush.bf16.msrb.mxu0 %v917_v47  ;;  %v891_v49 = vpop.permute.xlu1 %890  ;;  %v2152_v44 = vunpack.c.l.b16 %v2137_v43 }
 0x105   : > { %1958 = vrot.lane.b32.xlu1 %v6742_v7, %s6588_s30  ;;  %v899_v51 = vsel %vm892_vm5, %v6942_v18, %v889_v8  ;;  %v900_v53 = vsel %vm892_vm5, %v889_v8, %v891_v49  ;;  %v1921_v7 = vld [vmem:[%s6727_s4] sm:$0xff]  ;;  %v2153_v49 = vunpack.c.h.b16 %v2137_v43  ;;  %vm3695_vm5 = vcmask 375808  }
 0x106   : > { %v926_v54 = vsel %vm255_vm1, %v900_v53, 0  ;;  %v923_v55 = vsel %vm255_vm1, %v899_v51, 0  ;;  %v1937_v58 = vunpack.c.h.b16 %v1921_v7  ;;  %v1107_v2 = vpop.permute.xlu2 %1106  ;;  %v7091_v46 = vpack.c.b16 %v2152_v44, %v2152_v44  ;;  %v2140_v53 = vld [vmem:[%s6727_s4 + $0x1c] sm:$0xff] }
 0x107   : > { %1013 = vmatpush.bf16.msrb.mxu2 %v923_v55  ;;  %1026 = vmatpush.bf16.msrb.mxu3 %v926_v54  ;;  %v2154_v54 = vunpack.c.l.b16 %v2138_v29  ;;  %v2158_v28 = vunpack.c.l.b16 %v2140_v53 }
 0x108   : > { %v1946_v3 = vpack.c.b16 %v1937_v58, %v1937_v58  ;;  %v2159_v58 = vunpack.c.h.b16 %v2140_v53 }
 0x10a   : > { %6141 = vmatmul.msk.bf16.vlgmr.msra.gmra.mxu1 %vm251_vm2, %v6924_v1  ;;  %1962 = vrot.lane.b32.xlu0 %v6740_v6, %s6588_s30  ;;  %v1709_v6 = vld [vmem:[%s6727_s4 + $0x20] sm:$0xf] }
 0x10b   : > { %v1728_v9 = vunpack.c.l.b16 %v1709_v6 }
 0x10c   : > { %v1095_v59 = vpop.permute.xlu0 %1094  ;;  %v1097_v60 = vpop.permute.xlu1 %1096 }
 0x10d   : > { %1929 = vrot.lane.b32.xlu1 %v1928_v57, %s6589_s3  ;;  %v1110_v61 = vsel %vm1108_vm6, %v1093_v56, %v1095_v59  ;;  %v1111_v62 = vsel %vm1108_vm6, %v1095_v59, %v1097_v60  ;;  %v1112_v63 = vsel %vm1108_vm6, %v1097_v60, %v6981_v38  ;;  %v1737_v10 = vpack.c.b16 %v1728_v9, %v1728_v9  ;;  %v2128_v9 = vld [vmem:[#allocation5] sm:$0xf] }
 0x10e   : > { %v1124_v0 = vsel %vm255_vm1, %v1110_v61, 0  ;;  %v1127_v4 = vsel %vm255_vm1, %v1111_v62, 0  ;;  %v1130_v5 = vsel %vm255_vm1, %v1112_v63, 0  ;;  %v7113_v59 = vpack.c.b16 %v2154_v54, %v2154_v54 }
 0x10f   : > { %1164 = vmatpush.bf16.msra.mxu1 %v1124_v0  ;;  %1754 = vrot.lane.b32.xlu2 %v1737_v10, %s6586_s25  ;;  %v1313_v18 = vpop.permute.xlu2 %1312  ;;  %v2160_v10 = vunpack.c.h.b16 %v6910_v52  ;;  %s6596_s25 = smov 40  }
 0x112   : > { %6140 = vmatmul.msk.bf16.vlgmr.msra.gmra.mxu0 %vm251_vm2, %v6924_v1  ;;  %1956 = vrot.lane.b32.xlu0 %v1946_v3, %s6588_s30 }
 0x113   : > { %6142 = vmatmul.msk.bf16.vlgmr.msra.gmra.mxu2 %vm251_vm2, %v6924_v1 }
 0x114   : > { %6143 = vmatmul.msk.bf16.vlgmr.msra.gmra.mxu3 %vm251_vm2, %v6924_v1  ;;  %v7031_v11 = vpop.permute.xlu0 %1065  ;;  %v1091_v12 = vpop.permute.xlu1 %1090  ;;  %1177 = vmatpush.bf16.msra.mxu2 %v1127_v4 }
 0x115   : > { %1190 = vmatpush.bf16.msra.mxu3 %v1130_v5  ;;  %v1109_v16 = vsel %vm1108_vm6, %v1091_v12, %v1093_v56  ;;  %1966 = vrot.lane.b32.xlu1 %v6754_v15, %s6588_s30  ;;  %v2143_v12 = vunpack.c.l.b16 %v2128_v9 }
 0x116   : > { %v1121_v17 = vsel %vm255_vm1, %v1109_v16, 0  ;;  %v2169_v16 = vpack.c.b16 %v2160_v10, %v2160_v10 }
 0x117   : > { %1151 = vmatpush.bf16.msra.mxu0 %v1121_v17  ;;  %1960 = vrot.lane.b32.xlu2 %v6750_v13, %s6588_s30  ;;  %v7049_v27 = vpop.permute.xlu2 %1306 }
 0x11a   : > { %6145 = vmatmul.msk.bf16.vlgmr.msrb.gmra.mxu1 %vm251_vm2, %v6924_v1  ;;  %1970 = vrot.lane.b32.xlu0 %v1953_v23, %s6588_s30 }
 0x11c   : > { %v1103_v24 = vpop.permute.xlu0 %1102 }
 0x11d   : > { %v1105_v25 = vpop.permute.xlu1 %1104  ;;  %1964 = vrot.lane.b32.xlu1 %v6762_v22, %s6588_s30  ;;  %v1936_v22 = vunpack.c.l.b16 %v1921_v7  ;;  %v7109_v7 = vpack.c.b16 %v2153_v49, %v2153_v49 }
 0x11e   : > { %v1115_v15 = vsel %vm1108_vm6, %v1103_v24, %v1105_v25  ;;  %v1116_v26 = vsel %vm1108_vm6, %v1105_v25, %v1107_v2 }
 0x11f   : > { %v1142_v30 = vsel %vm255_vm1, %v1116_v26, 0  ;;  %v1139_v31 = vsel %vm255_vm1, %v1115_v15, 0  ;;  %v1945_v13 = vpack.c.b16 %v1936_v22, %v1936_v22 }
 0x121   : > { %1954 = vrot.lane.b32.xlu2 %v1945_v13, %s6588_s30 }
 0x122   : > { %6144 = vmatmul.msk.bf16.vlgmr.msrb.gmra.mxu0 %vm251_vm2, %v6924_v1  ;;  %2176 = vrot.lane.b32.xlu0 %v7064_v33, %s6591_s6 }
 0x123   : > { %6146 = vmatmul.msk.bf16.vlgmr.msrb.gmra.mxu2 %vm251_vm2, %v6924_v1 }
 0x124   : > { %6147 = vmatmul.msk.bf16.vlgmr.msrb.gmra.mxu3 %vm251_vm2, %v6924_v1  ;;  %v1101_v34 = vpop.permute.xlu0 %1100  ;;  %1229 = vmatpush.bf16.msrb.mxu2 %v1139_v31 }
 0x125   : > { %1242 = vmatpush.bf16.msrb.mxu3 %v1142_v30  ;;  %v1113_v35 = vsel %vm1108_vm6, %v6981_v38, %v1101_v34  ;;  %v1114_v36 = vsel %vm1108_vm6, %v1101_v34, %v1103_v24  ;;  %v7079_v38 = vpop.permute.xlu2 %1320  ;;  %2178 = vrot.lane.b32.xlu1 %v7082_v42, %s6591_s6  ;;  %vm3911_vm6 = vcmask 367616  }
 0x126   : > { %v1133_v37 = vsel %vm255_vm1, %v1113_v35, 0  ;;  %v1311_v14 = vpop.permute.xlu1 %1310  ;;  %v1136_v1 = vsel %vm255_vm1, %v1114_v36, 0  ;;  %v7162_v35 = vpack.c.b16 %v2158_v28, %v2158_v28 }
 0x127   : > { %v7077_v40 = vpop.f32.mrf.mxu1  ;;  %1203 = vmatpush.bf16.msrb.mxu0 %v1133_v37  ;;  %1216 = vmatpush.bf16.msrb.mxu1 %v1136_v1  ;;  %v1327_v47 = vsel %vm1324_vm8, %v1311_v14, %v1313_v18  ;;  %v195_v37 = vld [vmem:[%s7051_s20 + $0x38] sm:$0xff] }
 0x128   : > { %v1343_v55 = vsel %vm255_vm1, %v1327_v47, 0 }
 0x129   : > { %1968 = vrot.lane.b32.xlu2 %v6760_v20, %s6588_s30  ;;  %v7119_v20 = vpack.c.b16 %v2159_v58, %v2159_v58  ;;  %s6597_s30 = smov 57  }
 0x12a   : > { %6149 = vmatmul.msk.bf16.vlgmr.msra.gmra.mxu1 %vm251_vm2, %v7031_v11  ;;  %2170 = vrot.lane.b32.xlu0 %v7091_v46, %s6591_s6 }
 0x12c   : > { %v7089_v45 = vpop.permute.xlu0 %1314 }
 0x12d   : > { %v1328_v8 = vsel %vm1324_vm8, %v1313_v18, %v7089_v45  ;;  %v7107_v57 = vpop.permute.xlu2 %1526  ;;  %2172 = vrot.lane.b32.xlu1 %v7109_v7, %s6591_s6  ;;  %v2144_v18 = vpack.c.b16 %v2143_v12, %v2143_v12 }
 0x12e   : > { %v7094_v48 = vpop.permute.xlu1 %1281  ;;  %v1346_v56 = vsel %vm255_vm1, %v1328_v8, 0  ;;  %v2157_v8 = vunpack.c.h.b16 %v7075_v39 }
 0x12f   : > { %v7102_v50 = vpop.f32.mrf.mxu0  ;;  %v304_v51 = vpop.f32.mrf.mxu1 }
 0x130   : > { %v7186_v51 = vpack.c.b16 %v2157_v8, %v2157_v8 }
 0x131   : > { %2174 = vrot.lane.b32.xlu2 %v7113_v59, %s6591_s6 }
 0x132   : > { %6148 = vmatmul.msk.bf16.vlgmr.msra.gmra.mxu0 %vm251_vm2, %v7031_v11  ;;  %2184 = vrot.lane.b32.xlu0 %v7119_v20, %s6591_s6 }
 0x133   : > { %6150 = vmatmul.msk.bf16.vlgmr.msra.gmra.mxu2 %vm251_vm2, %v7031_v11 }
 0x134   : > { %6151 = vmatmul.msk.bf16.vlgmr.msra.gmra.mxu3 %vm251_vm2, %v7031_v11  ;;  %v1309_v60 = vpop.permute.xlu0 %1308  ;;  %1393 = vmatpush.bf16.msra.mxu2 %v1343_v55 }
 0x135   : > { %1406 = vmatpush.bf16.msra.mxu3 %v1346_v56  ;;  %v1325_v61 = vsel %vm1324_vm8, %v7049_v27, %v1309_v60  ;;  %v1326_v62 = vsel %vm1324_vm8, %v1309_v60, %v1311_v14  ;;  %v7141_v17 = vpop.permute.xlu2 %1497  ;;  %2186 = vrot.lane.b32.xlu1 %v2169_v16, %s6591_s6  ;;  %v2344_v27 = vld [vmem:[#allocation5] sm:$0xf] }
 0x136   : > { %v7126_v63 = vpop.f32.mrf.mxu2  ;;  %v1337_v2 = vsel %vm255_vm1, %v1325_v61, 0  ;;  %v1340_v3 = vsel %vm255_vm1, %v1326_v62, 0  ;;  %v1319_v5 = vpop.permute.xlu1 %1318  ;;  %v2359_v31 = vunpack.c.l.b16 %v2344_v27 }
 0x137   : > { %v7128_v0 = vpop.f32.mrf.mxu3  ;;  %v291_v6 = vpop.f32.mrf.mxu0  ;;  %1367 = vmatpush.bf16.msra.mxu0 %v1337_v2  ;;  %1380 = vmatpush.bf16.msra.mxu1 %v1340_v3  ;;  %v1331_v24 = vsel %vm1324_vm8, %v1319_v5, %v7079_v38 }
 0x138   : > { %v7136_v4 = vpop.f32.mrf.mxu1  ;;  %v1355_v30 = vsel %vm255_vm1, %v1331_v24, 0  ;;  %v2360_v36 = vpack.c.b16 %v2359_v31, %v2359_v31 }
 0x139   : > { %2145 = vrot.lane.b32.xlu2 %v2144_v18, %s6593_s17 }
 0x13a   : > { %6153 = vmatmul.msk.bf16.vlgmr.msrb.gmra.mxu1 %vm251_vm2, %v7031_v11  ;;  %2390 = vrot.lane.b32.xlu0 %v7113_v59, %s6592_s8 }
 0x13c   : > { %v1323_v19 = vpop.permute.xlu0 %1322 }
 0x13d   : > { %v1332_v15 = vsel %vm1324_vm8, %v7079_v38, %v1323_v19  ;;  %v7169_v1 = vpop.permute.xlu2 %1534  ;;  %2392 = vrot.lane.b32.xlu1 %v7064_v33, %s6592_s8 }
 0x13e   : > { %v317_v21 = vpop.f32.mrf.mxu2  ;;  %v1317_v26 = vpop.permute.xlu1 %1316  ;;  %v1358_v13 = vsel %vm255_vm1, %v1332_v15, 0 }
 0x13f   : > { %v330_v23 = vpop.f32.mrf.mxu3  ;;  %v7149_v52 = vpop.f32.mrf.mxu0  ;;  %v1329_v29 = vsel %vm1324_vm8, %v7089_v45, %v1317_v26  ;;  %v1330_v22 = vsel %vm1324_vm8, %v1317_v26, %v1319_v5  ;;  %vm4127_vm8 = vcmask 777216  }
 0x140   : > { %v356_v25 = vpop.f32.mrf.mxu1  ;;  %v1349_v32 = vsel %vm255_vm1, %v1329_v29, 0  ;;  %v1352_v34 = vsel %vm255_vm1, %v1330_v22, 0 }
 0x141   : > { %1432 = vmatpush.bf16.msrb.mxu1 %v1352_v34  ;;  %2182 = vrot.lane.b32.xlu2 %v7162_v35, %s6591_s6 }
 0x142   : > { %6152 = vmatmul.msk.bf16.vlgmr.msrb.gmra.mxu0 %vm251_vm2, %v7031_v11  ;;  %2361 = vrot.lane.b32.xlu0 %v2360_v36, %s6594_s19 }
 0x143   : > { %6154 = vmatmul.msk.bf16.vlgmr.msrb.gmra.mxu2 %vm251_vm2, %v7031_v11  ;;  %1419 = vmatpush.bf16.msrb.mxu0 %v1349_v32  ;;  %v2560_v32 = vld [vmem:[#allocation5] sm:$0xf] }
 0x144   : > { %6155 = vmatmul.msk.bf16.vlgmr.msrb.gmra.mxu3 %vm251_vm2, %v7031_v11  ;;  %v1529_v14 = vpop.permute.xlu0 %1528  ;;  %1445 = vmatpush.bf16.msrb.mxu2 %v1355_v30  ;;  %v2575_v36 = vunpack.c.l.b16 %v2560_v32 }
 0x145   : > { %1458 = vmatpush.bf16.msrb.mxu3 %v1358_v13  ;;  %v1543_v56 = vsel %vm1540_vm9, %v7107_v57, %v1529_v14  ;;  %2386 = vrot.lane.b32.xlu1 %v7091_v46, %s6592_s8  ;;  %v1533_v61 = vpop.permute.xlu2 %1532 }
 0x146   : > { %v7171_v38 = vpop.f32.mrf.mxu2  ;;  %v1531_v47 = vpop.permute.xlu1 %1530  ;;  %v1559_v5 = vsel %vm255_vm1, %v1543_v56, 0 }
 0x147   : > { %v380_v41 = vpop.f32.mrf.mxu3  ;;  %v343_v43 = vpop.f32.mrf.mxu0  ;;  %v1544_v58 = vsel %vm1540_vm9, %v1529_v14, %v1531_v47  ;;  %v1545_v28 = vsel %vm1540_vm9, %v1531_v47, %v1533_v61 }
 0x148   : > { %v391_v11 = vadd.f32 %v380_v41, %v195_v37  ;;  %v518_v44 = vpop.f32.mrf.mxu1  ;;  %v1562_v9 = vsel %vm255_vm1, %v1544_v58, 0  ;;  %v1565_v13 = vsel %vm255_vm1, %v1545_v28, 0 }
 0x149   : > { %v7179_v45 = vadd.f32 %v518_v44, %v7077_v40  ;;  %2180 = vrot.lane.b32.xlu2 %v7186_v51, %s6591_s6  ;;  %s6599_s6 = smov 24  }
 0x14a   : > { %399 = vst.msk [vmem:[%s7051_s20 + $0x38] sm:$0xff] %vm185_vm7, %v391_v11  ;;  %6157 = vmatmul.msk.bf16.vlgmr.msra.gmra.mxu1 %vm251_vm2, %v7094_v48  ;;  %2398 = vrot.lane.b32.xlu0 %v7162_v35, %s6592_s8 }
 0x14c   : > { %v1523_v49 = vpop.permute.xlu0 %1522 }
 0x14d   : > { %2400 = vrot.lane.b32.xlu1 %v7119_v20, %s6592_s8  ;;  %v7231_v15 = vpop.permute.xlu2 %1746 }
 0x14e   : > { %v369_v53 = vpop.f32.mrf.mxu2  ;;  %v1525_v60 = vpop.permute.xlu1 %1524 }
 0x14f   : > { %v382_v54 = vpop.f32.mrf.mxu3  ;;  %v505_v40 = vpop.f32.mrf.mxu0  ;;  %v1541_v62 = vsel %vm1540_vm9, %v1523_v49, %v1525_v60  ;;  %v1542_v2 = vsel %vm1540_vm9, %v1525_v60, %v7107_v57  ;;  %v1546_v57 = vsel %vm1540_vm9, %v1533_v61, %v7169_v1 }
 0x150   : > { %v520_v55 = vpop.f32.mrf.mxu1  ;;  %v7198_v39 = vadd.f32 %v505_v40, %v7102_v50  ;;  %v1553_v3 = vsel %vm255_vm1, %v1541_v62, 0  ;;  %v1556_v6 = vsel %vm255_vm1, %v1542_v2, 0  ;;  %v1568_v25 = vsel %vm255_vm1, %v1546_v57, 0 }
 0x151   : > { %1596 = vmatpush.bf16.msra.mxu1 %v1556_v6  ;;  %2394 = vrot.lane.b32.xlu2 %v7082_v42, %s6592_s8  ;;  %v408_v43 = vld [vmem:[%s7051_s20 + $0x38] sm:$0xff] }
 0x152   : > { %6156 = vmatmul.msk.bf16.vlgmr.msra.gmra.mxu0 %vm251_vm2, %v7094_v48  ;;  %2396 = vrot.lane.b32.xlu0 %v7186_v51, %s6592_s8 }
 0x153   : > { %6158 = vmatmul.msk.bf16.vlgmr.msra.gmra.mxu2 %vm251_vm2, %v7094_v48  ;;  %1583 = vmatpush.bf16.msra.mxu0 %v1553_v3 }
 0x154   : > { %6159 = vmatmul.msk.bf16.vlgmr.msra.gmra.mxu3 %vm251_vm2, %v7094_v48  ;;  %v1537_v50 = vpop.permute.xlu0 %1536  ;;  %1609 = vmatpush.bf16.msra.mxu2 %v1559_v5  ;;  %v2357_v5 = vld [vmem:[%s6727_s4 + $0x24] sm:$0xf] }
 0x155   : > { %1622 = vmatpush.bf16.msra.mxu3 %v1562_v9  ;;  %v1547_v27 = vsel %vm1540_vm9, %v7169_v1, %v1537_v50  ;;  %2606 = vrot.lane.b32.xlu1 %v7113_v59, %s6595_s22  ;;  %v1741_v14 = vpop.permute.xlu2 %1740  ;;  %v2376_v57 = vunpack.c.l.b16 %v2357_v5 }
 0x156   : > { %v531_v10 = vpop.f32.mrf.mxu2  ;;  %v1539_v24 = vpop.permute.xlu1 %1538  ;;  %v1571_v34 = vsel %vm255_vm1, %v1547_v27, 0 }
 0x157   : > { %v544_v12 = vpop.f32.mrf.mxu3  ;;  %v7220_v16 = vadd.f32 %v531_v10, %v7126_v63  ;;  %v507_v19 = vpop.f32.mrf.mxu0  ;;  %v1548_v22 = vsel %vm1540_vm9, %v1537_v50, %v1539_v24  ;;  %vm4343_vm9 = vcmask 769024  }
 0x158   : > { %v7223_v18 = vadd.f32 %v544_v12, %v7128_v0  ;;  %v570_v21 = vpop.f32.mrf.mxu1  ;;  %v1574_v37 = vsel %vm255_vm1, %v1548_v22, 0  ;;  %v2573_v22 = vld [vmem:[%s6727_s4 + $0x24] sm:$0xf] }
 0x159   : > { %v7228_v23 = vadd.f32 %v570_v21, %v7136_v4  ;;  %2388 = vrot.lane.b32.xlu2 %v7109_v7, %s6592_s8 }
 0x15a   : > { %6161 = vmatmul.msk.bf16.vlgmr.msrb.gmra.mxu1 %vm251_vm2, %v7094_v48  ;;  %2610 = vrot.lane.b32.xlu0 %v7082_v42, %s6595_s22 }
 0x15b   : > { %1648 = vmatpush.bf16.msrb.mxu1 %v1568_v25 }
 0x15c   : > { %v1743_v63 = vpop.permute.xlu0 %1742 }
 0x15d   : > { %v1758_v41 = vsel %vm1756_vm10, %v1741_v14, %v1743_v63 }
 0x15e   : > { %v533_v0 = vpop.f32.mrf.mxu2  ;;  %v1745_v31 = vpop.permute.xlu1 %1744  ;;  %v1772_v40 = vsel %vm255_vm1, %v1758_v41, 0 }
 0x15f   : > { %v546_v26 = vpop.f32.mrf.mxu3  ;;  %v557_v4 = vpop.f32.mrf.mxu0  ;;  %v1759_v58 = vsel %vm1756_vm10, %v1743_v63, %v1745_v31  ;;  %v1760_v62 = vsel %vm1756_vm10, %v1745_v31, %v7231_v15  ;;  %v2592_v31 = vunpack.c.l.b16 %v2573_v22 }
 0x160   : > { %v572_v29 = vpop.f32.mrf.mxu1  ;;  %v7246_v30 = vadd.f32 %v557_v4, %v7149_v52  ;;  %v2576_v52 = vpack.c.b16 %v2575_v36, %v2575_v36  ;;  %v1775_v50 = vsel %vm255_vm1, %v1759_v58, 0  ;;  %v1778_v10 = vsel %vm255_vm1, %v1760_v62, 0 }
 0x162   : > { %6160 = vmatmul.msk.bf16.vlgmr.msrb.gmra.mxu0 %vm251_vm2, %v7094_v48  ;;  %2604 = vrot.lane.b32.xlu0 %v7109_v7, %s6595_s22 }
 0x163   : > { %6162 = vmatmul.msk.bf16.vlgmr.msrb.gmra.mxu2 %vm251_vm2, %v7094_v48  ;;  %1635 = vmatpush.bf16.msrb.mxu0 %v1565_v13 }
 0x164   : > { %6163 = vmatmul.msk.bf16.vlgmr.msrb.gmra.mxu3 %vm251_vm2, %v7094_v48  ;;  %v7257_v1 = vpop.permute.xlu0 %1713  ;;  %1661 = vmatpush.bf16.msrb.mxu2 %v1571_v34 }
 0x165   : > { %1674 = vmatpush.bf16.msrb.mxu3 %v1574_v37  ;;  %2577 = vrot.lane.b32.xlu1 %v2576_v52, %s6596_s25  ;;  %s6602_s25 = smov 47  }
 0x166   : > { %v583_v11 = vpop.f32.mrf.mxu2  ;;  %v1739_v54 = vpop.permute.xlu1 %1738 }
 0x167   : > { %v596_v44 = vpop.f32.mrf.mxu3  ;;  %v7264_v47 = vadd.f32 %v583_v11, %v7171_v38  ;;  %v559_v48 = vpop.f32.mrf.mxu0  ;;  %v1757_v60 = vsel %vm1756_vm10, %v1739_v54, %v1741_v14 }
 0x168   : > { %v607_v8 = vadd.f32 %v596_v44, %v408_v43  ;;  %v734_v49 = vpop.f32.mrf.mxu1  ;;  %v1769_v9 = vsel %vm255_vm1, %v1757_v60, 0 }
 0x169   : > { %v7267_v53 = vadd.f32 %v734_v49, %v7179_v45  ;;  %v1755_v6 = vpop.permute.xlu2 %1754 }
 0x16a   : > { %615 = vst.msk [vmem:[%s7051_s20 + $0x38] sm:$0xff] %vm185_vm7, %v607_v8  ;;  %6165 = vmatmul.msk.bf16.vlgmr.msra.gmra.mxu1 %vm251_vm2, %v7141_v17 }
 0x16b   : > { %1812 = vmatpush.bf16.msra.mxu1 %v1772_v40 }
 0x16c   : > { %v1751_v38 = vpop.permute.xlu0 %1750 }
 0x16d   : > { %2614 = vrot.lane.b32.xlu1 %v7162_v35, %s6595_s22 }
 0x16e   : > { %v585_v55 = vpop.f32.mrf.mxu2  ;;  %v1753_v3 = vpop.permute.xlu1 %1752 }
 0x16f   : > { %v598_v56 = vpop.f32.mrf.mxu3  ;;  %v721_v61 = vpop.f32.mrf.mxu0  ;;  %v1763_v34 = vsel %vm1756_vm10, %v1751_v38, %v1753_v3  ;;  %v1764_v14 = vsel %vm1756_vm10, %v1753_v3, %v1755_v6 }
 0x170   : > { %v736_v45 = vpop.f32.mrf.mxu1  ;;  %v7281_v2 = vadd.f32 %v721_v61, %v7198_v39  ;;  %v2385_v39 = vpack.c.b16 %v2376_v57, %v2376_v57  ;;  %v1790_v44 = vsel %vm255_vm1, %v1764_v14, 0 }
 0x171   : > { %v1961_v4 = vpop.permute.xlu2 %1960  ;;  %v624_v48 = vld [vmem:[%s7051_s20 + $0x38] sm:$0xff] }
 0x172   : > { %6164 = vmatmul.msk.bf16.vlgmr.msra.gmra.mxu0 %vm251_vm2, %v7141_v17  ;;  %2402 = vrot.lane.b32.xlu2 %v2385_v39, %s6592_s8  ;;  %s6600_s8 = smov 55  }
 0x173   : > { %6166 = vmatmul.msk.bf16.vlgmr.msra.gmra.mxu2 %vm251_vm2, %v7141_v17  ;;  %1799 = vmatpush.bf16.msra.mxu0 %v1769_v9 }
 0x174   : > { %6167 = vmatmul.msk.bf16.vlgmr.msra.gmra.mxu3 %vm251_vm2, %v7141_v17  ;;  %v1749_v12 = vpop.permute.xlu0 %1748  ;;  %1825 = vmatpush.bf16.msra.mxu2 %v1775_v50 }
 0x175   : > { %v1762_v19 = vsel %vm1756_vm10, %v1749_v12, %v1751_v38  ;;  %1838 = vmatpush.bf16.msra.mxu3 %v1778_v10  ;;  %2612 = vrot.lane.b32.xlu1 %v7186_v51, %s6595_s22  ;;  %v1761_v13 = vsel %vm1756_vm10, %v7231_v15, %v1749_v12  ;;  %v1787_v15 = vsel %vm255_vm1, %v1763_v34, 0  ;;  %vm4559_vm10 = vcmask 760832  }
 0x176   : > { %v747_v21 = vpop.f32.mrf.mxu2  ;;  %v1784_v29 = vsel %vm255_vm1, %v1762_v19, 0  ;;  %v1781_v43 = vsel %vm255_vm1, %v1761_v13, 0 }
 0x177   : > { %v760_v24 = vpop.f32.mrf.mxu3  ;;  %v7296_v25 = vadd.f32 %v747_v21, %v7220_v16  ;;  %v723_v0 = vpop.f32.mrf.mxu0  ;;  %v2601_v16 = vpack.c.b16 %v2592_v31, %v2592_v31  ;;  %v2776_v31 = vld [vmem:[#allocation5] sm:$0xf] }
 0x178   : > { %v7299_v63 = vadd.f32 %v760_v24, %v7223_v18  ;;  %v786_v26 = vpop.f32.mrf.mxu1  ;;  %v1959_v28 = vpop.permute.xlu1 %1958 }
 0x179   : > { %v7304_v27 = vadd.f32 %v786_v26, %v7228_v23  ;;  %2618 = vrot.lane.b32.xlu0 %v2601_v16, %s6595_s22  ;;  %v1975_v45 = vsel %vm1972_vm11, %v1959_v28, %v1961_v4  ;;  %v2789_v16 = vld [vmem:[%s6727_s4 + $0x24] sm:$0xf] }
 0x17a   : > { %6169 = vmatmul.msk.bf16.vlgmr.msrb.gmra.mxu1 %vm251_vm2, %v7141_v17  ;;  %2608 = vrot.lane.b32.xlu2 %v7064_v33, %s6595_s22  ;;  %v1991_v57 = vsel %vm255_vm1, %v1975_v45, 0 }
 0x17b   : > { %1864 = vmatpush.bf16.msrb.mxu1 %v1784_v29  ;;  %v1955_v11 = vpop.permute.xlu2 %1954 }
 0x17c   : > { %v7310_v18 = vpop.permute.xlu0 %1962 }
 0x17d   : > { %2826 = vrot.lane.b32.xlu1 %v7082_v42, %s6597_s30  ;;  %v1976_v6 = vsel %vm1972_vm11, %v1961_v4, %v7310_v18 }
 0x17e   : > { %v749_v23 = vpop.f32.mrf.mxu2  ;;  %v1994_v39 = vsel %vm255_vm1, %v1976_v6, 0 }
 0x17f   : > { %v762_v32 = vpop.f32.mrf.mxu3  ;;  %v773_v36 = vpop.f32.mrf.mxu0  ;;  %v2791_v23 = vunpack.c.l.b16 %v2776_v31 }
 0x180   : > { %v788_v37 = vpop.f32.mrf.mxu1  ;;  %v7322_v52 = vadd.f32 %v773_v36, %v7246_v30  ;;  %v7324_v41 = vpop.permute.xlu1 %1929  ;;  %v2808_v32 = vunpack.c.l.b16 %v2789_v16 }
 0x181   : > { %2824 = vrot.lane.b32.xlu0 %v7064_v33, %s6597_s30 }
 0x182   : > { %6168 = vmatmul.msk.bf16.vlgmr.msrb.gmra.mxu0 %vm251_vm2, %v7141_v17  ;;  %2602 = vrot.lane.b32.xlu2 %v7091_v46, %s6595_s22  ;;  %v2817_v13 = vpack.c.b16 %v2808_v32, %v2808_v32 }
 0x183   : > { %6170 = vmatmul.msk.bf16.vlgmr.msrb.gmra.mxu2 %vm251_vm2, %v7141_v17  ;;  %1851 = vmatpush.bf16.msrb.mxu0 %v1781_v43  ;;  %v1969_v56 = vpop.permute.xlu2 %1968 }
 0x184   : > { %6171 = vmatmul.msk.bf16.vlgmr.msrb.gmra.mxu3 %vm251_vm2, %v7141_v17  ;;  %1877 = vmatpush.bf16.msrb.mxu2 %v1787_v15  ;;  %v1957_v42 = vpop.permute.xlu0 %1956 }
 0x185   : > { %1890 = vmatpush.bf16.msrb.mxu3 %v1790_v44  ;;  %v1974_v30 = vsel %vm1972_vm11, %v1957_v42, %v1959_v28  ;;  %2820 = vrot.lane.b32.xlu1 %v7109_v7, %s6597_s30 }
 0x186   : > { %v799_v8 = vpop.f32.mrf.mxu2  ;;  %v1988_v58 = vsel %vm255_vm1, %v1974_v30, 0 }
 0x187   : > { %v812_v49 = vpop.f32.mrf.mxu3  ;;  %v7342_v54 = vadd.f32 %v799_v8, %v7264_v47  ;;  %v775_v40 = vpop.f32.mrf.mxu0 }
 0x188   : > { %v823_v17 = vadd.f32 %v812_v49, %v624_v48  ;;  %v950_v38 = vpop.f32.mrf.mxu1  ;;  %v1967_v60 = vpop.permute.xlu1 %1966 }
 0x189   : > { %v7347_v55 = vadd.f32 %v950_v38, %v7267_v53  ;;  %2818 = vrot.lane.b32.xlu0 %v7091_v46, %s6597_s30  ;;  %v1973_v53 = vsel %vm1972_vm11, %v1955_v11, %v1957_v42  ;;  %v1979_v37 = vsel %vm1972_vm11, %v1967_v60, %v1969_v56  ;;  %v2992_v42 = vld [vmem:[#allocation5] sm:$0xf] }
 0x18a   : > { %831 = vst.msk [vmem:[%s7051_s20 + $0x38] sm:$0xff] %vm185_vm7, %v823_v17  ;;  %6173 = vmatmul.msk.bf16.vlgmr.msra.gmra.mxu1 %vm251_vm2, %v7257_v1  ;;  %2616 = vrot.lane.b32.xlu2 %v7119_v20, %s6595_s22  ;;  %v1985_v50 = vsel %vm255_vm1, %v1973_v53, 0  ;;  %v2003_v8 = vsel %vm255_vm1, %v1979_v37, 0  ;;  %v3007_v48 = vunpack.c.l.b16 %v2992_v42  ;;  %s6601_s22 = smov 16  }
 0x18b   : > { %2028 = vmatpush.bf16.msra.mxu1 %v1988_v58  ;;  %v7367_v10 = vpop.permute.xlu2 %2174 }
 0x18c   : > { %v1971_v9 = vpop.permute.xlu0 %1970 }
 0x18d   : > { %2834 = vrot.lane.b32.xlu1 %v2817_v13, %s6597_s30  ;;  %v1980_v15 = vsel %vm1972_vm11, %v1969_v56, %v1971_v9 }
 0x18e   : > { %v801_v47 = vpop.f32.mrf.mxu2 }
 0x18f   : > { %v814_v61 = vpop.f32.mrf.mxu3  ;;  %v937_v62 = vpop.f32.mrf.mxu0 }
 0x190   : > { %v952_v3 = vpop.f32.mrf.mxu1  ;;  %v7363_v5 = vadd.f32 %v937_v62, %v7281_v2  ;;  %v1965_v2 = vpop.permute.xlu1 %1964 }
 0x191   : > { %v1978_v12 = vsel %vm1972_vm11, %v1965_v2, %v1967_v60  ;;  %2832 = vrot.lane.b32.xlu0 %v7119_v20, %s6597_s30  ;;  %v1977_v14 = vsel %vm1972_vm11, %v7310_v18, %v1965_v2  ;;  %v2006_v18 = vsel %vm255_vm1, %v1980_v15, 0  ;;  %v840_v40 = vld [vmem:[%s7051_s20 + $0x38] sm:$0xff]  ;;  %vm4775_vm11 = vcmask 695296  }
 0x192   : > { %6172 = vmatmul.msk.bf16.vlgmr.msra.gmra.mxu0 %vm251_vm2, %v7257_v1  ;;  %2822 = vrot.lane.b32.xlu2 %v7113_v59, %s6597_s30  ;;  %v2000_v22 = vsel %vm255_vm1, %v1978_v12, 0  ;;  %v1997_v30 = vsel %vm255_vm1, %v1977_v14, 0 }
 0x193   : > { %6174 = vmatmul.msk.bf16.vlgmr.msra.gmra.mxu2 %vm251_vm2, %v7257_v1  ;;  %2015 = vmatpush.bf16.msra.mxu0 %v1985_v50 }
 0x194   : > { %6175 = vmatmul.msk.bf16.vlgmr.msra.gmra.mxu3 %vm251_vm2, %v7257_v1  ;;  %2041 = vmatpush.bf16.msra.mxu2 %v1991_v57  ;;  %v7390_v29 = vpop.permute.xlu0 %2176 }
 0x195   : > { %2054 = vmatpush.bf16.msra.mxu3 %v1994_v39  ;;  %3040 = vrot.lane.b32.xlu1 %v7064_v33, %s6593_s17  ;;  %v2191_v62 = vsel %vm2188_vm12, %v7367_v10, %v7390_v29 }
 0x196   : > { %v963_v19 = vpop.f32.mrf.mxu2  ;;  %v2207_v12 = vsel %vm255_vm1, %v2191_v62, 0  ;;  %v7541_v62 = vld [vmem:[%s6727_s4 + $0x1c] sm:$0xff] }
 0x197   : > { %v976_v21 = vpop.f32.mrf.mxu3  ;;  %v7382_v24 = vadd.f32 %v963_v19, %v7296_v25  ;;  %v939_v26 = vpop.f32.mrf.mxu0 }
 0x198   : > { %v7385_v0 = vadd.f32 %v976_v21, %v7299_v63  ;;  %v1002_v28 = vpop.f32.mrf.mxu1  ;;  %v7396_v25 = vpop.permute.xlu2 %2145  ;;  %v2792_v63 = vpack.c.b16 %v2791_v23, %v2791_v23 }
 0x199   : > { %v7388_v4 = vadd.f32 %v1002_v28, %v7304_v27  ;;  %3038 = vrot.lane.b32.xlu0 %v7113_v59, %s6593_s17  ;;  %v7401_v27 = vpop.permute.xlu1 %2178 }
 0x19a   : > { %6177 = vmatmul.msk.bf16.vlgmr.msrb.gmra.mxu1 %vm251_vm2, %v7257_v1  ;;  %2793 = vrot.lane.b32.xlu2 %v2792_v63, %s6598_s15  ;;  %v7486_v63 = vld [vmem:[%s6727_s4 + $0xc] sm:$0xff]  ;;  %s6604_s15 = smov 46  }
 0x19b   : > { %2080 = vmatpush.bf16.msrb.mxu1 %v2000_v22 }
 0x19c   : > { %v2171_v59 = vpop.permute.xlu0 %2170 }
 0x19d   : > { %3034 = vrot.lane.b32.xlu1 %v7091_v46, %s6593_s17 }
 0x19e   : > { %v965_v34 = vpop.f32.mrf.mxu2 }
 0x19f   : > { %v978_v36 = vpop.f32.mrf.mxu3  ;;  %v989_v11 = vpop.f32.mrf.mxu0 }
 0x1a0   : > { %v1004_v43 = vpop.f32.mrf.mxu1  ;;  %v7408_v44 = vadd.f32 %v989_v11, %v7322_v52  ;;  %v3008_v52 = vpack.c.b16 %v3007_v48, %v3007_v48  ;;  %v7419_v49 = vpop.permute.xlu2 %2182 }
 0x1a1   : > { %v2173_v61 = vpop.permute.xlu1 %2172 }
 0x1a2   : > { %6176 = vmatmul.msk.bf16.vlgmr.msrb.gmra.mxu0 %vm251_vm2, %v7257_v1  ;;  %3009 = vrot.lane.b32.xlu0 %v3008_v52, %s6599_s6  ;;  %v2190_v53 = vsel %vm2188_vm12, %v2173_v61, %v7367_v10  ;;  %v2189_v3 = vsel %vm2188_vm12, %v2171_v59, %v2173_v61  ;;  %v3003_v10 = vld [vmem:[%s6727_s4 + $0x14] sm:$0xff]  ;;  %s6605_s6 = smov 45  }
 0x1a3   : > { %6178 = vmatmul.msk.bf16.vlgmr.msrb.gmra.mxu2 %vm251_vm2, %v7257_v1  ;;  %2067 = vmatpush.bf16.msrb.mxu0 %v1997_v30  ;;  %v2204_v33 = vsel %vm255_vm1, %v2190_v53, 0  ;;  %v2201_v2 = vsel %vm255_vm1, %v2189_v3, 0  ;;  %v3021_v19 = vunpack.c.h.b16 %v3003_v10  ;;  %v3020_v11 = vunpack.c.l.b16 %v3003_v10 }
 0x1a4   : > { %6179 = vmatmul.msk.bf16.vlgmr.msrb.gmra.mxu3 %vm251_vm2, %v7257_v1  ;;  %2093 = vmatpush.bf16.msrb.mxu2 %v2003_v8  ;;  %v2185_v45 = vpop.permute.xlu0 %2184  ;;  %v3208_v8 = vld [vmem:[#allocation5] sm:$0xf] }
 0x1a5   : > { %2106 = vmatpush.bf16.msrb.mxu3 %v2006_v18  ;;  %2830 = vrot.lane.b32.xlu2 %v7162_v35, %s6597_s30  ;;  %v2195_v37 = vsel %vm2188_vm12, %v7419_v49, %v2185_v45  ;;  %v7509_v30 = vpack.c.b16 %v3020_v11, %v3020_v11  ;;  %v3223_v52 = vunpack.c.l.b16 %v3208_v8  ;;  %v3235_v8 = vunpack.c.h.b16 %v7486_v63 }
 0x1a6   : > { %v1015_v17 = vpop.f32.mrf.mxu2  ;;  %3048 = vrot.lane.b32.xlu1 %v7119_v20, %s6593_s17  ;;  %v3234_v20 = vunpack.c.l.b16 %v7486_v63  ;;  %v2219_v18 = vsel %vm255_vm1, %v2195_v37, 0  ;;  %v3221_v63 = vld [vmem:[%s6727_s4 + $0x24] sm:$0xf] }
 0x1a7   : > { %v1028_v38 = vpop.f32.mrf.mxu3  ;;  %v7427_v1 = vadd.f32 %v1015_v17, %v7342_v54  ;;  %v991_v58 = vpop.f32.mrf.mxu0  ;;  %v3224_v17 = vpack.c.b16 %v3223_v52, %v3223_v52 }
 0x1a8   : > { %v1039_v56 = vadd.f32 %v1028_v38, %v840_v40  ;;  %v1166_v60 = vpop.f32.mrf.mxu1  ;;  %v2181_v57 = vpop.permute.xlu2 %2180 }
 0x1a9   : > { %v7430_v47 = vadd.f32 %v1166_v60, %v7347_v55  ;;  %v2187_v39 = vpop.permute.xlu1 %2186  ;;  %v2194_v21 = vsel %vm2188_vm12, %v2181_v57, %v7419_v49  ;;  %v2193_v14 = vsel %vm2188_vm12, %v7401_v27, %v2181_v57  ;;  %v7557_v57 = vld [vmem:[%s6727_s4 + $0x4] sm:$0xff] }
 0x1aa   : > { %1047 = vst.msk [vmem:[%s7051_s20 + $0x38] sm:$0xff] %vm185_vm7, %v1039_v56  ;;  %6181 = vmatmul.msk.bf16.vlgmr.msra.gmra.mxu1 %vm251_vm2, %v7324_v41  ;;  %3046 = vrot.lane.b32.xlu0 %v7162_v35, %s6593_s17  ;;  %v2192_v35 = vsel %vm2188_vm12, %v7390_v29, %v7401_v27  ;;  %v2216_v32 = vsel %vm255_vm1, %v2194_v21, 0  ;;  %v2196_v59 = vsel %vm2188_vm12, %v2185_v45, %v2187_v39  ;;  %v2213_v48 = vsel %vm255_vm1, %v2193_v14, 0 }
 0x1ab   : > { %2244 = vmatpush.bf16.msra.mxu1 %v2204_v33  ;;  %v2210_v46 = vsel %vm255_vm1, %v2192_v35, 0  ;;  %v2222_v49 = vsel %vm255_vm1, %v2196_v59, 0  ;;  %vm4991_vm12 = vcmask 687104  }
 0x1ad   : > { %2828 = vrot.lane.b32.xlu2 %v7186_v51, %s6597_s30  ;;  %v7458_v51 = vpop.permute.xlu0 %2390  ;;  %s6603_s30 = smov 8  }
 0x1ae   : > { %v1017_v54 = vpop.f32.mrf.mxu2 }
 0x1af   : > { %v1030_v55 = vpop.f32.mrf.mxu3  ;;  %v1153_v6 = vpop.f32.mrf.mxu0 }
 0x1b0   : > { %v1168_v9 = vpop.f32.mrf.mxu1  ;;  %v7453_v50 = vadd.f32 %v1153_v6, %v7363_v5  ;;  %v7467_v5 = vpack.c.b16 %v3021_v19, %v3021_v19  ;;  %v7488_v13 = vpop.permute.xlu2 %2394 }
 0x1b1   : > { %v7490_v34 = vpop.permute.xlu1 %2392  ;;  %v1056_v58 = vld [vmem:[%s7051_s20 + $0x38] sm:$0xff] }
 0x1b2   : > { %6180 = vmatmul.msk.bf16.vlgmr.msra.gmra.mxu0 %vm251_vm2, %v7324_v41  ;;  %3044 = vrot.lane.b32.xlu0 %v7467_v5, %s6593_s17  ;;  %v2407_v9 = vsel %vm2404_vm13, %v7458_v51, %v7490_v34 }
 0x1b3   : > { %6182 = vmatmul.msk.bf16.vlgmr.msra.gmra.mxu2 %vm251_vm2, %v7324_v41  ;;  %2231 = vmatpush.bf16.msra.mxu0 %v2201_v2  ;;  %v3233_v2 = vunpack.c.h.b16 %v7557_v57 }
 0x1b4   : > { %6183 = vmatmul.msk.bf16.vlgmr.msra.gmra.mxu3 %vm251_vm2, %v7324_v41  ;;  %2257 = vmatpush.bf16.msra.mxu2 %v2207_v12 }
 0x1b5   : > { %2270 = vmatpush.bf16.msra.mxu3 %v2210_v46  ;;  %3042 = vrot.lane.b32.xlu2 %v7509_v30, %s6593_s17  ;;  %v3005_v46 = vld [vmem:[%s6727_s4 + $0x24] sm:$0xf] }
 0x1b6   : > { %v1179_v26 = vpop.f32.mrf.mxu2 }
 0x1b7   : > { %v1192_v28 = vpop.f32.mrf.mxu3  ;;  %v7476_v29 = vadd.f32 %v1179_v26, %v7382_v24  ;;  %v1155_v31 = vpop.f32.mrf.mxu0  ;;  %v2423_v26 = vsel %vm255_vm1, %v2407_v9, 0 }
 0x1b8   : > { %v7479_v22 = vadd.f32 %v1192_v28, %v7385_v0  ;;  %v1218_v16 = vpop.f32.mrf.mxu1  ;;  %v7495_v24 = vpop.permute.xlu0 %2361  ;;  %v7497_v0 = vpack.c.b16 %v3234_v20, %v3234_v20  ;;  %v7571_v31 = vpack.c.b16 %v3233_v2, %v3233_v2 }
 0x1b9   : > { %v7482_v23 = vadd.f32 %v1218_v16, %v7388_v4  ;;  %v2387_v27 = vpop.permute.xlu1 %2386  ;;  %v3024_v16 = vunpack.c.l.b16 %v3005_v46 }
 0x1ba   : > { %6185 = vmatmul.msk.bf16.vlgmr.msrb.gmra.mxu1 %vm251_vm2, %v7324_v41  ;;  %3254 = vrot.lane.b32.xlu1 %v7497_v0, %s6600_s8 }
 0x1bb   : > { %2296 = vmatpush.bf16.msrb.mxu1 %v2216_v32  ;;  %3258 = vrot.lane.b32.xlu0 %v7509_v30, %s6600_s8 }
 0x1bd   : > { %3036 = vrot.lane.b32.xlu2 %v7109_v7, %s6593_s17  ;;  %v2408_v7 = vsel %vm2404_vm13, %v7490_v34, %v7488_v13 }
 0x1be   : > { %v1181_v4 = vpop.f32.mrf.mxu2  ;;  %v2426_v32 = vsel %vm255_vm1, %v2408_v7, 0  ;;  %v3239_v7 = vunpack.c.h.b16 %v7541_v62 }
 0x1bf   : > { %v1194_v36 = vpop.f32.mrf.mxu3  ;;  %v1205_v43 = vpop.f32.mrf.mxu0 }
 0x1c0   : > { %v1220_v15 = vpop.f32.mrf.mxu1  ;;  %v7507_v42 = vadd.f32 %v1205_v43, %v7408_v44  ;;  %v2389_v44 = vpop.permute.xlu2 %2388 }
 0x1c1   : > { %v7522_v40 = vpop.permute.xlu0 %2398  ;;  %v2406_v38 = vsel %vm2404_vm13, %v2389_v44, %v7458_v51  ;;  %v7538_v55 = vpop.permute.xlu1 %2400  ;;  %v2405_v35 = vsel %vm2404_vm13, %v2387_v27, %v2389_v44 }
 0x1c2   : > { %6184 = vmatmul.msk.bf16.vlgmr.msrb.gmra.mxu0 %vm251_vm2, %v7324_v41  ;;  %3225 = vrot.lane.b32.xlu1 %v3224_v17, %s6601_s22  ;;  %v2420_v54 = vsel %vm255_vm1, %v2406_v38, 0  ;;  %v2417_v21 = vsel %vm255_vm1, %v2405_v35, 0  ;;  %v2411_v52 = vsel %vm2404_vm13, %v7522_v40, %v7538_v55  ;;  %v3240_v38 = vunpack.c.l.b16 %v3221_v63  ;;  %v7702_v63 = vld [vmem:[#allocation5] sm:$0xff]  }
 0x1c3   : > { %6186 = vmatmul.msk.bf16.vlgmr.msrb.gmra.mxu2 %vm251_vm2, %v7324_v41  ;;  %2283 = vmatpush.bf16.msrb.mxu0 %v2213_v48 }
 0x1c4   : > { %6187 = vmatmul.msk.bf16.vlgmr.msrb.gmra.mxu3 %vm251_vm2, %v7324_v41  ;;  %2309 = vmatpush.bf16.msrb.mxu2 %v2219_v18 }
 0x1c5   : > { %2322 = vmatpush.bf16.msrb.mxu3 %v2222_v49  ;;  %3252 = vrot.lane.b32.xlu0 %v7571_v31, %s6600_s8 }
 0x1c6   : > { %v1231_v56 = vpop.f32.mrf.mxu2 }
 0x1c7   : > { %v1244_v60 = vpop.f32.mrf.mxu3  ;;  %v7530_v41 = vadd.f32 %v1231_v56, %v7427_v1  ;;  %v1207_v45 = vpop.f32.mrf.mxu0  ;;  %v3238_v1 = vunpack.c.l.b16 %v7541_v62  ;;  %v3232_v56 = vunpack.c.l.b16 %v7557_v57 }
 0x1c8   : > { %v1255_v61 = vadd.f32 %v1244_v60, %v1056_v58  ;;  %v1382_v53 = vpop.f32.mrf.mxu1  ;;  %v2435_v58 = vsel %vm255_vm1, %v2411_v52, 0 }
 0x1c9   : > { %v7533_v33 = vadd.f32 %v1382_v53, %v7430_v47  ;;  %v7548_v47 = vpack.c.b16 %v3238_v1, %v3238_v1  ;;  %v2397_v19 = vpop.permute.xlu0 %2396  ;;  %v7569_v28 = vpop.permute.xlu1 %2606  ;;  %v7629_v53 = vpack.c.b16 %v3232_v56, %v3232_v56  ;;  %v7716_v56 = vld [vmem:[%s6727_s4 + $0x24] sm:$0xff]  }
 0x1ca   : > { %1263 = vst.msk [vmem:[%s7051_s20 + $0x38] sm:$0xff] %vm185_vm7, %v1255_v61  ;;  %6189 = vmatmul.msk.bf16.vlgmr.msra.gmra.mxu1 %vm251_vm2, %v7396_v25  ;;  %v2410_v34 = vsel %vm2404_vm13, %v2397_v19, %v7522_v40  ;;  %v3249_v61 = vpack.c.b16 %v3240_v38, %v3240_v38 }
 0x1cb   : > { %2460 = vmatpush.bf16.msra.mxu1 %v2420_v54  ;;  %3262 = vrot.lane.b32.xlu1 %v7548_v47, %s6600_s8  ;;  %v2432_v59 = vsel %vm255_vm1, %v2410_v34, 0 }
 0x1cc   : > { %v2403_v51 = vpop.permute.xlu2 %2402 }
 0x1cd   : > { %v2412_v17 = vsel %vm2404_vm13, %v7538_v55, %v2403_v51  ;;  %3266 = vrot.lane.b32.xlu0 %v3249_v61, %s6600_s8  ;;  %v3456_v61 = vunpack.c.l.b16 %v7716_v56 }
 0x1ce   : > { %v1233_v3 = vpop.f32.mrf.mxu2  ;;  %v2438_v45 = vsel %vm255_vm1, %v2412_v17, 0 }
 0x1cf   : > { %v1246_v6 = vpop.f32.mrf.mxu3  ;;  %v1369_v39 = vpop.f32.mrf.mxu0 }
 0x1d0   : > { %v1384_v10 = vpop.f32.mrf.mxu1  ;;  %v7564_v12 = vadd.f32 %v1369_v39, %v7453_v50  ;;  %v3033_v50 = vpack.c.b16 %v3024_v16, %v3024_v16 }
 0x1d1   : > { %v7600_v48 = vpop.permute.xlu0 %2610  ;;  %v1272_v3 = vld [vmem:[%s7051_s20 + $0x38] sm:$0xff] }
 0x1d2   : > { %6188 = vmatmul.msk.bf16.vlgmr.msra.gmra.mxu0 %vm251_vm2, %v7396_v25  ;;  %3050 = vrot.lane.b32.xlu2 %v3033_v50, %s6593_s17 }
 0x1d3   : > { %6190 = vmatmul.msk.bf16.vlgmr.msra.gmra.mxu2 %vm251_vm2, %v7396_v25  ;;  %2447 = vmatpush.bf16.msra.mxu0 %v2417_v21 }
 0x1d4   : > { %6191 = vmatmul.msk.bf16.vlgmr.msra.gmra.mxu3 %vm251_vm2, %v7396_v25  ;;  %2473 = vmatpush.bf16.msra.mxu2 %v2423_v26  ;;  %v7596_v15 = vpop.permute.xlu2 %2608 }
 0x1d5   : > { %2486 = vmatpush.bf16.msra.mxu3 %v2426_v32  ;;  %3260 = vrot.lane.b32.xlu1 %v7467_v5, %s6600_s8  ;;  %v2624_v26 = vsel %vm2620_vm14, %v7596_v15, %v7600_v48 }
 0x1d6   : > { %v1395_v20 = vpop.f32.mrf.mxu2 }
 0x1d7   : > { %v1408_v4 = vpop.f32.mrf.mxu3  ;;  %v7588_v36 = vadd.f32 %v1395_v20, %v7476_v29  ;;  %v1371_v14 = vpop.f32.mrf.mxu0  ;;  %v7604_v29 = vpack.c.b16 %v3235_v8, %v3235_v8  ;;  %v2642_v20 = vsel %vm255_vm1, %v2624_v26, 0 }
 0x1d8   : > { %v7591_v37 = vadd.f32 %v1408_v4, %v7479_v22  ;;  %v1434_v11 = vpop.f32.mrf.mxu1  ;;  %v7606_v22 = vpop.permute.xlu1 %2577 }
 0x1d9   : > { %v7594_v43 = vadd.f32 %v1434_v11, %v7482_v23  ;;  %v2409_v23 = vsel %vm2404_vm13, %v7488_v13, %v2397_v19  ;;  %v2605_v54 = vpop.permute.xlu0 %2604  ;;  %v7657_v19 = vpack.c.b16 %v3239_v7, %v3239_v7  ;;  %3472 = vrot.lane.b32.xlu0 %v7604_v29, %s6602_s25  ;;  %vm5207_vm13 = vcmask 678912  }
 0x1da   : > { %6193 = vmatmul.msk.bf16.vlgmr.msrb.gmra.mxu1 %vm251_vm2, %v7396_v25  ;;  %3256 = vrot.lane.b32.xlu2 %v7604_v29, %s6600_s8  ;;  %v2429_v40 = vsel %vm255_vm1, %v2409_v23, 0  ;;  %v2622_v55 = vsel %vm2620_vm14, %v2605_v54, %v7569_v28 }
 0x1db   : > { %2512 = vmatpush.bf16.msrb.mxu1 %v2432_v59  ;;  %v2636_v10 = vsel %vm255_vm1, %v2622_v55, 0 }
 0x1dc   : > { %v2603_v60 = vpop.permute.xlu2 %2602 }
 0x1dd   : > { %3474 = vrot.lane.b32.xlu1 %v7509_v30, %s6602_s25  ;;  %v2621_v46 = vsel %vm2620_vm14, %v2603_v60, %v2605_v54 }
 0x1de   : > { %v1397_v18 = vpop.f32.mrf.mxu2  ;;  %v2633_v34 = vsel %vm255_vm1, %v2621_v46, 0 }
 0x1df   : > { %v1410_v27 = vpop.f32.mrf.mxu3  ;;  %v1421_v49 = vpop.f32.mrf.mxu0 }
 0x1e0   : > { %v1436_v44 = vpop.f32.mrf.mxu1  ;;  %v7621_v13 = vadd.f32 %v1421_v49, %v7507_v42  ;;  %v7635_v42 = vpop.permute.xlu1 %2614  ;;  %v3439_v49 = vunpack.c.l.b16 %v7702_v63 }
 0x1e1   : > { %3466 = vrot.lane.b32.xlu0 %v7629_v53, %s6602_s25 }
 0x1e2   : > { %6192 = vmatmul.msk.bf16.vlgmr.msrb.gmra.mxu0 %vm251_vm2, %v7396_v25  ;;  %3250 = vrot.lane.b32.xlu2 %v7629_v53, %s6600_s8 }
 0x1e3   : > { %6194 = vmatmul.msk.bf16.vlgmr.msrb.gmra.mxu2 %vm251_vm2, %v7396_v25  ;;  %2499 = vmatpush.bf16.msrb.mxu0 %v2429_v40 }
 0x1e4   : > { %6195 = vmatmul.msk.bf16.vlgmr.msrb.gmra.mxu3 %vm251_vm2, %v7396_v25  ;;  %2525 = vmatpush.bf16.msrb.mxu2 %v2435_v58  ;;  %v2617_v2 = vpop.permute.xlu2 %2616 }
 0x1e5   : > { %2538 = vmatpush.bf16.msrb.mxu3 %v2438_v45  ;;  %3468 = vrot.lane.b32.xlu1 %v7571_v31, %s6602_s25  ;;  %v2627_v17 = vsel %vm2620_vm14, %v7635_v42, %v2617_v2 }
 0x1e6   : > { %v1447_v1 = vpop.f32.mrf.mxu2  ;;  %v2651_v55 = vsel %vm255_vm1, %v2627_v17, 0 }
 0x1e7   : > { %v1460_v6 = vpop.f32.mrf.mxu3  ;;  %v7646_v25 = vadd.f32 %v1447_v1, %v7530_v41  ;;  %v1423_v35 = vpop.f32.mrf.mxu0 }
 0x1e8   : > { %v1471_v9 = vadd.f32 %v1460_v6, %v1272_v3  ;;  %v1598_v57 = vpop.f32.mrf.mxu1  ;;  %v2613_v50 = vpop.permute.xlu1 %2612  ;;  %v3465_v3 = vpack.c.b16 %v3456_v61, %v3456_v61 }
 0x1e9   : > { %v7649_v39 = vadd.f32 %v1598_v57, %v7533_v33  ;;  %v2623_v33 = vsel %vm2620_vm14, %v7569_v28, %v7596_v15  ;;  %3480 = vrot.lane.b32.xlu0 %v7657_v19, %s6602_s25  ;;  %v2625_v38 = vsel %vm2620_vm14, %v7600_v48, %v2613_v50 }
 0x1ea   : > { %1479 = vst.msk [vmem:[%s7051_s20 + $0x38] sm:$0xff] %vm185_vm7, %v1471_v9  ;;  %6197 = vmatmul.msk.bf16.vlgmr.msra.gmra.mxu1 %vm251_vm2, %v7495_v24  ;;  %3264 = vrot.lane.b32.xlu2 %v7657_v19, %s6600_s8  ;;  %v2639_v28 = vsel %vm255_vm1, %v2623_v33, 0  ;;  %s6608_s8 = smov 93  }
 0x1eb   : > { %2676 = vmatpush.bf16.msra.mxu1 %v2636_v10  ;;  %v2619_v32 = vpop.permute.xlu0 %2618 }
 0x1ec   : > { %v7684_v4 = vpop.permute.xlu2 %2822  ;;  %v2628_v60 = vsel %vm2620_vm14, %v2617_v2, %v2619_v32 }
 0x1ed   : > { %v2654_v1 = vsel %vm255_vm1, %v2628_v60, 0  ;;  %3482 = vrot.lane.b32.xlu1 %v3465_v3, %s6602_s25 }
 0x1ee   : > { %v1449_v41 = vpop.f32.mrf.mxu2 }
 0x1ef   : > { %v1462_v51 = vpop.f32.mrf.mxu3  ;;  %v1585_v62 = vpop.f32.mrf.mxu0 }
 0x1f0   : > { %v1600_v21 = vpop.f32.mrf.mxu1  ;;  %v7671_v16 = vadd.f32 %v1585_v62, %v7564_v12  ;;  %v2626_v12 = vsel %vm2620_vm14, %v2613_v50, %v7635_v42  ;;  %v7705_v44 = vpop.permute.xlu1 %2826  ;;  %v2645_v42 = vsel %vm255_vm1, %v2625_v38, 0  ;;  %v3653_v38 = vld [vmem:[%s6727_s4 + $0x24] sm:$0xf]  ;;  %vm5423_vm14 = vcmask 613376  }
 0x1f1   : > { %v2648_v52 = vsel %vm255_vm1, %v2626_v12, 0  ;;  %3681 = vrot.lane.b32.xlu0 %v7497_v0, %s6604_s15  ;;  %v1488_v35 = vld [vmem:[%s7051_s20 + $0x38] sm:$0xff] }
 0x1f2   : > { %6196 = vmatmul.msk.bf16.vlgmr.msra.gmra.mxu0 %vm251_vm2, %v7495_v24  ;;  %3470 = vrot.lane.b32.xlu2 %v7497_v0, %s6602_s25 }
 0x1f3   : > { %6198 = vmatmul.msk.bf16.vlgmr.msra.gmra.mxu2 %vm251_vm2, %v7495_v24  ;;  %2663 = vmatpush.bf16.msra.mxu0 %v2633_v34  ;;  %v7699_v23 = vpop.permute.xlu0 %2824 }
 0x1f4   : > { %6199 = vmatmul.msk.bf16.vlgmr.msra.gmra.mxu3 %vm251_vm2, %v7495_v24  ;;  %2689 = vmatpush.bf16.msra.mxu2 %v2639_v28  ;;  %v7723_v54 = vpop.permute.xlu2 %2793  ;;  %v2840_v50 = vsel %vm2836_vm15, %v7699_v23, %v7705_v44 }
 0x1f5   : > { %2702 = vmatpush.bf16.msra.mxu3 %v2642_v20  ;;  %3683 = vrot.lane.b32.xlu1 %v7604_v29, %s6604_s15 }
 0x1f6   : > { %v1611_v14 = vpop.f32.mrf.mxu2 }
 0x1f7   : > { %v1624_v11 = vpop.f32.mrf.mxu3  ;;  %v7691_v15 = vadd.f32 %v1611_v14, %v7588_v36  ;;  %v1587_v8 = vpop.f32.mrf.mxu0  ;;  %v3440_v36 = vpack.c.b16 %v3439_v49, %v3439_v49 }
 0x1f8   : > { %v7694_v59 = vadd.f32 %v1624_v11, %v7591_v37  ;;  %v1650_v18 = vpop.f32.mrf.mxu1  ;;  %v2821_v6 = vpop.permute.xlu1 %2820 }
 0x1f9   : > { %v7697_v27 = vadd.f32 %v1650_v18, %v7594_v43  ;;  %3677 = vrot.lane.b32.xlu0 %v7629_v53, %s6604_s15 }
 0x1fa   : > { %6201 = vmatmul.msk.bf16.vlgmr.msrb.gmra.mxu1 %vm251_vm2, %v7495_v24  ;;  %3441 = vrot.lane.b32.xlu2 %v3440_v36, %s6603_s30 }
 0x1fb   : > { %2728 = vmatpush.bf16.msrb.mxu1 %v2648_v52  ;;  %v2819_v48 = vpop.permute.xlu0 %2818 }
 0x1fc   : > { %v2837_v21 = vsel %vm2836_vm15, %v2819_v48, %v2821_v6 }
 0x1fd   : > { %v2849_v20 = vsel %vm255_vm1, %v2837_v21, 0  ;;  %3679 = vrot.lane.b32.xlu1 %v7571_v31, %s6604_s15 }
 0x1fe   : > { %v1613_v37 = vpop.f32.mrf.mxu2 }
 0x1ff   : > { %v1626_v43 = vpop.f32.mrf.mxu3  ;;  %v1637_v40 = vpop.f32.mrf.mxu0 }
 0x200   : > { %v1652_v58 = vpop.f32.mrf.mxu1  ;;  %v7721_v45 = vadd.f32 %v1637_v40, %v7621_v13  ;;  %v2838_v13 = vsel %vm2836_vm15, %v2821_v6, %v7684_v4  ;;  %v2831_v33 = vpop.permute.xlu2 %2830  ;;  %v3667_v40 = vunpack.c.l.b16 %v3653_v38  ;;  %v3866_v6 = vunpack.c.h.b16 %v7702_v63 }
 0x201   : > { %v2852_v51 = vsel %vm255_vm1, %v2838_v13, 0  ;;  %v2835_v28 = vpop.permute.xlu1 %2834  ;;  %3691 = vrot.lane.b32.xlu0 %v7657_v19, %s6604_s15 }
 0x202   : > { %6200 = vmatmul.msk.bf16.vlgmr.msrb.gmra.mxu0 %vm251_vm2, %v7495_v24  ;;  %3478 = vrot.lane.b32.xlu2 %v7548_v47, %s6602_s25  ;;  %v3676_v58 = vpack.c.b16 %v3667_v40, %v3667_v40 }
 0x203   : > { %6202 = vmatmul.msk.bf16.vlgmr.msrb.gmra.mxu2 %vm251_vm2, %v7495_v24  ;;  %2715 = vmatpush.bf16.msrb.mxu0 %v2645_v42  ;;  %v2833_v46 = vpop.permute.xlu0 %2832 }
 0x204   : > { %6203 = vmatmul.msk.bf16.vlgmr.msrb.gmra.mxu3 %vm251_vm2, %v7495_v24  ;;  %2741 = vmatpush.bf16.msrb.mxu2 %v2651_v55  ;;  %v2844_v48 = vsel %vm2836_vm15, %v2833_v46, %v2835_v28 }
 0x205   : > { %2754 = vmatpush.bf16.msrb.mxu3 %v2654_v1  ;;  %3693 = vrot.lane.b32.xlu1 %v3676_v58, %s6604_s15 }
 0x206   : > { %v1663_v9 = vpop.f32.mrf.mxu2 }
 0x207   : > { %v1676_v57 = vpop.f32.mrf.mxu3  ;;  %v7743_v24 = vadd.f32 %v1663_v9, %v7646_v25  ;;  %v1639_v7 = vpop.f32.mrf.mxu0  ;;  %v2870_v9 = vsel %vm255_vm1, %v2844_v48, 0 }
 0x208   : > { %v1687_v10 = vadd.f32 %v1676_v57, %v1488_v35  ;;  %v1814_v2 = vpop.f32.mrf.mxu1  ;;  %v2829_v14 = vpop.permute.xlu2 %2828  ;;  %v3867_v35 = vpack.c.b16 %v3866_v6, %v3866_v6 }
 0x209   : > { %v7746_v41 = vadd.f32 %v1814_v2, %v7649_v39  ;;  %v2839_v39 = vsel %vm2836_vm15, %v7684_v4, %v7699_v23  ;;  %v2858_v4 = vsel %vm255_vm1, %v2840_v50, 0  ;;  %v3041_v17 = vpop.permute.xlu1 %3040  ;;  %3897 = vrot.lane.b32.xlu0 %v7497_v0, %s6605_s6  ;;  %v2841_v61 = vsel %vm2836_vm15, %v7705_v44, %v2829_v14 }
 0x20a   : > { %1695 = vst.msk [vmem:[%s7051_s20 + $0x38] sm:$0xff] %vm185_vm7, %v1687_v10  ;;  %6205 = vmatmul.msk.bf16.vlgmr.msra.gmra.mxu1 %vm251_vm2, %v7606_v22  ;;  %3476 = vrot.lane.b32.xlu2 %v7467_v5, %s6602_s25  ;;  %v2855_v12 = vsel %vm255_vm1, %v2839_v39, 0  ;;  %v2861_v13 = vsel %vm255_vm1, %v2841_v61, 0  ;;  %s6025_s25 = sshll.u32 %s7051_s20, 4  ;;  %s6026_s25 = int_to_ptr.vmem [resolvable:$true] %s6025_s25 }
 0x20b   : > { %2892 = vmatpush.bf16.msra.mxu1 %v2852_v51  ;;  %v7779_v11 = vpop.permute.xlu0 %3038 }
 0x20c   : > { %v3055_v39 = vsel %vm3052_vm0, %v7779_v11, %v3041_v17 }
 0x20d   : > { %3899 = vrot.lane.b32.xlu1 %v7604_v29, %s6605_s6 }
 0x20e   : > { %v1665_v25 = vpop.f32.mrf.mxu2 }
 0x20f   : > { %v1678_v62 = vpop.f32.mrf.mxu3  ;;  %v1801_v26 = vpop.f32.mrf.mxu0 }
 0x210   : > { %v1816_v32 = vpop.f32.mrf.mxu1  ;;  %v7767_v34 = vadd.f32 %v1801_v26, %v7671_v16  ;;  %v2842_v16 = vsel %vm2836_vm15, %v2829_v14, %v2831_v33 }
 0x211   : > { %v2864_v43 = vsel %vm255_vm1, %v2842_v16, 0  ;;  %v3035_v3 = vpop.permute.xlu1 %3034  ;;  %3868 = vrot.lane.b32.xlu0 %v3867_v35, %s6575_s5  ;;  %s6606_s5 = smov 95  }
 0x212   : > { %6204 = vmatmul.msk.bf16.vlgmr.msra.gmra.mxu0 %vm251_vm2, %v7606_v22  ;;  %3685 = vrot.lane.b32.xlu2 %v7509_v30, %s6604_s15 }
 0x213   : > { %6206 = vmatmul.msk.bf16.vlgmr.msra.gmra.mxu2 %vm251_vm2, %v7606_v22  ;;  %2879 = vmatpush.bf16.msra.mxu0 %v2849_v20  ;;  %v3071_v20 = vsel %vm255_vm1, %v3055_v39, 0 }
 0x214   : > { %6207 = vmatmul.msk.bf16.vlgmr.msra.gmra.mxu3 %vm251_vm2, %v7606_v22  ;;  %2905 = vmatpush.bf16.msra.mxu2 %v2855_v12  ;;  %v7814_v1 = vpop.permute.xlu0 %3009 }
 0x215   : > { %2918 = vmatpush.bf16.msra.mxu3 %v2858_v4  ;;  %3893 = vrot.lane.b32.xlu1 %v7629_v53, %s6605_s6 }
 0x216   : > { %v1827_v8 = vpop.f32.mrf.mxu2 }
 0x217   : > { %v1840_v18 = vpop.f32.mrf.mxu3  ;;  %v7788_v23 = vadd.f32 %v1827_v8, %v7691_v15  ;;  %v1803_v49 = vpop.f32.mrf.mxu0 }
 0x218   : > { %v7791_v52 = vadd.f32 %v1840_v18, %v7694_v59  ;;  %v1866_v36 = vpop.f32.mrf.mxu1  ;;  %v7802_v15 = vpop.permute.xlu2 %3042 }
 0x219   : > { %v7794_v37 = vadd.f32 %v1866_v36, %v7697_v27  ;;  %v2843_v27 = vsel %vm2836_vm15, %v2831_v33, %v2833_v46  ;;  %v3049_v25 = vpop.permute.xlu1 %3048  ;;  %3905 = vrot.lane.b32.xlu0 %v7548_v47, %s6605_s6  ;;  %v3056_v50 = vsel %vm3052_vm0, %v3041_v17, %v7802_v15  ;;  %v7890_v17 = vld [vmem:[%s6727_s4 + $0x10] sm:$0xff]  ;;  %vm5639_vm15 = vcmask 605184  }
 0x21a   : > { %6209 = vmatmul.msk.bf16.vlgmr.msrb.gmra.mxu1 %vm251_vm2, %v7606_v22  ;;  %3689 = vrot.lane.b32.xlu2 %v7548_v47, %s6604_s15  ;;  %v2867_v44 = vsel %vm255_vm1, %v2843_v27, 0 }
 0x21b   : > { %2944 = vmatpush.bf16.msrb.mxu1 %v2864_v43 }
 0x21c   : > { %v3047_v29 = vpop.permute.xlu0 %3046 }
 0x21d   : > { %3907 = vrot.lane.b32.xlu1 %v7657_v19, %s6605_s6  ;;  %v4093_v19 = vunpack.c.l.b16 %v7890_v17  ;;  %v3059_v58 = vsel %vm3052_vm0, %v3047_v29, %v3049_v25 }
 0x21e   : > { %v1829_v59 = vpop.f32.mrf.mxu2 }
 0x21f   : > { %v1842_v60 = vpop.f32.mrf.mxu3  ;;  %v1853_v42 = vpop.f32.mrf.mxu0 }
 0x220   : > { %v1868_v55 = vpop.f32.mrf.mxu1  ;;  %v7812_v0 = vadd.f32 %v1853_v42, %v7721_v45  ;;  %v1704_v45 = vld [vmem:[%s7051_s20 + $0x38] sm:$0xff]  ;;  %v3037_v33 = vpop.permute.xlu2 %3036 }
 0x221   : > { %v3054_v46 = vsel %vm3052_vm0, %v3037_v33, %v7779_v11  ;;  %v3053_v21 = vsel %vm3052_vm0, %v3035_v3, %v3037_v33  ;;  %3903 = vrot.lane.b32.xlu0 %v7467_v5, %s6605_s6  ;;  %v4067_v55 = vld [vmem:[#allocation5 + $0x4] sm:$0xf] }
 0x222   : > { %6208 = vmatmul.msk.bf16.vlgmr.msrb.gmra.mxu0 %vm251_vm2, %v7606_v22  ;;  %3687 = vrot.lane.b32.xlu2 %v7467_v5, %s6604_s15  ;;  %v3065_v12 = vsel %vm255_vm1, %v3053_v21, 0  ;;  %v4082_v3 = vunpack.c.l.b16 %v4067_v55 }
 0x223   : > { %6210 = vmatmul.msk.bf16.vlgmr.msrb.gmra.mxu2 %vm251_vm2, %v7606_v22  ;;  %2931 = vmatpush.bf16.msrb.mxu0 %v2861_v13 }
 0x224   : > { %6211 = vmatmul.msk.bf16.vlgmr.msrb.gmra.mxu3 %vm251_vm2, %v7606_v22  ;;  %2957 = vmatpush.bf16.msrb.mxu2 %v2867_v44  ;;  %v3045_v53 = vpop.permute.xlu0 %3044 }
 0x225   : > { %2970 = vmatpush.bf16.msrb.mxu3 %v2870_v9  ;;  %v3057_v40 = vsel %vm3052_vm0, %v7802_v15, %v3045_v53  ;;  %v3083_v15 = vsel %vm255_vm1, %v3059_v58, 0 }
 0x226   : > { %v1879_v63 = vpop.f32.mrf.mxu2  ;;  %v3077_v48 = vsel %vm255_vm1, %v3057_v40, 0 }
 0x227   : > { %v1892_v57 = vpop.f32.mrf.mxu3  ;;  %v7833_v10 = vadd.f32 %v1879_v63, %v7743_v24  ;;  %v1855_v7 = vpop.f32.mrf.mxu0  ;;  %v3068_v24 = vsel %vm255_vm1, %v3054_v46, 0  ;;  %v4078_v63 = vld [vmem:[%s6727_s4 + $0x18] sm:$0xff] }
 0x228   : > { %v1903_v22 = vadd.f32 %v1892_v57, %v1704_v45  ;;  %v2030_v2 = vpop.f32.mrf.mxu1  ;;  %v4095_v7 = vunpack.c.l.b16 %v4078_v63 }
 0x229   : > { %v7836_v51 = vadd.f32 %v2030_v2, %v7746_v41 }
 0x22a   : > { %1911 = vst.msk [vmem:[%s7051_s20 + $0x38] sm:$0xff] %vm185_vm7, %v1903_v22  ;;  %6213 = vmatmul.msk.bf16.vlgmr.msra.gmra.mxu1 %vm251_vm2, %v7723_v54  ;;  %3901 = vrot.lane.b32.xlu2 %v7509_v30, %s6605_s6  ;;  %v3074_v30 = vsel %vm255_vm1, %v3056_v50, 0 }
 0x22b   : > { %3108 = vmatpush.bf16.msra.mxu1 %v3068_v24 }
 0x22c   : > { %v3051_v28 = vpop.permute.xlu2 %3050  ;;  %v7861_v4 = vpop.permute.xlu1 %3254 }
 0x22d   : > { %v3060_v27 = vsel %vm3052_vm0, %v3049_v25, %v3051_v28 }
 0x22e   : > { %v1881_v62 = vpop.f32.mrf.mxu2  ;;  %v3086_v6 = vsel %vm255_vm1, %v3060_v27, 0 }
 0x22f   : > { %v1894_v41 = vpop.f32.mrf.mxu3  ;;  %v2017_v26 = vpop.f32.mrf.mxu0 }
 0x230   : > { %v2032_v32 = vpop.f32.mrf.mxu1  ;;  %v7857_v47 = vadd.f32 %v2017_v26, %v7767_v34  ;;  %v3058_v34 = vsel %vm3052_vm0, %v3045_v53, %v3047_v29  ;;  %v7936_v29 = vpack.c.b16 %v4095_v7, %v4095_v7  ;;  %v7966_v53 = vld [vmem:[%s6727_s4 + $0x24] sm:$0xff]   ;;  %vm5855_vm0 = vcmask 596992  }
 0x231   : > { %v3080_v5 = vsel %vm255_vm1, %v3058_v34, 0  ;;  %v1920_v9 = vld [vmem:[%s7051_s20 + $0x38] sm:$0xff] }
 0x232   : > { %6212 = vmatmul.msk.bf16.vlgmr.msra.gmra.mxu0 %vm251_vm2, %v7723_v54  ;;  %3895 = vrot.lane.b32.xlu2 %v7571_v31, %s6605_s6  ;;  %v7954_v32 = vld [vmem:[%s6727_s4 + $0x8] sm:$0xff] }
 0x233   : > { %6214 = vmatmul.msk.bf16.vlgmr.msra.gmra.mxu2 %vm251_vm2, %v7723_v54  ;;  %3095 = vmatpush.bf16.msra.mxu0 %v3065_v12  ;;  %v4092_v12 = vunpack.c.h.b16 %v7954_v32 }
 0x234   : > { %6215 = vmatmul.msk.bf16.vlgmr.msra.gmra.mxu3 %vm251_vm2, %v7723_v54  ;;  %3121 = vmatpush.bf16.msra.mxu2 %v3071_v20  ;;  %v7887_v43 = vpop.permute.xlu2 %3256  ;;  %v7895_v31 = vpop.permute.xlu1 %3225 }
 0x235   : > { %3134 = vmatpush.bf16.msra.mxu3 %v3074_v30  ;;  %4117 = vrot.lane.b32.xlu0 %v7936_v29, %s6606_s5  ;;  %v3271_v21 = vsel %vm3268_vm3, %v7861_v4, %v7887_v43 }
 0x236   : > { %v2043_v14 = vpop.f32.mrf.mxu2  ;;  %v3287_v34 = vsel %vm255_vm1, %v3271_v21, 0 }
 0x237   : > { %v2056_v16 = vpop.f32.mrf.mxu3  ;;  %v7878_v11 = vadd.f32 %v2043_v14, %v7788_v23  ;;  %v2019_v18 = vpop.f32.mrf.mxu0  ;;  %v7897_v23 = vpack.c.b16 %v4093_v19, %v4093_v19 }
 0x238   : > { %v7881_v8 = vadd.f32 %v2056_v16, %v7791_v52  ;;  %v2082_v49 = vpop.f32.mrf.mxu1  ;;  %v7899_v52 = vpop.permute.xlu0 %3258  ;;  %v7970_v18 = vpack.c.b16 %v4092_v12, %v4092_v12 }
 0x239   : > { %v7884_v36 = vadd.f32 %v2082_v49, %v7794_v37  ;;  %4113 = vrot.lane.b32.xlu1 %v7897_v23, %s6606_s5  ;;  %v3272_v20 = vsel %vm3268_vm3, %v7887_v43, %v7899_v52  ;;  %v3883_v49 = vunpack.c.l.b16 %v7966_v53 }
 0x23a   : > { %6217 = vmatmul.msk.bf16.vlgmr.msrb.gmra.mxu1 %vm251_vm2, %v7723_v54 }
 0x23b   : > { %3160 = vmatpush.bf16.msrb.mxu1 %v3080_v5  ;;  %v3290_v5 = vsel %vm255_vm1, %v3272_v20, 0  ;;  %v3892_v43 = vpack.c.b16 %v3883_v49, %v3883_v49 }
 0x23c   : > { %v3251_v42 = vpop.permute.xlu2 %3250 }
 0x23d   : > { %v7919_v44 = vpop.permute.xlu1 %3262  ;;  %4111 = vrot.lane.b32.xlu0 %v7970_v18, %s6606_s5  ;;  %3909 = vrot.lane.b32.xlu2 %v3892_v43, %s6605_s6 }
 0x23e   : > { %v2045_v37 = vpop.f32.mrf.mxu2 }
 0x23f   : > { %v2058_v38 = vpop.f32.mrf.mxu3  ;;  %v2069_v59 = vpop.f32.mrf.mxu0 }
 0x240   : > { %v2084_v60 = vpop.f32.mrf.mxu1  ;;  %v7908_v61 = vadd.f32 %v2069_v59, %v7812_v0  ;;  %v4083_v0 = vpack.c.b16 %v4082_v3, %v4082_v3  ;;  %v3253_v33 = vpop.permute.xlu0 %3252  ;;  %v4094_v3 = vunpack.c.h.b16 %v7890_v17 }
 0x241   : > { %v3270_v46 = vsel %vm3268_vm3, %v3253_v33, %v7861_v4  ;;  %v3269_v26 = vsel %vm3268_vm3, %v3251_v42, %v3253_v33  ;;  %v4096_v4 = vunpack.c.h.b16 %v4078_v63 }
 0x242   : > { %6216 = vmatmul.msk.bf16.vlgmr.msrb.gmra.mxu0 %vm251_vm2, %v7723_v54  ;;  %4084 = vrot.lane.b32.xlu1 %v4083_v0, %s6577_s7  ;;  %v3284_v24 = vsel %vm255_vm1, %v3270_v46, 0  ;;  %v3281_v14 = vsel %vm255_vm1, %v3269_v26, 0  ;;  %s6607_s7 = smov 94  }
 0x243   : > { %6218 = vmatmul.msk.bf16.vlgmr.msrb.gmra.mxu2 %vm251_vm2, %v7723_v54  ;;  %3147 = vmatpush.bf16.msrb.mxu0 %v3077_v48  ;;  %v7982_v19 = vpack.c.b16 %v4096_v4, %v4096_v4 }
 0x244   : > { %6219 = vmatmul.msk.bf16.vlgmr.msrb.gmra.mxu3 %vm251_vm2, %v7723_v54  ;;  %3173 = vmatpush.bf16.msrb.mxu2 %v3083_v15  ;;  %v7934_v25 = vpop.permute.xlu2 %3264  ;;  %v4099_v15 = vunpack.c.h.b16 %v7716_v56 }
 0x245   : > { %3186 = vmatpush.bf16.msrb.mxu3 %v3086_v6  ;;  %v8007_v6 = vpack.c.b16 %v4094_v3, %v4094_v3  ;;  %v3275_v56 = vsel %vm3268_vm3, %v7919_v44, %v7934_v25 }
 0x246   : > { %v2095_v13 = vpop.f32.mrf.mxu2 }
 0x247   : > { %v2108_v35 = vpop.f32.mrf.mxu3  ;;  %v7925_v45 = vadd.f32 %v2095_v13, %v7833_v10  ;;  %v2071_v54 = vpop.f32.mrf.mxu0  ;;  %v7939_v10 = vld [vmem:[%s6727_s4 + $0x20] sm:$0xff]  ;;  %4115 = vrot.lane.b32.xlu2 %v8007_v6, %s6606_s5 }
 0x248   : > { %v2119_v57 = vadd.f32 %v2108_v35, %v1920_v9  ;;  %v2246_v22 = vpop.f32.mrf.mxu1  ;;  %v3261_v16 = vpop.permute.xlu1 %3260  ;;  %v4098_v20 = vunpack.c.h.b16 %v7939_v10 }
 0x249   : > { %v7928_v2 = vadd.f32 %v2246_v22, %v7836_v51  ;;  %v4097_v51 = vunpack.c.l.b16 %v7939_v10  ;;  %v3274_v37 = vsel %vm3268_vm3, %v3261_v16, %v7919_v44  ;;  %v3267_v48 = vpop.permute.xlu0 %3266  ;;  %v3273_v17 = vsel %vm3268_vm3, %v7899_v52, %v3261_v16 }
 0x24a   : > { %2127 = vst.msk [vmem:[%s7051_s20 + $0x38] sm:$0xff] %vm185_vm7, %v2119_v57  ;;  %6221 = vmatmul.msk.bf16.vlgmr.msra.gmra.mxu1 %vm251_vm2, %v7814_v1  ;;  %v3296_v55 = vsel %vm255_vm1, %v3274_v37, 0  ;;  %v3276_v63 = vsel %vm3268_vm3, %v7934_v25, %v3267_v48  ;;  %v4091_v44 = vunpack.c.l.b16 %v7954_v32  ;;  %v3299_v52 = vsel %vm255_vm1, %v3275_v56, 0  ;;  %v4283_v56 = vld [vmem:[#allocation5 + $0x4] sm:$0xf] }
 0x24b   : > { %3324 = vmatpush.bf16.msra.mxu1 %v3284_v24  ;;  %v7947_v62 = vpack.c.b16 %v4097_v51, %v4097_v51  ;;  %v3293_v22 = vsel %vm255_vm1, %v3273_v17, 0  ;;  %v3302_v7 = vsel %vm255_vm1, %v3276_v63, 0  ;;  %v4315_v17 = vunpack.c.h.b16 %v7966_v53 }
 0x24c   : > { %v8032_v33 = vpack.c.b16 %v4091_v44, %v4091_v44 }
 0x24d   : > { %4121 = vrot.lane.b32.xlu1 %v7947_v62, %s6606_s5 }
 0x24e   : > { %v2097_v41 = vpop.f32.mrf.mxu2 }
 0x24f   : > { %v2110_v39 = vpop.f32.mrf.mxu3  ;;  %v2233_v50 = vpop.f32.mrf.mxu0  ;;  %4109 = vrot.lane.b32.xlu2 %v8032_v33, %s6606_s5 }
 0x250   : > { %v2248_v28 = vpop.f32.mrf.mxu1  ;;  %v7963_v30 = vadd.f32 %v2233_v50, %v7857_v47  ;;  %v7980_v47 = vpop.permute.xlu2 %3470 }
 0x251   : > { %v3473_v54 = vpop.permute.xlu0 %3472  ;;  %v2136_v24 = vld [vmem:[%s7051_s20 + $0x38] sm:$0xff] }
 0x252   : > { %6220 = vmatmul.msk.bf16.vlgmr.msra.gmra.mxu0 %vm251_vm2, %v7814_v1  ;;  %v3487_v4 = vsel %vm3484_vm4, %v7980_v47, %v3473_v54 }
 0x253   : > { %6222 = vmatmul.msk.bf16.vlgmr.msra.gmra.mxu2 %vm251_vm2, %v7814_v1  ;;  %3311 = vmatpush.bf16.msra.mxu0 %v3281_v14  ;;  %v3503_v43 = vsel %vm255_vm1, %v3487_v4, 0 }
 0x254   : > { %6223 = vmatmul.msk.bf16.vlgmr.msra.gmra.mxu3 %vm251_vm2, %v7814_v1  ;;  %3337 = vmatpush.bf16.msra.mxu2 %v3287_v34 }
 0x255   : > { %3350 = vmatpush.bf16.msra.mxu3 %v3290_v5  ;;  %4119 = vrot.lane.b32.xlu1 %v7982_v19, %s6606_s5 }
 0x256   : > { %v2259_v38 = vpop.f32.mrf.mxu2 }
 0x257   : > { %v2272_v40 = vpop.f32.mrf.mxu3  ;;  %v7990_v58 = vadd.f32 %v2259_v38, %v7878_v11  ;;  %v2235_v60 = vpop.f32.mrf.mxu0 }
 0x258   : > { %v7993_v59 = vadd.f32 %v2272_v40, %v7881_v8  ;;  %v2298_v27 = vpop.f32.mrf.mxu1  ;;  %v8003_v11 = vpop.permute.xlu1 %3474  ;;  %v4108_v8 = vpack.c.b16 %v4099_v15, %v4099_v15 }
 0x259   : > { %v7998_v42 = vadd.f32 %v2298_v27, %v7884_v36  ;;  %v8009_v0 = vpop.permute.xlu2 %3441  ;;  %v3467_v32 = vpop.permute.xlu0 %3466  ;;  %v3488_v16 = vsel %vm3484_vm4, %v3473_v54, %v8003_v11 }
 0x25a   : > { %6225 = vmatmul.msk.bf16.vlgmr.msrb.gmra.mxu1 %vm251_vm2, %v7814_v1  ;;  %4125 = vrot.lane.b32.xlu0 %v4108_v8, %s6606_s5 }
 0x25b   : > { %3376 = vmatpush.bf16.msrb.mxu1 %v3296_v55 }
 0x25d   : > { %4333 = vrot.lane.b32.xlu1 %v7936_v29, %s6607_s7 }
 0x25e   : > { %v2261_v36 = vpop.f32.mrf.mxu2 }
 0x25f   : > { %v2274_v13 = vpop.f32.mrf.mxu3  ;;  %v2285_v9 = vpop.f32.mrf.mxu0 }
 0x260   : > { %v2300_v35 = vpop.f32.mrf.mxu1  ;;  %v8024_v57 = vadd.f32 %v2285_v9, %v7908_v61  ;;  %v3469_v46 = vpop.permute.xlu1 %3468  ;;  %v4298_v9 = vunpack.c.l.b16 %v4283_v56 }
 0x261   : > { %v3486_v61 = vsel %vm3484_vm4, %v3469_v46, %v7980_v47  ;;  %v3479_v28 = vpop.permute.xlu2 %3478  ;;  %v3485_v34 = vsel %vm3484_vm4, %v3467_v32, %v3469_v46  ;;  %v3481_v5 = vpop.permute.xlu0 %3480  ;;  %v3506_v47 = vsel %vm255_vm1, %v3488_v16, 0 }
 0x262   : > { %6224 = vmatmul.msk.bf16.vlgmr.msrb.gmra.mxu0 %vm251_vm2, %v7814_v1  ;;  %4331 = vrot.lane.b32.xlu0 %v8007_v6, %s6607_s7  ;;  %v3500_v50 = vsel %vm255_vm1, %v3486_v61, 0  ;;  %v3497_v37 = vsel %vm255_vm1, %v3485_v34, 0  ;;  %v3491_v54 = vsel %vm3484_vm4, %v3479_v28, %v3481_v5  ;;  %v4499_v61 = vld [vmem:[#allocation5 + $0x4] sm:$0xf] }
 0x263   : > { %6226 = vmatmul.msk.bf16.vlgmr.msrb.gmra.mxu2 %vm251_vm2, %v7814_v1  ;;  %3363 = vmatpush.bf16.msrb.mxu0 %v3293_v22 }
 0x264   : > { %6227 = vmatmul.msk.bf16.vlgmr.msrb.gmra.mxu3 %vm251_vm2, %v7814_v1  ;;  %3389 = vmatpush.bf16.msrb.mxu2 %v3299_v52 }
 0x265   : > { %3402 = vmatpush.bf16.msrb.mxu3 %v3302_v7  ;;  %4327 = vrot.lane.b32.xlu1 %v7970_v18, %s6607_s7 }
 0x266   : > { %v2311_v25 = vpop.f32.mrf.mxu2 }
 0x267   : > { %v2324_v51 = vpop.f32.mrf.mxu3  ;;  %v8046_v41 = vadd.f32 %v2311_v25, %v7925_v45  ;;  %v2287_v39 = vpop.f32.mrf.mxu0  ;;  %v8059_v45 = vpack.c.b16 %v4098_v20, %v4098_v20 }
 0x268   : > { %v2335_v1 = vadd.f32 %v2324_v51, %v2136_v24  ;;  %v2462_v21 = vpop.f32.mrf.mxu1  ;;  %v3483_v13 = vpop.permute.xlu1 %3482  ;;  %v3515_v24 = vsel %vm255_vm1, %v3491_v54, 0 }
 0x269   : > { %v8051_v26 = vadd.f32 %v2462_v21, %v7928_v2  ;;  %4123 = vrot.lane.b32.xlu2 %v8059_v45, %s6606_s5  ;;  %v3477_v38 = vpop.permute.xlu2 %3476  ;;  %v3682_v36 = vpop.permute.xlu0 %3681  ;;  %v3492_v22 = vsel %vm3484_vm4, %v3481_v5, %v3483_v13 }
 0x26a   : > { %2343 = vst.msk [vmem:[%s7051_s20 + $0x38] sm:$0xff] %vm185_vm7, %v2335_v1  ;;  %6229 = vmatmul.msk.bf16.vlgmr.msra.gmra.mxu1 %vm251_vm2, %v7895_v31  ;;  %4325 = vrot.lane.b32.xlu0 %v8032_v33, %s6607_s7  ;;  %v3489_v53 = vsel %vm3484_vm4, %v8003_v11, %v3477_v38  ;;  %v4514_v11 = vunpack.c.l.b16 %v4499_v61  ;;  %v3518_v1 = vsel %vm255_vm1, %v3492_v22, 0 }
 0x26b   : > { %3540 = vmatpush.bf16.msra.mxu1 %v3500_v50  ;;  %v3509_v25 = vsel %vm255_vm1, %v3489_v53, 0 }
 0x26e   : > { %v2313_v12 = vpop.f32.mrf.mxu2 }
 0x26f   : > { %v2326_v2 = vpop.f32.mrf.mxu3  ;;  %v2449_v10 = vpop.f32.mrf.mxu0 }
 0x270   : > { %v2464_v14 = vpop.f32.mrf.mxu1  ;;  %v8071_v49 = vadd.f32 %v2449_v10, %v7963_v30  ;;  %v3490_v30 = vsel %vm3484_vm4, %v3477_v38, %v3479_v28  ;;  %v3684_v46 = vpop.permute.xlu1 %3683 }
 0x271   : > { %4329 = vrot.lane.b32.xlu2 %v7897_v23, %s6607_s7  ;;  %v3512_v8 = vsel %vm255_vm1, %v3490_v30, 0  ;;  %v8100_v35 = vpop.permute.xlu2 %3685  ;;  %v3678_v51 = vpop.permute.xlu0 %3677  ;;  %v2352_v32 = vld [vmem:[%s7051_s20 + $0x38] sm:$0xff] }
 0x272   : > { %6228 = vmatmul.msk.bf16.vlgmr.msra.gmra.mxu0 %vm251_vm2, %v7895_v31  ;;  %4339 = vrot.lane.b32.xlu0 %v8059_v45, %s6607_s7  ;;  %v3699_v5 = vsel %vm3695_vm5, %v3684_v46, %v8100_v35 }
 0x273   : > { %6230 = vmatmul.msk.bf16.vlgmr.msra.gmra.mxu2 %vm251_vm2, %v7895_v31  ;;  %3527 = vmatpush.bf16.msra.mxu0 %v3497_v37 }
 0x274   : > { %6231 = vmatmul.msk.bf16.vlgmr.msra.gmra.mxu3 %vm251_vm2, %v7895_v31  ;;  %3553 = vmatpush.bf16.msra.mxu2 %v3503_v43 }
 0x275   : > { %3566 = vmatpush.bf16.msra.mxu3 %v3506_v47 }
 0x276   : > { %v2475_v40 = vpop.f32.mrf.mxu2 }
 0x277   : > { %v2488_v60 = vpop.f32.mrf.mxu3  ;;  %v8088_v27 = vadd.f32 %v2475_v40, %v7990_v58  ;;  %v2451_v48 = vpop.f32.mrf.mxu0  ;;  %v4324_v58 = vpack.c.b16 %v4315_v17, %v4315_v17 }
 0x278   : > { %v8091_v55 = vadd.f32 %v2488_v60, %v7993_v59  ;;  %v2514_v15 = vpop.f32.mrf.mxu1  ;;  %v4299_v59 = vpack.c.b16 %v4298_v9, %v4298_v9  ;;  %v3680_v4 = vpop.permute.xlu1 %3679  ;;  %v3717_v60 = vsel %vm255_vm1, %v3699_v5, 0 }
 0x279   : > { %v8094_v3 = vadd.f32 %v2514_v15, %v7998_v42  ;;  %4341 = vrot.lane.b32.xlu1 %v4324_v58, %s6607_s7  ;;  %v8122_v39 = vpop.permute.xlu2 %3689  ;;  %v3697_v34 = vsel %vm3695_vm5, %v3680_v4, %v3682_v36  ;;  %v3692_v14 = vpop.permute.xlu0 %3691  ;;  %v3696_v47 = vsel %vm3695_vm5, %v3678_v51, %v3680_v4  ;;  %v8222_v4 = vld [vmem:[#allocation5 + $0x4] sm:$0xf] }
 0x27a   : > { %6233 = vmatmul.msk.bf16.vlgmr.msrb.gmra.mxu1 %vm251_vm2, %v7895_v31  ;;  %4545 = vrot.lane.b32.xlu0 %v7897_v23, %s6608_s8  ;;  %v3711_v10 = vsel %vm255_vm1, %v3697_v34, 0  ;;  %v3708_v15 = vsel %vm255_vm1, %v3696_v47, 0  ;;  %v3702_v54 = vsel %vm3695_vm5, %v8122_v39, %v3692_v14 }
 0x27b   : > { %3592 = vmatpush.bf16.msrb.mxu1 %v3512_v8  ;;  %4300 = vrot.lane.b32.xlu2 %v4299_v59, %s6579_s14  ;;  %s6609_s14 = smov 85   ;;  %v3726_v51 = vsel %vm255_vm1, %v3702_v54, 0 }
 0x27e   : > { %v2477_v42 = vpop.f32.mrf.mxu2 }
 0x27f   : > { %v2490_v63 = vpop.f32.mrf.mxu3  ;;  %v2501_v44 = vpop.f32.mrf.mxu0 }
 0x280   : > { %v2516_v52 = vpop.f32.mrf.mxu1  ;;  %v8111_v7 = vadd.f32 %v2501_v44, %v8024_v57  ;;  %v4515_v57 = vpack.c.b16 %v4514_v11, %v4514_v11  ;;  %v3694_v30 = vpop.permute.xlu1 %3693 }
 0x281   : > { %4547 = vrot.lane.b32.xlu1 %v8007_v6, %s6608_s8  ;;  %v3688_v48 = vpop.permute.xlu2 %3687  ;;  %v8166_v8 = vpop.permute.xlu0 %3897  ;;  %v3703_v22 = vsel %vm3695_vm5, %v3692_v14, %v3694_v30 }
 0x282   : > { %6232 = vmatmul.msk.bf16.vlgmr.msrb.gmra.mxu0 %vm251_vm2, %v7895_v31  ;;  %4516 = vrot.lane.b32.xlu0 %v4515_v57, %s6581_s18  ;;  %s6610_s18 = smov 84  }
 0x283   : > { %6234 = vmatmul.msk.bf16.vlgmr.msrb.gmra.mxu2 %vm251_vm2, %v7895_v31  ;;  %3579 = vmatpush.bf16.msrb.mxu0 %v3509_v25 }
 0x284   : > { %6235 = vmatmul.msk.bf16.vlgmr.msrb.gmra.mxu3 %vm251_vm2, %v7895_v31  ;;  %3605 = vmatpush.bf16.msrb.mxu2 %v3515_v24  ;;  %v4715_v24 = vld [vmem:[#allocation5 + $0x4] sm:$0xf] }
 0x285   : > { %3618 = vmatpush.bf16.msrb.mxu3 %v3518_v1  ;;  %4337 = vrot.lane.b32.xlu2 %v7947_v62, %s6607_s7  ;;  %v4730_v11 = vunpack.c.l.b16 %v4715_v24  ;;  %v3729_v1 = vsel %vm255_vm1, %v3703_v22, 0 }
 0x286   : > { %v2527_v21 = vpop.f32.mrf.mxu2 }
 0x287   : > { %v2540_v50 = vpop.f32.mrf.mxu3  ;;  %v8131_v31 = vadd.f32 %v2527_v21, %v8046_v41  ;;  %v2503_v20 = vpop.f32.mrf.mxu0 }
 0x288   : > { %v2551_v28 = vadd.f32 %v2540_v50, %v2352_v32  ;;  %v2678_v12 = vpop.f32.mrf.mxu1  ;;  %v3900_v63 = vpop.permute.xlu1 %3899 }
 0x289   : > { %v8134_v2 = vadd.f32 %v2678_v12, %v8051_v26  ;;  %v3698_v26 = vsel %vm3695_vm5, %v3682_v36, %v3684_v46  ;;  %4541 = vrot.lane.b32.xlu1 %v8032_v33, %s6608_s8  ;;  %v8184_v53 = vpop.permute.xlu2 %3901  ;;  %v8202_v61 = vpop.permute.xlu0 %3868 }
 0x28a   : > { %2559 = vst.msk [vmem:[%s7051_s20 + $0x38] sm:$0xff] %vm185_vm7, %v2551_v28  ;;  %6237 = vmatmul.msk.bf16.vlgmr.msra.gmra.mxu1 %vm251_vm2, %v8009_v0  ;;  %4553 = vrot.lane.b32.xlu0 %v7947_v62, %s6608_s8  ;;  %v3714_v40 = vsel %vm255_vm1, %v3698_v26, 0  ;;  %v3914_v26 = vsel %vm3911_vm6, %v8166_v8, %v3900_v63 }
 0x28b   : > { %3751 = vmatpush.bf16.msra.mxu1 %v3711_v10 }
 0x28d   : > { %4335 = vrot.lane.b32.xlu2 %v7982_v19, %s6607_s7 }
 0x28e   : > { %v2529_v41 = vpop.f32.mrf.mxu2 }
 0x28f   : > { %v2542_v16 = vpop.f32.mrf.mxu3  ;;  %v2665_v43 = vpop.f32.mrf.mxu0 }
 0x290   : > { %v2680_v37 = vpop.f32.mrf.mxu1  ;;  %v8153_v38 = vadd.f32 %v2665_v43, %v8071_v49  ;;  %v3701_v49 = vsel %vm3695_vm5, %v3688_v48, %v8122_v39  ;;  %v3894_v25 = vpop.permute.xlu1 %3893 }
 0x291   : > { %4555 = vrot.lane.b32.xlu1 %v8059_v45, %s6608_s8  ;;  %v3723_v42 = vsel %vm255_vm1, %v3701_v49, 0  ;;  %v3896_v57 = vpop.permute.xlu2 %3895  ;;  %v2568_v32 = vld [vmem:[%s7051_s20 + $0x38] sm:$0xff]  ;;  %v3906_v41 = vpop.permute.xlu0 %3905  ;;  %v3915_v37 = vsel %vm3911_vm6, %v3900_v63, %v8184_v53 }
 0x292   : > { %6236 = vmatmul.msk.bf16.vlgmr.msra.gmra.mxu0 %vm251_vm2, %v8009_v0  ;;  %4551 = vrot.lane.b32.xlu0 %v7982_v19, %s6608_s8  ;;  %v3913_v39 = vsel %vm3911_vm6, %v3896_v57, %v8166_v8  ;;  %v3912_v5 = vsel %vm3911_vm6, %v3894_v25, %v3896_v57  ;;  %v3933_v8 = vsel %vm255_vm1, %v3915_v37, 0 }
 0x293   : > { %6238 = vmatmul.msk.bf16.vlgmr.msra.gmra.mxu2 %vm251_vm2, %v8009_v0  ;;  %3738 = vmatpush.bf16.msra.mxu0 %v3708_v15  ;;  %v3927_v10 = vsel %vm255_vm1, %v3913_v39, 0 }
 0x294   : > { %6239 = vmatmul.msk.bf16.vlgmr.msra.gmra.mxu3 %vm251_vm2, %v8009_v0  ;;  %3764 = vmatpush.bf16.msra.mxu2 %v3714_v40  ;;  %v4512_v40 = vld [vmem:[%s6727_s4 + $0x28] sm:$0xf] }
 0x295   : > { %3777 = vmatpush.bf16.msra.mxu3 %v3717_v60  ;;  %4549 = vrot.lane.b32.xlu2 %v7936_v29, %s6608_s8  ;;  %v3930_v60 = vsel %vm255_vm1, %v3914_v26, 0  ;;  %v4531_v49 = vunpack.c.l.b16 %v4512_v40 }
 0x296   : > { %v2691_v36 = vpop.f32.mrf.mxu2 }
 0x297   : > { %v2704_v13 = vpop.f32.mrf.mxu3  ;;  %v8175_v56 = vadd.f32 %v2691_v36, %v8088_v27  ;;  %v2667_v9 = vpop.f32.mrf.mxu0 }
 0x298   : > { %v8178_v17 = vadd.f32 %v2704_v13, %v8091_v55  ;;  %v2730_v58 = vpop.f32.mrf.mxu1  ;;  %v3908_v14 = vpop.permute.xlu1 %3907 }
 0x299   : > { %v8181_v59 = vadd.f32 %v2730_v58, %v8094_v3  ;;  %v3700_v3 = vsel %vm3695_vm5, %v8100_v35, %v3688_v48  ;;  %4761 = vrot.lane.b32.xlu1 %v7897_v23, %s6609_s14  ;;  %v3910_v30 = vpop.permute.xlu2 %3909  ;;  %v3924_v48 = vsel %vm255_vm1, %v3912_v5, 0  ;;  %v3904_v36 = vpop.permute.xlu0 %3903 }
 0x29a   : > { %6241 = vmatmul.msk.bf16.vlgmr.msrb.gmra.mxu1 %vm251_vm2, %v8009_v0  ;;  %4765 = vrot.lane.b32.xlu0 %v7936_v29, %s6609_s14  ;;  %v3720_v35 = vsel %vm255_vm1, %v3700_v3, 0  ;;  %v3917_v13 = vsel %vm3911_vm6, %v3904_v36, %v3906_v41  ;;  %v3919_v57 = vsel %vm3911_vm6, %v3908_v14, %v3910_v30 }
 0x29b   : > { %3803 = vmatpush.bf16.msrb.mxu1 %v3723_v42  ;;  %v3939_v3 = vsel %vm255_vm1, %v3917_v13, 0 }
 0x29d   : > { %4543 = vrot.lane.b32.xlu2 %v7970_v18, %s6608_s8 }
 0x29e   : > { %v2693_v27 = vpop.f32.mrf.mxu2 }
 0x29f   : > { %v2706_v55 = vpop.f32.mrf.mxu3  ;;  %v2717_v44 = vpop.f32.mrf.mxu0 }
 0x2a0   : > { %v2732_v52 = vpop.f32.mrf.mxu1  ;;  %v8200_v46 = vadd.f32 %v2717_v44, %v8111_v7  ;;  %v4731_v7 = vpack.c.b16 %v4730_v11, %v4730_v11 }
 0x2a1   : > { %v4116_v44 = vpop.permute.xlu2 %4115  ;;  %v4728_v52 = vld [vmem:[%s6727_s4 + $0x28] sm:$0xf] }
 0x2a2   : > { %6240 = vmatmul.msk.bf16.vlgmr.msrb.gmra.mxu0 %vm251_vm2, %v8009_v0  ;;  %4759 = vrot.lane.b32.xlu0 %v7970_v18, %s6609_s14  ;;  %v4747_v22 = vunpack.c.l.b16 %v4728_v52 }
 0x2a3   : > { %6242 = vmatmul.msk.bf16.vlgmr.msrb.gmra.mxu2 %vm251_vm2, %v8009_v0  ;;  %3790 = vmatpush.bf16.msrb.mxu0 %v3720_v35  ;;  %v3918_v35 = vsel %vm3911_vm6, %v3906_v41, %v3908_v14 }
 0x2a4   : > { %6243 = vmatmul.msk.bf16.vlgmr.msrb.gmra.mxu3 %vm251_vm2, %v8009_v0  ;;  %3816 = vmatpush.bf16.msrb.mxu2 %v3726_v51  ;;  %v3916_v51 = vsel %vm3911_vm6, %v8184_v53, %v3904_v36  ;;  %v3945_v53 = vsel %vm255_vm1, %v3919_v57, 0 }
 0x2a5   : > { %3829 = vmatpush.bf16.msrb.mxu3 %v3729_v1  ;;  %4732 = vrot.lane.b32.xlu1 %v4731_v7, %s6583_s21  ;;  %s6611_s21 = smov 83  }
 0x2a6   : > { %v2743_v21 = vpop.f32.mrf.mxu2 }
 0x2a7   : > { %v2756_v50 = vpop.f32.mrf.mxu3  ;;  %v8220_v28 = vadd.f32 %v2743_v21, %v8131_v31  ;;  %v2719_v20 = vpop.f32.mrf.mxu0  ;;  %v3936_v21 = vsel %vm255_vm1, %v3916_v51, 0 }
 0x2a8   : > { %v2767_v0 = vadd.f32 %v2756_v50, %v2568_v32  ;;  %v2894_v12 = vpop.f32.mrf.mxu1  ;;  %v3942_v32 = vsel %vm255_vm1, %v3918_v35, 0 }
 0x2a9   : > { %v8225_v34 = vadd.f32 %v2894_v12, %v8134_v2  ;;  %v4110_v39 = vpop.permute.xlu2 %4109 }
 0x2aa   : > { %2775 = vst.msk [vmem:[%s7051_s20 + $0x38] sm:$0xff] %vm185_vm7, %v2767_v0  ;;  %6245 = vmatmul.msk.bf16.vlgmr.msra.gmra.mxu1 %vm251_vm2, %v8222_v4 }
 0x2ab   : > { %3967 = vmatpush.bf16.msra.mxu1 %v3927_v10  ;;  %v8245_v15 = vpop.permute.xlu1 %4113 }
 0x2ad   : > { %4769 = vrot.lane.b32.xlu1 %v7947_v62, %s6609_s14 }
 0x2ae   : > { %v2745_v31 = vpop.f32.mrf.mxu2 }
 0x2af   : > { %v2758_v16 = vpop.f32.mrf.mxu3  ;;  %v2881_v2 = vpop.f32.mrf.mxu0 }
 0x2b0   : > { %v2896_v43 = vpop.f32.mrf.mxu1  ;;  %v8240_v47 = vadd.f32 %v2881_v2, %v8153_v38  ;;  %v4540_v38 = vpack.c.b16 %v4531_v49, %v4531_v49  ;;  %v4130_v16 = vsel %vm4127_vm8, %v8245_v15, %v4116_v44 }
 0x2b1   : > { %v2784_v50 = vld [vmem:[%s7051_s20 + $0x38] sm:$0xff] }
 0x2b2   : > { %6244 = vmatmul.msk.bf16.vlgmr.msra.gmra.mxu0 %vm251_vm2, %v8222_v4  ;;  %4557 = vrot.lane.b32.xlu2 %v4540_v38, %s6608_s8  ;;  %s6520_s8 = scalar_lea.hbm %s9109_s2, 128 }
 0x2b3   : > { %6246 = vmatmul.msk.bf16.vlgmr.msra.gmra.mxu2 %vm251_vm2, %v8222_v4  ;;  %3954 = vmatpush.bf16.msra.mxu0 %v3924_v48 }
 0x2b4   : > { %6247 = vmatmul.msk.bf16.vlgmr.msra.gmra.mxu3 %vm251_vm2, %v8222_v4  ;;  %3980 = vmatpush.bf16.msra.mxu2 %v3930_v60  ;;  %v8271_v25 = vpop.permute.xlu1 %4084 }
 0x2b5   : > { %3993 = vmatpush.bf16.msra.mxu3 %v3933_v8  ;;  %4767 = vrot.lane.b32.xlu1 %v7982_v19, %s6609_s14 }
 0x2b6   : > { %v2907_v9 = vpop.f32.mrf.mxu2 }
 0x2b7   : > { %v2920_v58 = vpop.f32.mrf.mxu3  ;;  %v8259_v42 = vadd.f32 %v2907_v9, %v8175_v56  ;;  %v2883_v27 = vpop.f32.mrf.mxu0  ;;  %v4756_v56 = vpack.c.b16 %v4747_v22, %v4747_v22 }
 0x2b8   : > { %v8262_v63 = vadd.f32 %v2920_v58, %v8178_v17  ;;  %v2946_v55 = vpop.f32.mrf.mxu1  ;;  %v8276_v17 = vpop.permute.xlu0 %4117 }
 0x2b9   : > { %v8265_v54 = vadd.f32 %v2946_v55, %v8181_v59  ;;  %4773 = vrot.lane.b32.xlu0 %v4756_v56, %s6609_s14  ;;  %v4131_v43 = vsel %vm4127_vm8, %v4116_v44, %v8276_v17  ;;  %v4944_v44 = vld [vmem:[%s6727_s4 + $0x28] sm:$0xf] }
 0x2ba   : > { %6249 = vmatmul.msk.bf16.vlgmr.msrb.gmra.mxu1 %vm251_vm2, %v8222_v4  ;;  %4763 = vrot.lane.b32.xlu2 %v8007_v6, %s6609_s14  ;;  %v4963_v22 = vunpack.c.l.b16 %v4944_v44 }
 0x2bb   : > { %4019 = vmatpush.bf16.msrb.mxu1 %v3939_v3  ;;  %v4931_v3 = vld [vmem:[#allocation5 + $0x4] sm:$0xf] }
 0x2bd   : > { %4981 = vrot.lane.b32.xlu1 %v7936_v29, %s6610_s18 }
 0x2be   : > { %v2909_v59 = vpop.f32.mrf.mxu2 }
 0x2bf   : > { %v2922_v24 = vpop.f32.mrf.mxu3  ;;  %v2933_v11 = vpop.f32.mrf.mxu0  ;;  %v4972_v59 = vpack.c.b16 %v4963_v22, %v4963_v22 }
 0x2c0   : > { %v2948_v1 = vpop.f32.mrf.mxu1  ;;  %v8285_v7 = vadd.f32 %v2933_v11, %v8200_v46  ;;  %v8296_v29 = vpop.permute.xlu1 %4121 }
 0x2c1   : > { %4979 = vrot.lane.b32.xlu0 %v8007_v6, %s6610_s18  ;;  %v4112_v6 = vpop.permute.xlu0 %4111 }
 0x2c2   : > { %6248 = vmatmul.msk.bf16.vlgmr.msrb.gmra.mxu0 %vm251_vm2, %v8222_v4  ;;  %4757 = vrot.lane.b32.xlu2 %v8032_v33, %s6609_s14  ;;  %v4129_v31 = vsel %vm4127_vm8, %v4112_v6, %v8245_v15  ;;  %v4128_v26 = vsel %vm4127_vm8, %v4110_v39, %v4112_v6  ;;  %v4149_v15 = vsel %vm255_vm1, %v4131_v43, 0  ;;  %v5159_v43 = vld [vmem:[%s6727_s4 + $0x20] sm:$0xff] }
 0x2c3   : > { %6250 = vmatmul.msk.bf16.vlgmr.msrb.gmra.mxu2 %vm251_vm2, %v8222_v4  ;;  %4006 = vmatpush.bf16.msrb.mxu0 %v3936_v21  ;;  %v8311_v41 = vpop.permute.xlu2 %4123  ;;  %v4140_v40 = vsel %vm255_vm1, %v4128_v26, 0 }
 0x2c4   : > { %6251 = vmatmul.msk.bf16.vlgmr.msrb.gmra.mxu3 %vm251_vm2, %v8222_v4  ;;  %4032 = vmatpush.bf16.msrb.mxu2 %v3942_v32  ;;  %v4134_v35 = vsel %vm4127_vm8, %v8296_v29, %v8311_v41 }
 0x2c5   : > { %4045 = vmatpush.bf16.msrb.mxu3 %v3945_v53  ;;  %4975 = vrot.lane.b32.xlu1 %v7970_v18, %s6610_s18  ;;  %v4143_v18 = vsel %vm255_vm1, %v4129_v31, 0  ;;  %v5147_v53 = vld [vmem:[#allocation5 + $0x4] sm:$0xf] }
 0x2c6   : > { %v2959_v46 = vpop.f32.mrf.mxu2 }
 0x2c7   : > { %v2972_v0 = vpop.f32.mrf.mxu3  ;;  %v8306_v20 = vadd.f32 %v2959_v46, %v8220_v28  ;;  %v2935_v4 = vpop.f32.mrf.mxu0 }
 0x2c8   : > { %v2983_v12 = vadd.f32 %v2972_v0, %v2784_v50  ;;  %v3110_v10 = vpop.f32.mrf.mxu1  ;;  %v4120_v60 = vpop.permute.xlu1 %4119  ;;  %v4158_v50 = vsel %vm255_vm1, %v4134_v35, 0  ;;  %v5162_v0 = vunpack.c.l.b16 %v5147_v53 }
 0x2c9   : > { %v8309_v14 = vadd.f32 %v3110_v10, %v8225_v34  ;;  %4973 = vrot.lane.b32.xlu0 %v8032_v33, %s6610_s18  ;;  %v4146_v33 = vsel %vm255_vm1, %v4130_v16, 0  ;;  %v4132_v11 = vsel %vm4127_vm8, %v8276_v17, %v4120_v60 }
 0x2ca   : > { %2991 = vst.msk [vmem:[%s7051_s20 + $0x38] sm:$0xff] %vm185_vm7, %v2983_v12  ;;  %6253 = vmatmul.msk.bf16.vlgmr.msra.gmra.mxu1 %vm251_vm2, %v8202_v61  ;;  %4771 = vrot.lane.b32.xlu2 %v8059_v45, %s6609_s14 }
 0x2cb   : > { %4183 = vmatpush.bf16.msra.mxu1 %v4143_v18  ;;  %v8334_v48 = vpop.permute.xlu2 %4329 }
 0x2cc   : > { %v4126_v30 = vpop.permute.xlu0 %4125 }
 0x2cd   : > { %4989 = vrot.lane.b32.xlu1 %v4972_v59, %s6610_s18  ;;  %v4135_v39 = vsel %vm4127_vm8, %v8311_v41, %v4126_v30  ;;  %v8417_v30 = vld [vmem:[%s6727_s4 + $0x8] sm:$0xff] }
 0x2ce   : > { %v2961_v28 = vpop.f32.mrf.mxu2  ;;  %v4161_v17 = vsel %vm255_vm1, %v4135_v39, 0 }
 0x2cf   : > { %v2974_v34 = vpop.f32.mrf.mxu3  ;;  %v3097_v5 = vpop.f32.mrf.mxu0 }
 0x2d0   : > { %v3112_v2 = vpop.f32.mrf.mxu1  ;;  %v8330_v37 = vadd.f32 %v3097_v5, %v8240_v47  ;;  %v4133_v47 = vsel %vm4127_vm8, %v4120_v60, %v8296_v29  ;;  %v4152_v29 = vsel %vm255_vm1, %v4132_v11, 0 }
 0x2d1   : > { %4987 = vrot.lane.b32.xlu0 %v8059_v45, %s6610_s18  ;;  %v4155_v27 = vsel %vm255_vm1, %v4133_v47, 0  ;;  %v5157_v45 = vld [vmem:[%s6727_s4 + $0x10] sm:$0xff] }
 0x2d2   : > { %6252 = vmatmul.msk.bf16.vlgmr.msra.gmra.mxu0 %vm251_vm2, %v8202_v61  ;;  %4977 = vrot.lane.b32.xlu2 %v7897_v23, %s6610_s18  ;;  %v5173_v52 = vunpack.c.l.b16 %v5157_v45  ;;  %v4946_v23 = vunpack.c.l.b16 %v4931_v3  ;;  %v5174_v46 = vunpack.c.h.b16 %v5157_v45  ;;  %v3000_v31 = vld [vmem:[%s7051_s20 + $0x38] sm:$0xff]  ;;  %v5178_v45 = vunpack.c.h.b16 %v5159_v43 }
 0x2d3   : > { %6254 = vmatmul.msk.bf16.vlgmr.msra.gmra.mxu2 %vm251_vm2, %v8202_v61  ;;  %4170 = vmatpush.bf16.msra.mxu0 %v4140_v40 }
 0x2d4   : > { %6255 = vmatmul.msk.bf16.vlgmr.msra.gmra.mxu3 %vm251_vm2, %v8202_v61  ;;  %4196 = vmatpush.bf16.msra.mxu2 %v4146_v33  ;;  %v8359_v55 = vpop.permute.xlu0 %4331  ;;  %v4947_v56 = vpack.c.b16 %v4946_v23, %v4946_v23  ;;  %v8390_v12 = vpack.c.b16 %v5174_v46, %v5174_v46  ;;  %v8456_v22 = vpack.c.b16 %v5178_v45, %v5178_v45 }
 0x2d5   : > { %4209 = vmatpush.bf16.msra.mxu3 %v4149_v15  ;;  %v4346_v15 = vsel %vm4343_vm9, %v8334_v48, %v8359_v55 }
 0x2d6   : > { %v3123_v49 = vpop.f32.mrf.mxu2  ;;  %5195 = vrot.lane.b32.xlu1 %v8390_v12, %s6611_s21  ;;  %v4362_v3 = vsel %vm255_vm1, %v4346_v15, 0  ;;  %v5172_v15 = vunpack.c.h.b16 %v8417_v30 }
 0x2d7   : > { %v3136_v8 = vpop.f32.mrf.mxu3  ;;  %v8350_v38 = vadd.f32 %v3123_v49, %v8259_v42  ;;  %v3099_v13 = vpop.f32.mrf.mxu0 }
 0x2d8   : > { %v8353_v36 = vadd.f32 %v3136_v8, %v8262_v63  ;;  %v3162_v9 = vpop.f32.mrf.mxu1  ;;  %v8363_v42 = vpop.permute.xlu1 %4333 }
 0x2d9   : > { %v8356_v58 = vadd.f32 %v3162_v9, %v8265_v54  ;;  %v8367_v63 = vpop.permute.xlu2 %4300  ;;  %v8369_v54 = vpack.c.b16 %v5173_v52, %v5173_v52  ;;  %v4347_v13 = vsel %vm4343_vm9, %v8359_v55, %v8363_v42 }
 0x2da   : > { %6257 = vmatmul.msk.bf16.vlgmr.msrb.gmra.mxu1 %vm251_vm2, %v8202_v61  ;;  %4948 = vrot.lane.b32.xlu2 %v4947_v56, %s6585_s24  ;;  %v4365_v55 = vsel %vm255_vm1, %v4347_v13, 0  ;;  %s6612_s24 = smov 75   ;;  %v8521_v13 = vpack.c.b16 %v5172_v15, %v5172_v15 }
 0x2db   : > { %4235 = vmatpush.bf16.msrb.mxu1 %v4155_v27  ;;  %5193 = vrot.lane.b32.xlu0 %v8369_v54, %s6611_s21  ;;  %v5158_v27 = vld [vmem:[%s6727_s4 + $0x18] sm:$0xff] }
 0x2dc   : > { %v4326_v32 = vpop.permute.xlu0 %4325  ;;  %v5176_v23 = vunpack.c.h.b16 %v5158_v27 }
 0x2de   : > { %v3125_v24 = vpop.f32.mrf.mxu2 }
 0x2df   : > { %v3138_v51 = vpop.f32.mrf.mxu3  ;;  %v3149_v1 = vpop.f32.mrf.mxu0 }
 0x2e0   : > { %v3164_v57 = vpop.f32.mrf.mxu1  ;;  %v8383_v21 = vadd.f32 %v3149_v1, %v8285_v7  ;;  %v4328_v4 = vpop.permute.xlu1 %4327  ;;  %v5163_v7 = vpack.c.b16 %v5162_v0, %v5162_v0 }
 0x2e1   : > { %v8396_v10 = vpop.permute.xlu2 %4337  ;;  %v4345_v6 = vsel %vm4343_vm9, %v4328_v4, %v8334_v48  ;;  %v4344_v47 = vsel %vm4343_vm9, %v4326_v32, %v4328_v4 }
 0x2e2   : > { %6256 = vmatmul.msk.bf16.vlgmr.msrb.gmra.mxu0 %vm251_vm2, %v8202_v61  ;;  %4985 = vrot.lane.b32.xlu2 %v7947_v62, %s6610_s18  ;;  %v4359_v5 = vsel %vm255_vm1, %v4345_v6, 0  ;;  %v5177_v62 = vunpack.c.l.b16 %v5159_v43  ;;  %v4356_v44 = vsel %vm255_vm1, %v4344_v47, 0 }
 0x2e3   : > { %6258 = vmatmul.msk.bf16.vlgmr.msrb.gmra.mxu2 %vm251_vm2, %v8202_v61  ;;  %4222 = vmatpush.bf16.msrb.mxu0 %v4152_v29  ;;  %v5175_v29 = vunpack.c.l.b16 %v5158_v27 }
 0x2e4   : > { %6259 = vmatmul.msk.bf16.vlgmr.msrb.gmra.mxu3 %vm251_vm2, %v8202_v61  ;;  %4248 = vmatpush.bf16.msrb.mxu2 %v4158_v50  ;;  %v4340_v2 = vpop.permute.xlu0 %4339  ;;  %v8422_v33 = vpack.c.b16 %v5177_v62, %v5177_v62 }
 0x2e5   : > { %4261 = vmatpush.bf16.msrb.mxu3 %v4161_v17  ;;  %5164 = vrot.lane.b32.xlu0 %v5163_v7, %s6587_s29  ;;  %v4350_v50 = vsel %vm4343_vm9, %v8396_v10, %v4340_v2  ;;  %s6613_s29 = smov 74  }
 0x2e6   : > { %v3175_v41 = vpop.f32.mrf.mxu2 }
 0x2e7   : > { %v3188_v18 = vpop.f32.mrf.mxu3  ;;  %v8407_v61 = vadd.f32 %v3175_v41, %v8306_v20  ;;  %v3151_v34 = vpop.f32.mrf.mxu0  ;;  %v5171_v20 = vunpack.c.l.b16 %v8417_v30  ;;  %v8490_v41 = vpack.c.b16 %v5175_v29, %v5175_v29 }
 0x2e8   : > { %v3199_v28 = vadd.f32 %v3188_v18, %v3000_v31  ;;  %v3326_v16 = vpop.f32.mrf.mxu1  ;;  %v5363_v31 = vld [vmem:[#allocation5 + $0x4] sm:$0xf] }
 0x2e9   : > { %v8410_v26 = vadd.f32 %v3326_v16, %v8309_v14  ;;  %v8424_v14 = vpack.c.b16 %v5171_v20, %v5171_v20  ;;  %v5378_v18 = vunpack.c.l.b16 %v5363_v31 }
 0x2ea   : > { %3207 = vst.msk [vmem:[%s7051_s20 + $0x38] sm:$0xff] %vm185_vm7, %v3199_v28  ;;  %6261 = vmatmul.msk.bf16.vlgmr.msra.gmra.mxu1 %vm251_vm2, %v8271_v25  ;;  %4983 = vrot.lane.b32.xlu2 %v7982_v19, %s6610_s18  ;;  %v4336_v19 = vpop.permute.xlu2 %4335 }
 0x2eb   : > { %4399 = vmatpush.bf16.msra.mxu1 %v4359_v5  ;;  %5189 = vrot.lane.b32.xlu1 %v8424_v14, %s6611_s21  ;;  %v4342_v48 = vpop.permute.xlu1 %4341  ;;  %v4349_v56 = vsel %vm4343_vm9, %v4336_v19, %v8396_v10  ;;  %v4374_v10 = vsel %vm255_vm1, %v4350_v50, 0  ;;  %v5379_v34 = vpack.c.b16 %v5378_v18, %v5378_v18 }
 0x2ec   : > { %v8445_v52 = vpop.permute.xlu0 %4545  ;;  %v4371_v39 = vsel %vm255_vm1, %v4349_v56, 0  ;;  %v4351_v4 = vsel %vm4343_vm9, %v4340_v2, %v4342_v48 }
 0x2ed   : > { %5201 = vrot.lane.b32.xlu0 %v8422_v33, %s6611_s21  ;;  %v4377_v28 = vsel %vm255_vm1, %v4351_v4, 0  ;;  %v5376_v4 = vld [vmem:[%s6727_s4 + $0x28] sm:$0xf] }
 0x2ee   : > { %v3177_v40 = vpop.f32.mrf.mxu2 }
 0x2ef   : > { %v3190_v60 = vpop.f32.mrf.mxu3  ;;  %v3313_v49 = vpop.f32.mrf.mxu0 }
 0x2f0   : > { %v3328_v8 = vpop.f32.mrf.mxu1  ;;  %v8440_v9 = vadd.f32 %v3313_v49, %v8330_v37  ;;  %v8454_v37 = vpack.c.b16 %v5176_v23, %v5176_v23  ;;  %v5160_v23 = vld [vmem:[%s6727_s4 + $0x28] sm:$0xf] }
 0x2f1   : > { %v3216_v43 = vld [vmem:[%s7051_s20 + $0x38] sm:$0xff] }
 0x2f2   : > { %6260 = vmatmul.msk.bf16.vlgmr.msra.gmra.mxu0 %vm251_vm2, %v8271_v25  ;;  %v8474_v53 = vpop.permute.xlu2 %4549  ;;  %5197 = vrot.lane.b32.xlu2 %v8490_v41, %s6611_s21 }
 0x2f3   : > { %6262 = vmatmul.msk.bf16.vlgmr.msra.gmra.mxu2 %vm251_vm2, %v8271_v25  ;;  %4386 = vmatpush.bf16.msra.mxu0 %v4356_v44  ;;  %v4548_v32 = vpop.permute.xlu1 %4547 }
 0x2f4   : > { %6263 = vmatmul.msk.bf16.vlgmr.msra.gmra.mxu3 %vm251_vm2, %v8271_v25  ;;  %4412 = vmatpush.bf16.msra.mxu2 %v4362_v3  ;;  %v4562_v30 = vsel %vm4559_vm10, %v8445_v52, %v4548_v32  ;;  %v4563_v3 = vsel %vm4559_vm10, %v4548_v32, %v8474_v53 }
 0x2f5   : > { %4425 = vmatpush.bf16.msra.mxu3 %v4365_v55  ;;  %5199 = vrot.lane.b32.xlu0 %v8454_v37, %s6611_s21  ;;  %v4578_v55 = vsel %vm255_vm1, %v4562_v30, 0 }
 0x2f6   : > { %v3339_v59 = vpop.f32.mrf.mxu2  ;;  %5203 = vrot.lane.b32.xlu1 %v8456_v22, %s6611_s21 }
 0x2f7   : > { %v3352_v24 = vpop.f32.mrf.mxu3  ;;  %v8463_v51 = vadd.f32 %v3339_v59, %v8350_v38  ;;  %v3315_v11 = vpop.f32.mrf.mxu0 }
 0x2f8   : > { %v8466_v35 = vadd.f32 %v3352_v24, %v8353_v36  ;;  %v3378_v1 = vpop.f32.mrf.mxu1  ;;  %v8478_v38 = vpop.permute.xlu0 %4516  ;;  %v5179_v24 = vunpack.c.l.b16 %v5160_v23  ;;  %v4581_v11 = vsel %vm255_vm1, %v4563_v3, 0 }
 0x2f9   : > { %v8471_v57 = vadd.f32 %v3378_v1, %v8356_v58  ;;  %v4348_v58 = vsel %vm4343_vm9, %v8363_v42, %v4336_v19 }
 0x2fa   : > { %6265 = vmatmul.msk.bf16.vlgmr.msrb.gmra.mxu1 %vm251_vm2, %v8271_v25  ;;  %v4368_v42 = vsel %vm255_vm1, %v4348_v58, 0  ;;  %5191 = vrot.lane.b32.xlu2 %v8521_v13, %s6611_s21 }
 0x2fb   : > { %4451 = vmatpush.bf16.msrb.mxu1 %v4371_v39  ;;  %v4542_v6 = vpop.permute.xlu1 %4541 }
 0x2fd   : > { %5413 = vrot.lane.b32.xlu0 %v8490_v41, %s6612_s24 }
 0x2fe   : > { %v3341_v36 = vpop.f32.mrf.mxu2  ;;  %5409 = vrot.lane.b32.xlu1 %v8369_v54, %s6612_s24 }
 0x2ff   : > { %v3354_v46 = vpop.f32.mrf.mxu3  ;;  %v3365_v0 = vpop.f32.mrf.mxu0 }
 0x300   : > { %v3380_v17 = vpop.f32.mrf.mxu1  ;;  %v8488_v7 = vadd.f32 %v3365_v0, %v8383_v21  ;;  %v4544_v21 = vpop.permute.xlu2 %4543 }
 0x301   : > { %v8503_v16 = vpop.permute.xlu0 %4553  ;;  %v4561_v5 = vsel %vm4559_vm10, %v4544_v21, %v8445_v52  ;;  %v4560_v48 = vsel %vm4559_vm10, %v4542_v6, %v4544_v21  ;;  %v5395_v6 = vunpack.c.l.b16 %v5376_v4 }
 0x302   : > { %6264 = vmatmul.msk.bf16.vlgmr.msrb.gmra.mxu0 %vm251_vm2, %v8271_v25  ;;  %v4575_v49 = vsel %vm255_vm1, %v4561_v5, 0  ;;  %v4572_v56 = vsel %vm255_vm1, %v4560_v48, 0 }
 0x303   : > { %6266 = vmatmul.msk.bf16.vlgmr.msrb.gmra.mxu2 %vm251_vm2, %v8271_v25  ;;  %4438 = vmatpush.bf16.msrb.mxu0 %v4368_v42  ;;  %v4556_v8 = vpop.permute.xlu1 %4555 }
 0x304   : > { %6267 = vmatmul.msk.bf16.vlgmr.msrb.gmra.mxu3 %vm251_vm2, %v8271_v25  ;;  %4464 = vmatpush.bf16.msrb.mxu2 %v4374_v10  ;;  %v4566_v18 = vsel %vm4559_vm10, %v8503_v16, %v4556_v8 }
 0x305   : > { %4477 = vmatpush.bf16.msrb.mxu3 %v4377_v28  ;;  %5407 = vrot.lane.b32.xlu0 %v8521_v13, %s6612_s24 }
 0x306   : > { %v3391_v2 = vpop.f32.mrf.mxu2  ;;  %5380 = vrot.lane.b32.xlu1 %v5379_v34, %s6589_s3  ;;  %s6614_s3 = smov 73  }
 0x307   : > { %v3404_v62 = vpop.f32.mrf.mxu3  ;;  %v8511_v20 = vadd.f32 %v3391_v2, %v8407_v61  ;;  %v3367_v40 = vpop.f32.mrf.mxu0 }
 0x308   : > { %v3415_v25 = vadd.f32 %v3404_v62, %v3216_v43  ;;  %v3542_v60 = vpop.f32.mrf.mxu1  ;;  %v4590_v43 = vsel %vm255_vm1, %v4566_v18, 0 }
 0x309   : > { %v8516_v47 = vadd.f32 %v3542_v60, %v8410_v26  ;;  %v4552_v52 = vpop.permute.xlu0 %4551 }
 0x30a   : > { %3423 = vst.msk [vmem:[%s7051_s20 + $0x38] sm:$0xff] %vm185_vm7, %v3415_v25  ;;  %6269 = vmatmul.msk.bf16.vlgmr.msra.gmra.mxu1 %vm251_vm2, %v8367_v63  ;;  %v4565_v1 = vsel %vm4559_vm10, %v4552_v52, %v8503_v16  ;;  %v4564_v42 = vsel %vm4559_vm10, %v8474_v53, %v4552_v52 }
 0x30b   : > { %4615 = vmatpush.bf16.msra.mxu1 %v4575_v49  ;;  %v8542_v59 = vpop.permute.xlu1 %4761  ;;  %v4587_v0 = vsel %vm255_vm1, %v4565_v1, 0  ;;  %v4584_v2 = vsel %vm255_vm1, %v4564_v42, 0 }
 0x30c   : > { %v4558_v19 = vpop.permute.xlu2 %4557 }
 0x30d   : > { %v4567_v34 = vsel %vm4559_vm10, %v4556_v8, %v4558_v19 }
 0x30e   : > { %v3393_v61 = vpop.f32.mrf.mxu2  ;;  %5417 = vrot.lane.b32.xlu1 %v8422_v33, %s6612_s24  ;;  %v4593_v16 = vsel %vm255_vm1, %v4567_v34, 0 }
 0x30f   : > { %v3406_v26 = vpop.f32.mrf.mxu3  ;;  %v3529_v27 = vpop.f32.mrf.mxu0 }
 0x310   : > { %v3544_v45 = vpop.f32.mrf.mxu1  ;;  %v8537_v44 = vadd.f32 %v3529_v27, %v8440_v9  ;;  %v5188_v9 = vpack.c.b16 %v5179_v24, %v5179_v24 }
 0x311   : > { %v8567_v31 = vpop.permute.xlu0 %4765  ;;  %v3432_v60 = vld [vmem:[%s7051_s20 + $0x38] sm:$0xff] }
 0x312   : > { %6268 = vmatmul.msk.bf16.vlgmr.msra.gmra.mxu0 %vm251_vm2, %v8367_v63  ;;  %5205 = vrot.lane.b32.xlu2 %v5188_v9, %s6611_s21 }
 0x313   : > { %6270 = vmatmul.msk.bf16.vlgmr.msra.gmra.mxu2 %vm251_vm2, %v8367_v63  ;;  %4602 = vmatpush.bf16.msra.mxu0 %v4572_v56 }
 0x314   : > { %6271 = vmatmul.msk.bf16.vlgmr.msra.gmra.mxu3 %vm251_vm2, %v8367_v63  ;;  %4628 = vmatpush.bf16.msra.mxu2 %v4578_v55  ;;  %v4764_v17 = vpop.permute.xlu2 %4763 }
 0x315   : > { %4641 = vmatpush.bf16.msra.mxu3 %v4581_v11  ;;  %v4778_v45 = vsel %vm4775_vm11, %v8542_v59, %v4764_v17  ;;  %v4779_v23 = vsel %vm4775_vm11, %v4764_v17, %v8567_v31 }
 0x316   : > { %v3555_v39 = vpop.f32.mrf.mxu2  ;;  %5415 = vrot.lane.b32.xlu1 %v8454_v37, %s6612_s24  ;;  %v4794_v52 = vsel %vm255_vm1, %v4778_v45, 0 }
 0x317   : > { %v3568_v32 = vpop.f32.mrf.mxu3  ;;  %v8555_v36 = vadd.f32 %v3555_v39, %v8463_v51  ;;  %v3531_v50 = vpop.f32.mrf.mxu0 }
 0x318   : > { %v8558_v46 = vadd.f32 %v3568_v32, %v8466_v35  ;;  %v3594_v58 = vpop.f32.mrf.mxu1  ;;  %v8571_v51 = vpop.permute.xlu1 %4732  ;;  %v5404_v35 = vpack.c.b16 %v5395_v6, %v5395_v6 }
 0x319   : > { %v8563_v29 = vadd.f32 %v3594_v58, %v8471_v57  ;;  %v4760_v62 = vpop.permute.xlu0 %4759 }
 0x31a   : > { %6273 = vmatmul.msk.bf16.vlgmr.msrb.gmra.mxu1 %vm251_vm2, %v8367_v63  ;;  %5421 = vrot.lane.b32.xlu0 %v5404_v35, %s6612_s24  ;;  %v4777_v25 = vsel %vm4775_vm11, %v4760_v62, %v8542_v59  ;;  %v4797_v59 = vsel %vm255_vm1, %v4779_v23, 0  ;;  %v5579_v35 = vld [vmem:[#allocation5 + $0x4] sm:$0xf] }
 0x31b   : > { %4667 = vmatpush.bf16.msrb.mxu1 %v4587_v0  ;;  %5411 = vrot.lane.b32.xlu2 %v8390_v12, %s6612_s24  ;;  %v4791_v30 = vsel %vm255_vm1, %v4777_v25, 0 }
 0x31c   : > { %v4758_v53 = vpop.permute.xlu2 %4757 }
 0x31e   : > { %v3557_v57 = vpop.f32.mrf.mxu2  ;;  %5629 = vrot.lane.b32.xlu1 %v8490_v41, %s6613_s29 }
 0x31f   : > { %v3570_v10 = vpop.f32.mrf.mxu3  ;;  %v3581_v28 = vpop.f32.mrf.mxu0  ;;  %v5594_v57 = vunpack.c.l.b16 %v5579_v35 }
 0x320   : > { %v3596_v21 = vpop.f32.mrf.mxu1  ;;  %v8584_v5 = vadd.f32 %v3581_v28, %v8488_v7  ;;  %v8595_v7 = vpop.permute.xlu1 %4769  ;;  %v5592_v28 = vld [vmem:[%s6727_s4 + $0x28] sm:$0xf] }
 0x322   : > { %6272 = vmatmul.msk.bf16.vlgmr.msrb.gmra.mxu0 %vm251_vm2, %v8367_v63  ;;  %5627 = vrot.lane.b32.xlu0 %v8390_v12, %s6613_s29 }
 0x323   : > { %6274 = vmatmul.msk.bf16.vlgmr.msrb.gmra.mxu2 %vm251_vm2, %v8367_v63  ;;  %4654 = vmatpush.bf16.msrb.mxu0 %v4584_v2 }
 0x324   : > { %6275 = vmatmul.msk.bf16.vlgmr.msrb.gmra.mxu3 %vm251_vm2, %v8367_v63  ;;  %4680 = vmatpush.bf16.msrb.mxu2 %v4590_v43  ;;  %v4772_v48 = vpop.permute.xlu2 %4771  ;;  %v5611_v43 = vunpack.c.l.b16 %v5592_v28 }
 0x325   : > { %4693 = vmatpush.bf16.msrb.mxu3 %v4593_v16  ;;  %5405 = vrot.lane.b32.xlu2 %v8424_v14, %s6612_s24  ;;  %v4782_v42 = vsel %vm4775_vm11, %v8595_v7, %v4772_v48 }
 0x326   : > { %v3607_v40 = vpop.f32.mrf.mxu2  ;;  %5623 = vrot.lane.b32.xlu1 %v8521_v13, %s6613_s29 }
 0x327   : > { %v3620_v15 = vpop.f32.mrf.mxu3  ;;  %v8605_v63 = vadd.f32 %v3607_v40, %v8511_v20  ;;  %v3583_v8 = vpop.f32.mrf.mxu0 }
 0x328   : > { %v3631_v49 = vadd.f32 %v3620_v15, %v3432_v60  ;;  %v3753_v61 = vpop.f32.mrf.mxu1  ;;  %v4768_v11 = vpop.permute.xlu1 %4767 }
 0x329   : > { %v8610_v26 = vadd.f32 %v3753_v61, %v8516_v47  ;;  %v4776_v47 = vsel %vm4775_vm11, %v4758_v53, %v4760_v62  ;;  %v4780_v18 = vsel %vm4775_vm11, %v8567_v31, %v4768_v11  ;;  %v5795_v62 = vld [vmem:[#allocation5 + $0x4] sm:$0xf]  ;;  %v5620_v31 = vpack.c.b16 %v5611_v43, %v5611_v43 }
 0x32a   : > { %3639 = vst.msk [vmem:[%s7051_s20 + $0x38] sm:$0xff] %vm185_vm7, %v3631_v49  ;;  %6277 = vmatmul.msk.bf16.vlgmr.msra.gmra.mxu1 %vm251_vm2, %v8478_v38  ;;  %5621 = vrot.lane.b32.xlu0 %v8424_v14, %s6613_s29  ;;  %v4788_v24 = vsel %vm255_vm1, %v4776_v47, 0  ;;  %v4800_v25 = vsel %vm255_vm1, %v4780_v18, 0  ;;  %v5810_v40 = vunpack.c.l.b16 %v5795_v62 }
 0x32b   : > { %4831 = vmatpush.bf16.msra.mxu1 %v4791_v30  ;;  %v4774_v56 = vpop.permute.xlu0 %4773 }
 0x32c   : > { %v8640_v9 = vpop.permute.xlu2 %4977  ;;  %v4783_v2 = vsel %vm4775_vm11, %v4772_v48, %v4774_v56 }
 0x32d   : > { %5419 = vrot.lane.b32.xlu2 %v8456_v22, %s6612_s24  ;;  %v4809_v60 = vsel %vm255_vm1, %v4783_v2, 0 }
 0x32e   : > { %v3609_v20 = vpop.f32.mrf.mxu2  ;;  %5637 = vrot.lane.b32.xlu1 %v5620_v31, %s6613_s29 }
 0x32f   : > { %v3622_v27 = vpop.f32.mrf.mxu3  ;;  %v3740_v3 = vpop.f32.mrf.mxu0 }
 0x330   : > { %v3755_v19 = vpop.f32.mrf.mxu1  ;;  %v8627_v55 = vadd.f32 %v3740_v3, %v8537_v44  ;;  %v4781_v44 = vsel %vm4775_vm11, %v4768_v11, %v8595_v7  ;;  %v8658_v10 = vpop.permute.xlu1 %4981  ;;  %v4806_v7 = vsel %vm255_vm1, %v4782_v42, 0 }
 0x331   : > { %v4803_v4 = vsel %vm255_vm1, %v4781_v44, 0  ;;  %v3648_v61 = vld [vmem:[%s7051_s20 + $0x38] sm:$0xff] }
 0x332   : > { %6276 = vmatmul.msk.bf16.vlgmr.msra.gmra.mxu0 %vm251_vm2, %v8478_v38  ;;  %5635 = vrot.lane.b32.xlu0 %v8456_v22, %s6613_s29 }
 0x333   : > { %6278 = vmatmul.msk.bf16.vlgmr.msra.gmra.mxu2 %vm251_vm2, %v8478_v38  ;;  %4818 = vmatpush.bf16.msra.mxu0 %v4788_v24  ;;  %v8656_v6 = vpop.permute.xlu0 %4979 }
 0x334   : > { %6279 = vmatmul.msk.bf16.vlgmr.msra.gmra.mxu3 %vm251_vm2, %v8478_v38  ;;  %4844 = vmatpush.bf16.msra.mxu2 %v4794_v52 }
 0x335   : > { %4857 = vmatpush.bf16.msra.mxu3 %v4797_v59  ;;  %5625 = vrot.lane.b32.xlu2 %v8369_v54, %s6613_s29 }
 0x336   : > { %v3766_v1 = vpop.f32.mrf.mxu2  ;;  %5843 = vrot.lane.b32.xlu1 %v8390_v12, %s6614_s3  ;;  %v4995_v12 = vsel %vm4991_vm12, %v8656_v6, %v8658_v10 }
 0x337   : > { %v3779_v39 = vpop.f32.mrf.mxu3  ;;  %v8647_v32 = vadd.f32 %v3766_v1, %v8555_v36  ;;  %v3742_v58 = vpop.f32.mrf.mxu0  ;;  %v5595_v36 = vpack.c.b16 %v5594_v57, %v5594_v57 }
 0x338   : > { %v8650_v50 = vadd.f32 %v3779_v39, %v8558_v46  ;;  %v3805_v0 = vpop.f32.mrf.mxu1  ;;  %v4976_v15 = vpop.permute.xlu1 %4975 }
 0x339   : > { %v8653_v17 = vadd.f32 %v3805_v0, %v8563_v29  ;;  %v4993_v49 = vsel %vm4991_vm12, %v4976_v15, %v8640_v9 }
 0x33a   : > { %6281 = vmatmul.msk.bf16.vlgmr.msrb.gmra.mxu1 %vm251_vm2, %v8478_v38  ;;  %5841 = vrot.lane.b32.xlu0 %v8369_v54, %s6614_s3  ;;  %v8674_v54 = vpop.permute.xlu2 %4948  ;;  %v5007_v47 = vsel %vm255_vm1, %v4993_v49, 0 }
 0x33b   : > { %4883 = vmatpush.bf16.msrb.mxu1 %v4803_v4  ;;  %v4974_v16 = vpop.permute.xlu0 %4973 }
 0x33c   : > { %v4992_v56 = vsel %vm4991_vm12, %v4974_v16, %v4976_v15 }
 0x33d   : > { %5596 = vrot.lane.b32.xlu2 %v5595_v36, %s6593_s17 }
 0x33e   : > { %v3768_v46 = vpop.f32.mrf.mxu2  ;;  %5837 = vrot.lane.b32.xlu1 %v8424_v14, %s6614_s3 }
 0x33f   : > { %v3781_v29 = vpop.f32.mrf.mxu3  ;;  %v3792_v21 = vpop.f32.mrf.mxu0 }
 0x340   : > { %v3807_v34 = vpop.f32.mrf.mxu1  ;;  %v8672_v53 = vadd.f32 %v3792_v21, %v8584_v5  ;;  %v5811_v5 = vpack.c.b16 %v5810_v40, %v5810_v40  ;;  %v4990_v59 = vpop.permute.xlu1 %4989 }
 0x342   : > { %6280 = vmatmul.msk.bf16.vlgmr.msrb.gmra.mxu0 %vm251_vm2, %v8478_v38  ;;  %5812 = vrot.lane.b32.xlu0 %v5811_v5, %s6594_s19  ;;  %v4986_v19 = vpop.permute.xlu2 %4985 }
 0x343   : > { %6282 = vmatmul.msk.bf16.vlgmr.msrb.gmra.mxu2 %vm251_vm2, %v8478_v38  ;;  %4870 = vmatpush.bf16.msrb.mxu0 %v4800_v25  ;;  %v4988_v3 = vpop.permute.xlu0 %4987 }
 0x344   : > { %6283 = vmatmul.msk.bf16.vlgmr.msrb.gmra.mxu3 %vm251_vm2, %v8478_v38  ;;  %4896 = vmatpush.bf16.msrb.mxu2 %v4806_v7  ;;  %v4998_v29 = vsel %vm4991_vm12, %v4986_v19, %v4988_v3  ;;  %v4999_v28 = vsel %vm4991_vm12, %v4988_v3, %v4990_v59 }
 0x345   : > { %4909 = vmatpush.bf16.msrb.mxu3 %v4809_v60  ;;  %5633 = vrot.lane.b32.xlu2 %v8422_v33, %s6613_s29 }
 0x346   : > { %v3818_v8 = vpop.f32.mrf.mxu2  ;;  %5851 = vrot.lane.b32.xlu1 %v8456_v22, %s6614_s3  ;;  %v5022_v22 = vsel %vm255_vm1, %v4998_v29, 0 }
 0x347   : > { %v3831_v30 = vpop.f32.mrf.mxu3  ;;  %v8693_v38 = vadd.f32 %v3818_v8, %v8605_v63  ;;  %v3794_v20 = vpop.f32.mrf.mxu0 }
 0x348   : > { %v3842_v48 = vadd.f32 %v3831_v30, %v3648_v61  ;;  %v3969_v27 = vpop.f32.mrf.mxu1  ;;  %v5196_v46 = vpop.permute.xlu1 %5195 }
 0x349   : > { %v8696_v45 = vadd.f32 %v3969_v27, %v8610_v26  ;;  %v4994_v26 = vsel %vm4991_vm12, %v8640_v9, %v8656_v6  ;;  %v5004_v9 = vsel %vm255_vm1, %v4992_v56, 0 }
 0x34a   : > { %3850 = vst.msk [vmem:[%s7051_s20 + $0x38] sm:$0xff] %vm185_vm7, %v3842_v48  ;;  %6285 = vmatmul.msk.bf16.vlgmr.msra.gmra.mxu1 %vm251_vm2, %v8571_v51  ;;  %5849 = vrot.lane.b32.xlu0 %v8422_v33, %s6614_s3  ;;  %v5010_v44 = vsel %vm255_vm1, %v4994_v26, 0  ;;  %v5013_v33 = vsel %vm255_vm1, %v4995_v12, 0 }
 0x34b   : > { %5047 = vmatpush.bf16.msra.mxu1 %v5007_v47 }
 0x34d   : > { %5631 = vrot.lane.b32.xlu2 %v8454_v37, %s6613_s29  ;;  %v8721_v1 = vpop.permute.xlu0 %5193 }
 0x34e   : > { %v3820_v63 = vpop.f32.mrf.mxu2  ;;  %v5210_v61 = vsel %vm5207_vm13, %v8721_v1, %v5196_v46 }
 0x34f   : > { %v3833_v23 = vpop.f32.mrf.mxu3  ;;  %v3956_v52 = vpop.f32.mrf.mxu0  ;;  %v5226_v3 = vsel %vm255_vm1, %v5210_v61, 0 }
 0x350   : > { %v3971_v24 = vpop.f32.mrf.mxu1  ;;  %v8717_v11 = vadd.f32 %v3956_v52, %v8627_v55  ;;  %v4984_v55 = vpop.permute.xlu2 %4983 }
 0x351   : > { %v4997_v39 = vsel %vm4991_vm12, %v4984_v55, %v4986_v19  ;;  %v3859_v16 = vld [vmem:[%s7051_s20 + $0x38] sm:$0xff] }
 0x352   : > { %6284 = vmatmul.msk.bf16.vlgmr.msra.gmra.mxu0 %vm251_vm2, %v8571_v51  ;;  %5847 = vrot.lane.b32.xlu0 %v8454_v37, %s6614_s3  ;;  %v5019_v14 = vsel %vm255_vm1, %v4997_v39, 0 }
 0x353   : > { %6286 = vmatmul.msk.bf16.vlgmr.msra.gmra.mxu2 %vm251_vm2, %v8571_v51  ;;  %5034 = vmatpush.bf16.msra.mxu0 %v5004_v9 }
 0x354   : > { %6287 = vmatmul.msk.bf16.vlgmr.msra.gmra.mxu3 %vm251_vm2, %v8571_v51  ;;  %5060 = vmatpush.bf16.msra.mxu2 %v5010_v44 }
 0x355   : > { %5073 = vmatpush.bf16.msra.mxu3 %v5013_v33  ;;  %5845 = vrot.lane.b32.xlu2 %v8490_v41, %s6614_s3 }
 0x356   : > { %v3982_v58 = vpop.f32.mrf.mxu2 }
 0x357   : > { %v3995_v0 = vpop.f32.mrf.mxu3  ;;  %v8738_v4 = vadd.f32 %v3982_v58, %v8647_v32  ;;  %v3958_v35 = vpop.f32.mrf.mxu0 }
 0x358   : > { %v8741_v6 = vadd.f32 %v3995_v0, %v8650_v50  ;;  %v4021_v57 = vpop.f32.mrf.mxu1  ;;  %v8749_v37 = vpop.permute.xlu0 %5164 }
 0x359   : > { %v8744_v36 = vadd.f32 %v4021_v57, %v8653_v17  ;;  %v8751_v41 = vpop.permute.xlu2 %5197  ;;  %v4996_v17 = vsel %vm4991_vm12, %v8658_v10, %v4984_v55  ;;  %v5025_v10 = vsel %vm255_vm1, %v4999_v28, 0  ;;  %v5808_v55 = vld [vmem:[%s6727_s4 + $0x28] sm:$0xf]  ;;  %s6337_s4 = sshll.u32 %s6651_s13, 6  ;;  %s6012_s13 = scalar_lea.sflag [#allocation4], %s6723_s28 }
 0x35a   : > { %6289 = vmatmul.msk.bf16.vlgmr.msrb.gmra.mxu1 %vm251_vm2, %v8571_v51  ;;  %v5016_v34 = vsel %vm255_vm1, %v4996_v17, 0  ;;  %v5211_v20 = vsel %vm5207_vm13, %v5196_v46, %v8751_v41  ;;  %v5827_v39 = vunpack.c.l.b16 %v5808_v55  ;;  %s6023_s22 = scalar_lea.hbm %s9109_s2, %s6337_s4 }
 0x35b   : > { %5099 = vmatpush.bf16.msrb.mxu1 %v5019_v14  ;;  %v5229_v23 = vsel %vm255_vm1, %v5211_v20, 0  ;;  %s6027_s30 = sshll.u32 %s6023_s22, 4  ;;  %s6028_s30 = int_to_ptr.hbm [resolvable:$true] %s6027_s30 }
 0x35c   : > { %v5836_v0 = vpack.c.b16 %v5827_v39, %v5827_v39  ;;  %s6514_s15 = sshra.s32 %s6028_s30, 4  ;;  %s6515_s15 = int_to_ptr.hbm [resolvable:$true] %s6514_s15 }
 0x35d   : > { %5839 = vrot.lane.b32.xlu2 %v8521_v13, %s6614_s3  ;;  %v5190_v2 = vpop.permute.xlu1 %5189  ;;  %s6516_s6 = scalar_lea.hbm %s6515_s15, 64  ;;  %p6521_p9 = scmp.lt.s32.totalorder %s6515_s15, %s9109_s2 }
 0x35e   : > { %v3984_v32 = vpop.f32.mrf.mxu2  ;;  %p6517_p1 = scmp.ne.s32.totalorder %s6515_s15, %s6516_s6  ;;  %p6522_p10 = scmp.lt.s32.totalorder %s6520_s8, %s6516_s6 }
 0x35f   : > { %v3997_v50 = vpop.f32.mrf.mxu3  ;;  %v4008_v42 = vpop.f32.mrf.mxu0 }
 0x360   : > { %v4023_v18 = vpop.f32.mrf.mxu1  ;;  %v8762_v21 = vadd.f32 %v4008_v42, %v8672_v53  ;;  %v5202_v13 = vpop.permute.xlu0 %5201  ;;  %p6518_p4 = pnand %p6517_p1, %p6697_p7  ;;  %p6523_p2 = por %p6522_p10, %p6521_p9 }
 0x361   : > { %v5192_v43 = vpop.permute.xlu2 %5191 }
 0x362   : > { %6288 = vmatmul.msk.bf16.vlgmr.msrb.gmra.mxu0 %vm251_vm2, %v8571_v51  ;;  %v5209_v7 = vsel %vm5207_vm13, %v5192_v43, %v8721_v1  ;;  %v5208_v30 = vsel %vm5207_vm13, %v5190_v2, %v5192_v43  ;;  %p6519_p8 = pneg %p6518_p4 }
 0x363   : > { %6290 = vmatmul.msk.bf16.vlgmr.msrb.gmra.mxu2 %vm251_vm2, %v8571_v51  ;;  %5086 = vmatpush.bf16.msrb.mxu0 %v5016_v34  ;;  %v5223_v15 = vsel %vm255_vm1, %v5209_v7, 0  ;;  %v5220_v19 = vsel %vm255_vm1, %v5208_v30, 0 }
 0x364   : > { %6291 = vmatmul.msk.bf16.vlgmr.msrb.gmra.mxu3 %vm251_vm2, %v8571_v51  ;;  %5112 = vmatpush.bf16.msrb.mxu2 %v5022_v22  ;;  %p6524_p11 = pnand %p6523_p2, %p6519_p8 }
 0x365   : > { %5125 = vmatpush.bf16.msrb.mxu3 %v5025_v10  ;;  %5853 = vrot.lane.b32.xlu2 %v5836_v0, %s6614_s3 }
 0x366   : > { %v4034_v53 = vpop.f32.mrf.mxu2 }
 0x367   : > { %v4047_v62 = vpop.f32.mrf.mxu3  ;;  %v8777_v25 = vadd.f32 %v4034_v53, %v8693_v38  ;;  %v4010_v40 = vpop.f32.mrf.mxu0 }
 0x368   : > { %v4058_v31 = vadd.f32 %v4047_v62, %v3859_v16  ;;  %v4185_v60 = vpop.f32.mrf.mxu1  ;;  %v5204_v5 = vpop.permute.xlu1 %5203 }
 0x369   : > { %v8780_v51 = vadd.f32 %v4185_v60, %v8696_v45  ;;  %v5200_v45 = vpop.permute.xlu0 %5199  ;;  %v5214_v57 = vsel %vm5207_vm13, %v5202_v13, %v5204_v5 }
 0x36a   : > { %4066 = vst.msk [vmem:[%s7051_s20 + $0x38] sm:$0xff] %vm185_vm7, %v4058_v31  ;;  %6293 = vmatmul.msk.bf16.vlgmr.msra.gmra.mxu1 %vm251_vm2, %v8674_v54  ;;  %v5213_v26 = vsel %vm5207_vm13, %v5200_v45, %v5202_v13  ;;  %v5212_v35 = vsel %vm5207_vm13, %v8751_v41, %v5200_v45  ;;  %v5238_v17 = vsel %vm255_vm1, %v5214_v57, 0 }
 0x36b   : > { %5263 = vmatpush.bf16.msra.mxu1 %v5223_v15  ;;  %v5235_v9 = vsel %vm255_vm1, %v5213_v26, 0  ;;  %v5232_v29 = vsel %vm255_vm1, %v5212_v35, 0 }
 0x36c   : > { %v5206_v47 = vpop.permute.xlu2 %5205 }
 0x36d   : > { %v5215_v46 = vsel %vm5207_vm13, %v5204_v5, %v5206_v47 }
 0x36e   : > { %v4036_v49 = vpop.f32.mrf.mxu2  ;;  %v5241_v41 = vsel %vm255_vm1, %v5215_v46, 0 }
 0x36f   : > { %v4049_v8 = vpop.f32.mrf.mxu3  ;;  %v4172_v38 = vpop.f32.mrf.mxu0 }
 0x370   : > { %v4187_v48 = vpop.f32.mrf.mxu1  ;;  %v8793_v27 = vadd.f32 %v4172_v38, %v8717_v11  ;;  %v8797_v63 = vpop.permute.xlu1 %5409 }
 0x371   : > { %v8817_v33 = vpop.permute.xlu0 %5413  ;;  %v4075_v22 = vld [vmem:[%s7051_s20 + $0x38] sm:$0xff] }
 0x372   : > { %6292 = vmatmul.msk.bf16.vlgmr.msra.gmra.mxu0 %vm251_vm2, %v8674_v54 }
 0x373   : > { %6294 = vmatmul.msk.bf16.vlgmr.msra.gmra.mxu2 %vm251_vm2, %v8674_v54  ;;  %5250 = vmatpush.bf16.msra.mxu0 %v5220_v19 }
 0x374   : > { %6295 = vmatmul.msk.bf16.vlgmr.msra.gmra.mxu3 %vm251_vm2, %v8674_v54  ;;  %5276 = vmatpush.bf16.msra.mxu2 %v5226_v3 }
 0x375   : > { %5289 = vmatpush.bf16.msra.mxu3 %v5229_v23  ;;  %v5412_v1 = vpop.permute.xlu2 %5411 }
 0x376   : > { %v4198_v56 = vpop.f32.mrf.mxu2 }
 0x377   : > { %v4211_v52 = vpop.f32.mrf.mxu3  ;;  %v8808_v24 = vadd.f32 %v4198_v56, %v8738_v4  ;;  %v4174_v11 = vpop.f32.mrf.mxu0 }
 0x378   : > { %v8811_v12 = vadd.f32 %v4211_v52, %v8741_v6  ;;  %v4237_v59 = vpop.f32.mrf.mxu1  ;;  %v8822_v58 = vpop.permute.xlu1 %5380 }
 0x379   : > { %v8814_v44 = vadd.f32 %v4237_v59, %v8744_v36  ;;  %v5408_v42 = vpop.permute.xlu0 %5407 }
 0x37a   : > { %6297 = vmatmul.msk.bf16.vlgmr.msrb.gmra.mxu1 %vm251_vm2, %v8674_v54  ;;  %v5425_v28 = vsel %vm5423_vm14, %v5408_v42, %v8797_v63 }
 0x37b   : > { %5315 = vmatpush.bf16.msrb.mxu1 %v5235_v9 }
 0x37e   : > { %v4200_v4 = vpop.f32.mrf.mxu2 }
 0x37f   : > { %v4213_v6 = vpop.f32.mrf.mxu3  ;;  %v4224_v36 = vpop.f32.mrf.mxu0 }
 0x380   : > { %v4239_v14 = vpop.f32.mrf.mxu1  ;;  %v8830_v32 = vadd.f32 %v4224_v36, %v8762_v21  ;;  %v5406_v50 = vpop.permute.xlu2 %5405 }
 0x381   : > { %v5418_v18 = vpop.permute.xlu1 %5417  ;;  %v5424_v31 = vsel %vm5423_vm14, %v5406_v50, %v5408_v42 }
 0x382   : > { %6296 = vmatmul.msk.bf16.vlgmr.msrb.gmra.mxu0 %vm251_vm2, %v8674_v54  ;;  %v5436_v8 = vsel %vm255_vm1, %v5424_v31, 0 }
 0x383   : > { %6298 = vmatmul.msk.bf16.vlgmr.msrb.gmra.mxu2 %vm251_vm2, %v8674_v54  ;;  %5302 = vmatpush.bf16.msrb.mxu0 %v5232_v29 }
 0x384   : > { %6299 = vmatmul.msk.bf16.vlgmr.msrb.gmra.mxu3 %vm251_vm2, %v8674_v54  ;;  %5328 = vmatpush.bf16.msrb.mxu2 %v5238_v17  ;;  %v5439_v54 = vsel %vm255_vm1, %v5425_v28, 0 }
 0x385   : > { %5341 = vmatpush.bf16.msrb.mxu3 %v5241_v41 }
 0x386   : > { %v4250_v21 = vpop.f32.mrf.mxu2 }
 0x387   : > { %v4263_v34 = vpop.f32.mrf.mxu3  ;;  %v8845_v2 = vadd.f32 %v4250_v21, %v8777_v25  ;;  %v4226_v13 = vpop.f32.mrf.mxu0  ;;  %v5426_v25 = vsel %vm5423_vm14, %v8797_v63, %v5412_v1 }
 0x388   : > { %v4274_v10 = vadd.f32 %v4263_v34, %v4075_v22  ;;  %v4401_v43 = vpop.f32.mrf.mxu1  ;;  %v5420_v16 = vpop.permute.xlu2 %5419  ;;  %v5442_v49 = vsel %vm255_vm1, %v5426_v25, 0 }
 0x389   : > { %v8848_v53 = vadd.f32 %v4401_v43, %v8780_v51  ;;  %v5427_v51 = vsel %vm5423_vm14, %v5412_v1, %v8817_v33  ;;  %v5416_v61 = vpop.permute.xlu1 %5415 }
 0x38a   : > { %4282 = vst.msk [vmem:[%s7051_s20 + $0x38] sm:$0xff] %vm185_vm7, %v4274_v10  ;;  %6301 = vmatmul.msk.bf16.vlgmr.msra.gmra.mxu1 %vm251_vm2, %v8749_v37  ;;  %v5445_v38 = vsel %vm255_vm1, %v5427_v51, 0  ;;  %v5429_v48 = vsel %vm5423_vm14, %v5416_v61, %v5418_v18  ;;  %v5428_v59 = vsel %vm5423_vm14, %v8817_v33, %v5416_v61 }
 0x38b   : > { %5479 = vmatpush.bf16.msra.mxu1 %v5439_v54  ;;  %v5451_v23 = vsel %vm255_vm1, %v5429_v48, 0  ;;  %v5448_v0 = vsel %vm255_vm1, %v5428_v59, 0 }
 0x38c   : > { %v5422_v5 = vpop.permute.xlu0 %5421 }
 0x38d   : > { %v5431_v1 = vsel %vm5423_vm14, %v5420_v16, %v5422_v5 }
 0x38e   : > { %v4252_v62 = vpop.f32.mrf.mxu2  ;;  %v5457_v6 = vsel %vm255_vm1, %v5431_v1, 0 }
 0x38f   : > { %v4265_v7 = vpop.f32.mrf.mxu3  ;;  %v4388_v40 = vpop.f32.mrf.mxu0 }
 0x390   : > { %v4403_v60 = vpop.f32.mrf.mxu1  ;;  %v8861_v15 = vadd.f32 %v4388_v40, %v8793_v27  ;;  %v5626_v30 = vpop.permute.xlu2 %5625 }
 0x391   : > { %v8883_v56 = vpop.permute.xlu1 %5629  ;;  %v4291_v14 = vld [vmem:[%s7051_s20 + $0x38] sm:$0xff] }
 0x392   : > { %6300 = vmatmul.msk.bf16.vlgmr.msra.gmra.mxu0 %vm251_vm2, %v8749_v37 }
 0x393   : > { %6302 = vmatmul.msk.bf16.vlgmr.msra.gmra.mxu2 %vm251_vm2, %v8749_v37  ;;  %5466 = vmatpush.bf16.msra.mxu0 %v5436_v8 }
 0x394   : > { %6303 = vmatmul.msk.bf16.vlgmr.msra.gmra.mxu3 %vm251_vm2, %v8749_v37  ;;  %5492 = vmatpush.bf16.msra.mxu2 %v5442_v49  ;;  %v5628_v26 = vpop.permute.xlu0 %5627 }
 0x395   : > { %5505 = vmatpush.bf16.msra.mxu3 %v5445_v38  ;;  %v5642_v21 = vsel %vm5639_vm15, %v5626_v30, %v5628_v26  ;;  %v5643_v10 = vsel %vm5639_vm15, %v5628_v26, %v8883_v56 }
 0x396   : > { %v4414_v20 = vpop.f32.mrf.mxu2  ;;  %v5658_v43 = vsel %vm255_vm1, %v5642_v21, 0 }
 0x397   : > { %v4427_v27 = vpop.f32.mrf.mxu3  ;;  %v8874_v45 = vadd.f32 %v4414_v20, %v8808_v24  ;;  %v4390_v3 = vpop.f32.mrf.mxu0 }
 0x398   : > { %v8877_v47 = vadd.f32 %v4427_v27, %v8811_v12  ;;  %v4453_v19 = vpop.f32.mrf.mxu1  ;;  %v8887_v52 = vpop.permute.xlu2 %5596  ;;  %v5430_v12 = vsel %vm5423_vm14, %v5418_v18, %v5420_v16  ;;  %v5661_v16 = vsel %vm255_vm1, %v5643_v10, 0 }
 0x399   : > { %v8880_v63 = vadd.f32 %v4453_v19, %v8814_v44  ;;  %v5454_v39 = vsel %vm255_vm1, %v5430_v12, 0  ;;  %v5624_v33 = vpop.permute.xlu1 %5623 }
 0x39a   : > { %6305 = vmatmul.msk.bf16.vlgmr.msrb.gmra.mxu1 %vm251_vm2, %v8749_v37  ;;  %v5641_v57 = vsel %vm5639_vm15, %v5624_v33, %v5626_v30 }
 0x39b   : > { %5531 = vmatpush.bf16.msrb.mxu1 %v5451_v23 }
 0x39c   : > { %v5622_v4 = vpop.permute.xlu0 %5621 }
 0x39d   : > { %v5640_v22 = vsel %vm5639_vm15, %v5622_v4, %v5624_v33 }
 0x39e   : > { %v4416_v24 = vpop.f32.mrf.mxu2 }
 0x39f   : > { %v4429_v11 = vpop.f32.mrf.mxu3  ;;  %v4440_v44 = vpop.f32.mrf.mxu0 }
 0x3a0   : > { %v4455_v9 = vpop.f32.mrf.mxu1  ;;  %v8894_v55 = vadd.f32 %v4440_v44, %v8830_v32  ;;  %v5634_v35 = vpop.permute.xlu2 %5633 }
 0x3a1   : > { %v5638_v8 = vpop.permute.xlu1 %5637 }
 0x3a2   : > { %6304 = vmatmul.msk.bf16.vlgmr.msrb.gmra.mxu0 %vm251_vm2, %v8749_v37 }
 0x3a3   : > { %6306 = vmatmul.msk.bf16.vlgmr.msrb.gmra.mxu2 %vm251_vm2, %v8749_v37  ;;  %5518 = vmatpush.bf16.msrb.mxu0 %v5448_v0 }
 0x3a4   : > { %6307 = vmatmul.msk.bf16.vlgmr.msrb.gmra.mxu3 %vm251_vm2, %v8749_v37  ;;  %5544 = vmatpush.bf16.msrb.mxu2 %v5454_v39  ;;  %v5655_v37 = vsel %vm255_vm1, %v5641_v57, 0  ;;  %v5636_v42 = vpop.permute.xlu0 %5635 }
 0x3a5   : > { %5557 = vmatpush.bf16.msrb.mxu3 %v5457_v6  ;;  %v5646_v48 = vsel %vm5639_vm15, %v5634_v35, %v5636_v42 }
 0x3a6   : > { %v4466_v36 = vpop.f32.mrf.mxu2 }
 0x3a7   : > { %v4479_v46 = vpop.f32.mrf.mxu3  ;;  %v8908_v32 = vadd.f32 %v4466_v36, %v8845_v2  ;;  %v4442_v29 = vpop.f32.mrf.mxu0 }
 0x3a8   : > { %v4490_v50 = vadd.f32 %v4479_v46, %v4291_v14  ;;  %v4617_v17 = vpop.f32.mrf.mxu1  ;;  %v5632_v54 = vpop.permute.xlu2 %5631 }
 0x3a9   : > { %v8911_v41 = vadd.f32 %v4617_v17, %v8848_v53  ;;  %v5652_v53 = vsel %vm255_vm1, %v5640_v22, 0  ;;  %v5645_v62 = vsel %vm5639_vm15, %v5632_v54, %v5634_v35  ;;  %v5644_v20 = vsel %vm5639_vm15, %v8883_v56, %v5632_v54  ;;  %v5844_v26 = vpop.permute.xlu1 %5843 }
 0x3aa   : > { %4498 = vst.msk [vmem:[%s7051_s20 + $0x38] sm:$0xff] %vm185_vm7, %v4490_v50  ;;  %6309 = vmatmul.msk.bf16.vlgmr.msra.gmra.mxu1 %vm251_vm2, %v8822_v58  ;;  %v5667_v49 = vsel %vm255_vm1, %v5645_v62, 0  ;;  %v5664_v23 = vsel %vm255_vm1, %v5644_v20, 0 }
 0x3ab   : > { %5695 = vmatpush.bf16.msra.mxu1 %v5655_v37 }
 0x3ac   : > { %v5842_v7 = vpop.permute.xlu0 %5841 }
 0x3ad   : > { %v5858_v57 = vsel %vm5855_vm0, %v5842_v7, %v5844_v26 }
 0x3ae   : > { %v4468_v18 = vpop.f32.mrf.mxu2  ;;  %v5874_v29 = vsel %vm255_vm1, %v5858_v57, 0 }
 0x3af   : > { %v4481_v28 = vpop.f32.mrf.mxu3  ;;  %v4604_v34 = vpop.f32.mrf.mxu0 }
 0x3b0   : > { %v4619_v2 = vpop.f32.mrf.mxu1  ;;  %v8923_v13 = vadd.f32 %v4604_v34, %v8861_v15  ;;  %v8945_v61 = vpop.permute.xlu2 %5845 }
 0x3b1   : > { %v4507_v59 = vld [vmem:[%s7051_s20 + $0x38] sm:$0xff]  ;;  %v5838_v6 = vpop.permute.xlu1 %5837 }
 0x3b2   : > { %6308 = vmatmul.msk.bf16.vlgmr.msra.gmra.mxu0 %vm251_vm2, %v8822_v58 }
 0x3b3   : > { %6310 = vmatmul.msk.bf16.vlgmr.msra.gmra.mxu2 %vm251_vm2, %v8822_v58  ;;  %5682 = vmatpush.bf16.msra.mxu0 %v5652_v53 }
 0x3b4   : > { %6311 = vmatmul.msk.bf16.vlgmr.msra.gmra.mxu3 %vm251_vm2, %v8822_v58  ;;  %5708 = vmatpush.bf16.msra.mxu2 %v5658_v43  ;;  %v8956_v19 = vpop.permute.xlu0 %5812 }
 0x3b5   : > { %5721 = vmatpush.bf16.msra.mxu3 %v5661_v16 }
 0x3b6   : > { %v4630_v25 = vpop.f32.mrf.mxu2 }
 0x3b7   : > { %v4643_v31 = vpop.f32.mrf.mxu3  ;;  %v8936_v40 = vadd.f32 %v4630_v25, %v8874_v45  ;;  %v4606_v51 = vpop.f32.mrf.mxu0 }
 0x3b8   : > { %v8939_v60 = vadd.f32 %v4643_v31, %v8877_v47  ;;  %v4669_v15 = vpop.f32.mrf.mxu1  ;;  %v5647_v47 = vsel %vm5639_vm15, %v5636_v42, %v5638_v8  ;;  %v5840_v24 = vpop.permute.xlu2 %5839 }
 0x3b9   : > { %v8942_v5 = vadd.f32 %v4669_v15, %v8880_v63  ;;  %v5670_v63 = vsel %vm255_vm1, %v5646_v48, 0  ;;  %v5673_v56 = vsel %vm255_vm1, %v5647_v47, 0  ;;  %v5857_v11 = vsel %vm5855_vm0, %v5840_v24, %v5842_v7  ;;  %v5852_v43 = vpop.permute.xlu1 %5851 }
 0x3ba   : > { %6313 = vmatmul.msk.bf16.vlgmr.msrb.gmra.mxu1 %vm251_vm2, %v8822_v58  ;;  %v5871_v4 = vsel %vm255_vm1, %v5857_v11, 0  ;;  %v5856_v36 = vsel %vm5855_vm0, %v5838_v6, %v5840_v24 }
 0x3bb   : > { %5747 = vmatpush.bf16.msrb.mxu1 %v5667_v49  ;;  %v5868_v17 = vsel %vm255_vm1, %v5856_v36, 0 }
 0x3be   : > { %v4632_v30 = vpop.f32.mrf.mxu2 }
 0x3bf   : > { %v4645_v38 = vpop.f32.mrf.mxu3  ;;  %v4656_v27 = vpop.f32.mrf.mxu0 }
 0x3c0   : > { %v4671_v45 = vpop.f32.mrf.mxu1  ;;  %v8954_v3 = vadd.f32 %v4656_v27, %v8894_v55  ;;  %v5854_v53 = vpop.permute.xlu2 %5853 }
 0x3c2   : > { %6312 = vmatmul.msk.bf16.vlgmr.msrb.gmra.mxu0 %vm251_vm2, %v8822_v58 }
 0x3c3   : > { %6314 = vmatmul.msk.bf16.vlgmr.msrb.gmra.mxu2 %vm251_vm2, %v8822_v58  ;;  %5734 = vmatpush.bf16.msrb.mxu0 %v5664_v23 }
 0x3c4   : > { %6315 = vmatmul.msk.bf16.vlgmr.msrb.gmra.mxu3 %vm251_vm2, %v8822_v58  ;;  %5760 = vmatpush.bf16.msrb.mxu2 %v5670_v63  ;;  %v5850_v58 = vpop.permute.xlu0 %5849 }
 0x3c5   : > { %5773 = vmatpush.bf16.msrb.mxu3 %v5673_v56  ;;  %v5862_v7 = vsel %vm5855_vm0, %v5850_v58, %v5852_v43 }
 0x3c6   : > { %v4682_v12 = vpop.f32.mrf.mxu2  ;;  %v5886_v15 = vsel %vm255_vm1, %v5862_v7, 0 }
 0x3c7   : > { %v4695_v44 = vpop.f32.mrf.mxu3  ;;  %v4705_v9 = vadd.f32 %v4682_v12, %v8908_v32  ;;  %v4658_v55 = vpop.f32.mrf.mxu0  ;;  %v5859_v32 = vsel %vm5855_vm0, %v5844_v26, %v8945_v61 }
 0x3c8   : > { %v4706_v1 = vadd.f32 %v4695_v44, %v4507_v59  ;;  %v4833_v39 = vpop.f32.mrf.mxu1 }
 0x3c9   : > { %v4916_v0 = vadd.f32 %v4833_v39, %v8911_v41  ;;  %v5877_v41 = vsel %vm255_vm1, %v5859_v32, 0 }
 0x3ca   : > { %4714 = vst.msk [vmem:[%s7051_s20 + $0x38] sm:$0xff] %vm185_vm7, %v4706_v1  ;;  %6317 = vmatmul.msk.bf16.vlgmr.msra.gmra.mxu1 %vm251_vm2, %v8887_v52 }
 0x3cb   : > { %5911 = vmatpush.bf16.msra.mxu1 %v5871_v4 }
 0x3cc   : > { %v5848_v37 = vpop.permute.xlu0 %5847 }
 0x3cd   : > { %v5861_v42 = vsel %vm5855_vm0, %v5848_v37, %v5850_v58  ;;  %v5860_v62 = vsel %vm5855_vm0, %v8945_v61, %v5848_v37 }
 0x3ce   : > { %v4684_v33 = vpop.f32.mrf.mxu2  ;;  %v5880_v51 = vsel %vm255_vm1, %v5860_v62, 0 }
 0x3cf   : > { %v4697_v35 = vpop.f32.mrf.mxu3  ;;  %v4820_v14 = vpop.f32.mrf.mxu0 }
 0x3d0   : > { %v4835_v46 = vpop.f32.mrf.mxu1  ;;  %v4915_v50 = vadd.f32 %v4820_v14, %v8923_v13  ;;  %v5883_v13 = vsel %vm255_vm1, %v5861_v42, 0 }
 0x3d1   : > { %v4723_v8 = vld [vmem:[%s7051_s20 + $0x38] sm:$0xff] }
 0x3d2   : > { %6316 = vmatmul.msk.bf16.vlgmr.msra.gmra.mxu0 %vm251_vm2, %v8887_v52 }
 0x3d3   : > { %6318 = vmatmul.msk.bf16.vlgmr.msra.gmra.mxu2 %vm251_vm2, %v8887_v52  ;;  %5898 = vmatpush.bf16.msra.mxu0 %v5868_v17 }
 0x3d4   : > { %6319 = vmatmul.msk.bf16.vlgmr.msra.gmra.mxu3 %vm251_vm2, %v8887_v52  ;;  %5924 = vmatpush.bf16.msra.mxu2 %v5874_v29 }
 0x3d5   : > { %5937 = vmatpush.bf16.msra.mxu3 %v5877_v41 }
 0x3d6   : > { %v4846_v18 = vpop.f32.mrf.mxu2 }
 0x3d7   : > { %v4859_v28 = vpop.f32.mrf.mxu3  ;;  %v4917_v21 = vadd.f32 %v4846_v18, %v8936_v40  ;;  %v4822_v34 = vpop.f32.mrf.mxu0  ;;  %v5863_v40 = vsel %vm5855_vm0, %v5852_v43, %v5854_v53 }
 0x3d8   : > { %v4918_v22 = vadd.f32 %v4859_v28, %v8939_v60  ;;  %v4885_v2 = vpop.f32.mrf.mxu1 }
 0x3d9   : > { %v4920_v10 = vadd.f32 %v4885_v2, %v8942_v5  ;;  %v5889_v5 = vsel %vm255_vm1, %v5863_v40, 0 }
 0x3da   : > { %6321 = vmatmul.msk.bf16.vlgmr.msrb.gmra.mxu1 %vm251_vm2, %v8887_v52 }
 0x3db   : > { %5963 = vmatpush.bf16.msrb.mxu1 %v5883_v13 }
 0x3de   : > { %v4848_v54 = vpop.f32.mrf.mxu2 }
 0x3df   : > { %v4861_v16 = vpop.f32.mrf.mxu3  ;;  %v4872_v25 = vpop.f32.mrf.mxu0 }
 0x3e0   : > { %v4887_v31 = vpop.f32.mrf.mxu1  ;;  %v4919_v60 = vadd.f32 %v4872_v25, %v8954_v3 }
 0x3e2   : > { %6320 = vmatmul.msk.bf16.vlgmr.msrb.gmra.mxu0 %vm251_vm2, %v8887_v52 }
 0x3e3   : > { %6322 = vmatmul.msk.bf16.vlgmr.msrb.gmra.mxu2 %vm251_vm2, %v8887_v52  ;;  %5950 = vmatpush.bf16.msrb.mxu0 %v5880_v51 }
 0x3e4   : > { %6323 = vmatmul.msk.bf16.vlgmr.msrb.gmra.mxu3 %vm251_vm2, %v8887_v52  ;;  %5976 = vmatpush.bf16.msrb.mxu2 %v5886_v15 }
 0x3e5   : > { %5989 = vmatpush.bf16.msrb.mxu3 %v5889_v5 }
 0x3e6   : > { %v4898_v49 = vpop.f32.mrf.mxu2 }
 0x3e7   : > { %v4911_v61 = vpop.f32.mrf.mxu3  ;;  %v4921_v30 = vadd.f32 %v4898_v49, %v4705_v9  ;;  %v4874_v48 = vpop.f32.mrf.mxu0 }
 0x3e8   : > { %v4922_v38 = vadd.f32 %v4911_v61, %v4723_v8  ;;  %v5049_v20 = vpop.f32.mrf.mxu1 }
 0x3e9   : > { %v5132_v27 = vadd.f32 %v5049_v20, %v4916_v0 }
 0x3ea   : > { %4930 = vst.msk [vmem:[%s7051_s20 + $0x38] sm:$0xff] %vm185_vm7, %v4922_v38  ;;  %6325 = vmatmul.msk.bf16.vlgmr.msra.gmra.mxu1 %vm251_vm2, %v8956_v19 }
 0x3ee   : > { %v4900_v45 = vpop.f32.mrf.mxu2 }
 0x3ef   : > { %v4913_v47 = vpop.f32.mrf.mxu3  ;;  %v5036_v3 = vpop.f32.mrf.mxu0 }
 0x3f0   : > { %v5051_v52 = vpop.f32.mrf.mxu1  ;;  %v5131_v63 = vadd.f32 %v5036_v3, %v4915_v50 }
 0x3f1   : > { %v4939_v4 = vld [vmem:[%s7051_s20 + $0x38] sm:$0xff] }
 0x3f2   : > { %6324 = vmatmul.msk.bf16.vlgmr.msra.gmra.mxu0 %vm251_vm2, %v8956_v19 }
 0x3f3   : > { %6326 = vmatmul.msk.bf16.vlgmr.msra.gmra.mxu2 %vm251_vm2, %v8956_v19 }
 0x3f4   : > { %6327 = vmatmul.msk.bf16.vlgmr.msra.gmra.mxu3 %vm251_vm2, %v8956_v19 }
 0x3f6   : > { %v5062_v23 = vpop.f32.mrf.mxu2 }
 0x3f7   : > { %v5075_v26 = vpop.f32.mrf.mxu3  ;;  %v5133_v56 = vadd.f32 %v5062_v23, %v4917_v21  ;;  %v5038_v11 = vpop.f32.mrf.mxu0 }
 0x3f8   : > { %v5134_v24 = vadd.f32 %v5075_v26, %v4918_v22  ;;  %v5101_v12 = vpop.f32.mrf.mxu1 }
 0x3f9   : > { %v5136_v59 = vadd.f32 %v5101_v12, %v4920_v10 }
 0x3fa   : > { %6329 = vmatmul.msk.bf16.vlgmr.msrb.gmra.mxu1 %vm251_vm2, %v8956_v19 }
 0x3fe   : > { %v5064_v44 = vpop.f32.mrf.mxu2 }
 0x3ff   : > { %v5077_v9 = vpop.f32.mrf.mxu3  ;;  %v5088_v1 = vpop.f32.mrf.mxu0 }
 0x400   : > { %v5103_v55 = vpop.f32.mrf.mxu1  ;;  %v5135_v39 = vadd.f32 %v5088_v1, %v4919_v60 }
 0x402   : > { %6328 = vmatmul.msk.bf16.vlgmr.msrb.gmra.mxu0 %vm251_vm2, %v8956_v19 }
 0x403   : > { %6330 = vmatmul.msk.bf16.vlgmr.msrb.gmra.mxu2 %vm251_vm2, %v8956_v19 }
 0x404   : > { %6331 = vmatmul.msk.bf16.vlgmr.msrb.gmra.mxu3 %vm251_vm2, %v8956_v19 }
 0x406   : > { %v5114_v0 = vpop.f32.mrf.mxu2 }
 0x407   : > { %v5127_v58 = vpop.f32.mrf.mxu3  ;;  %v5137_v6 = vadd.f32 %v5114_v0, %v4921_v30  ;;  %v5090_v35 = vpop.f32.mrf.mxu0 }
 0x408   : > { %v5138_v33 = vadd.f32 %v5127_v58, %v4939_v4  ;;  %v5265_v57 = vpop.f32.mrf.mxu1 }
 0x409   : > { %v5348_v36 = vadd.f32 %v5265_v57, %v5132_v27 }
 0x40a   : > { %5146 = vst.msk [vmem:[%s7051_s20 + $0x38] sm:$0xff] %vm185_vm7, %v5138_v33 }
 0x40e   : > { %v5116_v14 = vpop.f32.mrf.mxu2 }
 0x40f   : > { %v5129_v46 = vpop.f32.mrf.mxu3  ;;  %v5252_v32 = vpop.f32.mrf.mxu0 }
 0x410   : > { %v5267_v50 = vpop.f32.mrf.mxu1  ;;  %v9033_v29 = vadd.f32 %v5252_v32, %v5131_v63 }
 0x411   : > { %v5155_v43 = vld [vmem:[%s7051_s20 + $0x38] sm:$0xff] }
 0x416   : > { %v5278_v17 = vpop.f32.mrf.mxu2 }
 0x417   : > { %v5291_v41 = vpop.f32.mrf.mxu3  ;;  %v9035_v19 = vadd.f32 %v5278_v17, %v5133_v56  ;;  %v5254_v42 = vpop.f32.mrf.mxu0 }
 0x418   : > { %v9037_v37 = vadd.f32 %v5291_v41, %v5134_v24  ;;  %v5317_v18 = vpop.f32.mrf.mxu1 }
 0x419   : > { %v9039_v28 = vadd.f32 %v5317_v18, %v5136_v59 }
 0x41e   : > { %v5280_v21 = vpop.f32.mrf.mxu2 }
 0x41f   : > { %v5293_v22 = vpop.f32.mrf.mxu3  ;;  %v5304_v34 = vpop.f32.mrf.mxu0 }
 0x420   : > { %v5319_v2 = vpop.f32.mrf.mxu1  ;;  %v9041_v10 = vadd.f32 %v5304_v34, %v5135_v39 }
 0x426   : > { %v5330_v13 = vpop.f32.mrf.mxu2 }
 0x427   : > { %v5343_v53 = vpop.f32.mrf.mxu3  ;;  %v9044_v54 = vadd.f32 %v5330_v13, %v5137_v6  ;;  %v5306_v62 = vpop.f32.mrf.mxu0 }
 0x428   : > { %v5354_v16 = vadd.f32 %v5343_v53, %v5155_v43  ;;  %v5481_v7 = vpop.f32.mrf.mxu1 }
 0x429   : > { %v5564_v55 = vadd.f32 %v5481_v7, %v5348_v36 }
 0x42a   : > { %5362 = vst.msk [vmem:[%s7051_s20 + $0x38] sm:$0xff] %vm185_vm7, %v5354_v16 }
 0x42e   : > { %v5332_v25 = vpop.f32.mrf.mxu2 }
 0x42f   : > { %v5345_v31 = vpop.f32.mrf.mxu3  ;;  %v5468_v40 = vpop.f32.mrf.mxu0 }
 0x430   : > { %v5483_v60 = vpop.f32.mrf.mxu1  ;;  %v5563_v14 = vadd.f32 %v5468_v40, %v9033_v29 }
 0x431   : > { %v5371_v20 = vld [vmem:[%s7051_s20 + $0x38] sm:$0xff] }
 0x436   : > { %v5494_v51 = vpop.f32.mrf.mxu2 }
 0x437   : > { %v5507_v15 = vpop.f32.mrf.mxu3  ;;  %v5470_v5 = vpop.f32.mrf.mxu0  ;;  %v5565_v42 = vadd.f32 %v5494_v51, %v9035_v19 }
 0x438   : > { %v5533_v49 = vpop.f32.mrf.mxu1  ;;  %v5566_v18 = vadd.f32 %v5507_v15, %v9037_v37 }
 0x439   : > { %v5568_v21 = vadd.f32 %v5533_v49, %v9039_v28 }
 0x43e   : > { %v5496_v8 = vpop.f32.mrf.mxu2 }
 0x43f   : > { %v5509_v61 = vpop.f32.mrf.mxu3  ;;  %v5520_v30 = vpop.f32.mrf.mxu0 }
 0x440   : > { %v5535_v38 = vpop.f32.mrf.mxu1  ;;  %v5567_v19 = vadd.f32 %v5520_v30, %v9041_v10 }
 0x446   : > { %v9048_v48 = vpop.f32.mrf.mxu2 }
 0x447   : > { %v5559_v27 = vpop.f32.mrf.mxu3  ;;  %v5522_v47 = vpop.f32.mrf.mxu0  ;;  %v5569_v51 = vadd.f32 %v9048_v48, %v9044_v54 }
 0x448   : > { %v5570_v45 = vadd.f32 %v5559_v27, %v5371_v20  ;;  %v5697_v3 = vpop.f32.mrf.mxu1 }
 0x449   : > { %v5780_v39 = vadd.f32 %v5697_v3, %v5564_v55 }
 0x44a   : > { %5578 = vst.msk [vmem:[%s7051_s20 + $0x38] sm:$0xff] %vm185_vm7, %v5570_v45 }
 0x44e   : > { %v5548_v52 = vpop.f32.mrf.mxu2 }
 0x44f   : > { %v5561_v63 = vpop.f32.mrf.mxu3  ;;  %v5684_v23 = vpop.f32.mrf.mxu0 }
 0x450   : > { %v5699_v26 = vpop.f32.mrf.mxu1  ;;  %v5779_v46 = vadd.f32 %v5684_v23, %v5563_v14 }
 0x451   : > { %v5587_v4 = vld [vmem:[%s7051_s20 + $0x38] sm:$0xff] }
 0x456   : > { %v5710_v56 = vpop.f32.mrf.mxu2 }
 0x457   : > { %v5723_v24 = vpop.f32.mrf.mxu3  ;;  %v5686_v11 = vpop.f32.mrf.mxu0  ;;  %v5781_v22 = vadd.f32 %v5710_v56, %v5565_v42 }
 0x458   : > { %v5749_v12 = vpop.f32.mrf.mxu1  ;;  %v5782_v34 = vadd.f32 %v5723_v24, %v5566_v18 }
 0x459   : > { %v5784_v2 = vadd.f32 %v5749_v12, %v5568_v21 }
 0x45e   : > { %v5712_v59 = vpop.f32.mrf.mxu2 }
 0x45f   : > { %v5725_v44 = vpop.f32.mrf.mxu3  ;;  %v5736_v9 = vpop.f32.mrf.mxu0 }
 0x460   : > { %v5751_v1 = vpop.f32.mrf.mxu1  ;;  %v5783_v37 = vadd.f32 %v5736_v9, %v5567_v19 }
 0x466   : > { %v5762_v0 = vpop.f32.mrf.mxu2 }
 0x467   : > { %v5775_v58 = vpop.f32.mrf.mxu3  ;;  %v5738_v33 = vpop.f32.mrf.mxu0  ;;  %v5785_v15 = vadd.f32 %v5762_v0, %v5569_v51 }
 0x468   : > { %v5786_v6 = vadd.f32 %v5775_v58, %v5587_v4  ;;  %v5913_v35 = vpop.f32.mrf.mxu1 }
 0x469   : > { %v5996_v57 = vadd.f32 %v5913_v35, %v5780_v39 }
 0x46a   : > { %5794 = vst.msk [vmem:[%s7051_s20 + $0x38] sm:$0xff] %vm185_vm7, %v5786_v6 }
 0x46b   : > { %6004 = vst [vmem:[%s7051_s20 + $0x8] sm:$0xff] %v5996_v57 }
 0x46e   : > { %v5764_v32 = vpop.f32.mrf.mxu2 }
 0x46f   : > { %v5777_v50 = vpop.f32.mrf.mxu3  ;;  %v5900_v17 = vpop.f32.mrf.mxu0 }
 0x470   : > { %v5915_v41 = vpop.f32.mrf.mxu1  ;;  %v5995_v36 = vadd.f32 %v5900_v17, %v5779_v46 }
 0x471   : > { %v5803_v5 = vld [vmem:[%s7051_s20 + $0x38] sm:$0xff] }
 0x472   : > { %6003 = vst [vmem:[%s7051_s20] sm:$0xff] %v5995_v36 }
 0x476   : > { %v5926_v29 = vpop.f32.mrf.mxu2 }
 0x477   : > { %v5939_v13 = vpop.f32.mrf.mxu3  ;;  %v5997_v43 = vadd.f32 %v5926_v29, %v5781_v22  ;;  %v5902_v16 = vpop.f32.mrf.mxu0 }
 0x478   : > { %v5998_v53 = vadd.f32 %v5939_v13, %v5782_v34  ;;  %v5965_v62 = vpop.f32.mrf.mxu1 }
 0x479   : > { %v6000_v7 = vadd.f32 %v5965_v62, %v5784_v2  ;;  %6005 = vst [vmem:[%s7051_s20 + $0x10] sm:$0xff] %v5997_v43 }
 0x47a   : > { %6006 = vst [vmem:[%s7051_s20 + $0x18] sm:$0xff] %v5998_v53 }
 0x47b   : > { %6008 = vst [vmem:[%s7051_s20 + $0x28] sm:$0xff] %v6000_v7 }
 0x47e   : > { %v5928_v28 = vpop.f32.mrf.mxu2 }
 0x47f   : > { %v5941_v25 = vpop.f32.mrf.mxu3  ;;  %v5952_v31 = vpop.f32.mrf.mxu0 }
 0x480   : > { %v5967_v40 = vpop.f32.mrf.mxu1  ;;  %v5999_v60 = vadd.f32 %v5952_v31, %v5783_v37 }
 0x482   : > { %6007 = vst [vmem:[%s7051_s20 + $0x20] sm:$0xff] %v5999_v60 }
 0x486   : > { %v5978_v10 = vpop.f32.mrf.mxu2 }
 0x487   : > { %v5991_v49 = vpop.f32.mrf.mxu3  ;;  %v6001_v8 = vadd.f32 %v5978_v10, %v5785_v15  ;;  %v5954_v30 = vpop.f32.mrf.mxu0 }
 0x488   : > { %v6002_v61 = vadd.f32 %v5991_v49, %v5803_v5 }
 0x489   : > { %6009 = vst [vmem:[%s7051_s20 + $0x30] sm:$0xff] %v6001_v8 }
 0x48a   : > { %6010 = vst.msk [vmem:[%s7051_s20 + $0x38] sm:$0xff] %vm185_vm7, %v6002_v61 }
 0x48b   : > { %6527 = shalt.err (!%p6524_p11)
}
 0x48c   : > { %6347 = dma.vmem_to_hbm [thread:$0]  (%p6697_p7), %s6026_s25, 1024, %s6028_s30, %s6012_s13  }
 0x48e   : > { %v5980_v54 = vpop.f32.mrf.mxu2 }
 0x48f   : > { %v5993_v38 = vpop.f32.mrf.mxu3 }
 0x490 PF: > { %s6039_s28 = sand.u32 1, %s6558_s9   ;;  %p9115_p12 = scmp.ge.s32.totalorder %s6570_s12, 2 }
 0x491   : > { %s6040_s20 = scalar_lea.sflag [#allocation4], %s6039_s28 }
 0x492   : > { %p6358_p13 = pnand %p9115_p12, %p6665_p6 }
 0x494   : > { %p6359_p0 = pneg %p6358_p13 }
 0x496   : > { %6553 = dma.done.wait (%p6359_p0), %s6040_s20, 1024  }
 0x497   : > { %6555 = vsyncadd (%p6359_p0), %s6040_s20, 4294966272  ;;  %p16_p7 = scmp.ge.s32.totalorder %s6683_s23, 4   ;;  %s9116_s9 = smov %s6562_s10 }
 0x498   : > { %s9117_s10 = smov %s6566_s11  ;;  %s9118_s11 = smov %s6693_s26 }
 0x499   : > { %s9119_s12 = smov %s6683_s23  ;;  %18 = sbr.rel (!%p16_p7) target bundleno = 6 (0x6), region = 77 }
 0x49e   :  { %6046 = vsyncpa [#allocation3], 1 }
 0x49f   :  { %6048 = vsyncpa [#allocation3 + $0x1], 1 }
 0x4a0   :  { %6049 = vsyncpa [#allocation6], 1 }
 0x4a1   :  { %6050 = vsyncpa [#allocation4], 1 }
 0x4a2   :  { %6052 = vsyncpa [#allocation4 + $0x1], 1 }

</bundles_post_ra>
